<compile_context>
chip_gen: v5e
topology: v5e:2x2
jax: 0.10.0
libtpu: 0.0.40
codegen_flags: <defaults>
</compile_context>

<pallas_src>
import functools

import jax
import jax.numpy as jnp
import numpy as np
from jax.experimental import pallas as pl
from jax.experimental.pallas import tpu as pltpu


# ------------------------------ helpers ------------------------------------

def _round_up(x, m):
    return ((x + m - 1) // m) * m


def _pad_cols(a, target):
    pad = target - a.shape[-1]
    if pad <= 0:
        return a
    widths = [(0, 0)] * (a.ndim - 1) + [(0, pad)]
    return jnp.pad(a, widths)


def _pick_tile(n, candidates=(512, 256, 128)):
    """Tile size for the node dimension."""
    if n <= 512:
        # Tiny problem: a single grid step removes per-step (~0.35us) overhead.
        return n
    for c in candidates:
        if n % c == 0 and n // c >= 2:   # >=2 row tiles keeps both v7x TCs busy
            return c
    # Fallback: full-extent block (satisfies the (8,128) full-dim rule).
    return n


# -------------------------- input support matmul -----------------------------
# support0 = fea @ W_in  (only the very first feature transform needs its own
# pass; every later transform is fused into the previous layer's epilogue)

def _support_kernel(x_ref, w_ref, o_ref):
    o_ref[...] = jnp.dot(x_ref[...], w_ref[...],
                         preferred_element_type=jnp.float32).astype(o_ref.dtype)


def gcn_support(x, w, *, out_dtype):
    N, F = x.shape
    H = w.shape[1]
    tm = _pick_tile(N)
    assert N % tm == 0
    return pl.pallas_call(
        _support_kernel,
        out_shape=jax.ShapeDtypeStruct((N, H), out_dtype),
        grid_spec=pltpu.PrefetchScalarGridSpec(
            num_scalar_prefetch=0,
            grid=(N // tm,),
            in_specs=[pl.BlockSpec((tm, F), lambda i: (i, 0)),
                      pl.BlockSpec((F, H), lambda i: (0, 0))],
            out_specs=pl.BlockSpec((tm, H), lambda i: (i, 0)),
        ),
        compiler_params=pltpu.CompilerParams(
            dimension_semantics=("parallel",)),
    )(x, w)


# ---------------------- fused GCN layer (adj @ support) ----------------------
# act = f(adj @ support + b) [+ residual] [masked log_softmax]
# and, fused into the same epilogue, next_support = act @ W_next.

def _gcn_layer_kernel(adj_ref, sup_ref, b_ref, *rest,
                      has_res, has_next, want_act,
                      apply_relu, apply_log_softmax, valid_cols):
    idx = 0
    res_ref = None
    wn_ref = None
    if has_res:
        res_ref = rest[idx]; idx += 1
    if has_next:
        wn_ref = rest[idx]; idx += 1
    act_ref = None
    nsup_ref = None
    if want_act:
        act_ref = rest[idx]; idx += 1
    if has_next:
        nsup_ref = rest[idx]; idx += 1
    acc_ref = rest[idx]

    k = pl.program_id(1)

    @pl.when(k == 0)
    def _():
        acc_ref[...] = jnp.zeros_like(acc_ref)

    # acc += adj[i_tile, k_tile] @ support[k_tile]   (MXU, f32 accumulation)
    acc_ref[...] += jnp.dot(adj_ref[...], sup_ref[...],
                            preferred_element_type=jnp.float32)

    @pl.when(k == pl.num_programs(1) - 1)
    def _():
        out = acc_ref[...] + b_ref[...].astype(jnp.float32)
        if apply_relu:
            out = jnp.maximum(out, 0.0)
        if has_res:                                  # ResGCN 'add' aggregation
            out = out + res_ref[...].astype(jnp.float32)
        if apply_log_softmax:
            if valid_cols is not None and valid_cols < out.shape[-1]:
                # mask lane-padding columns so they don't affect max / sum
                col = jax.lax.broadcasted_iota(jnp.int32, out.shape, 1)
                out = jnp.where(col < valid_cols, out, -1e30)
            m = jnp.max(out, axis=-1, keepdims=True)
            s = out - m
            lse = jnp.log(jnp.sum(jnp.exp(s), axis=-1, keepdims=True))
            out = s - lse
        if want_act:
            act_ref[...] = out.astype(act_ref.dtype)
        if has_next:
            # fused feature transform for the NEXT layer (tiny W, MXU)
            nsup_ref[...] = jnp.dot(out.astype(wn_ref.dtype), wn_ref[...],
                                    preferred_element_type=jnp.float32
                                    ).astype(nsup_ref.dtype)


def gcn_layer_fused(adj_c, support, b, *, w_next=None, residual=None,
                    apply_relu=False, apply_log_softmax=False,
                    valid_cols=None, want_act=True, act_dtype=jnp.float32):
    N = adj_c.shape[0]
    H = support.shape[1]
    tm = _pick_tile(N)
    tk = _pick_tile(N)
    assert N % tm == 0 and N % tk == 0, "node count must tile evenly"
    b2 = b.reshape(1, H)
    has_res = residual is not None
    has_next = w_next is not None
    assert want_act or has_next

    in_specs = [
        pl.BlockSpec((tm, tk), lambda i, k: (i, k)),   # adj (O(N^2) stream)
        pl.BlockSpec((tk, H), lambda i, k: (k, 0)),    # support
        pl.BlockSpec((1, H), lambda i, k: (0, 0)),     # bias
    ]
    args = [adj_c, support, b2]
    if has_res:
        in_specs.append(pl.BlockSpec((tm, H), lambda i, k: (i, 0)))
        args.append(residual)
    if has_next:
        Hn = w_next.shape[1]
        in_specs.append(pl.BlockSpec((H, Hn), lambda i, k: (0, 0)))
        args.append(w_next)

    out_shapes = []
    out_specs = []
    if want_act:
        out_shapes.append(jax.ShapeDtypeStruct((N, H), act_dtype))
        out_specs.append(pl.BlockSpec((tm, H), lambda i, k: (i, 0)))
    if has_next:
        out_shapes.append(jax.ShapeDtypeStruct((N, Hn), w_next.dtype))
        out_specs.append(pl.BlockSpec((tm, Hn), lambda i, k: (i, 0)))

    kernel = functools.partial(_gcn_layer_kernel,
                               has_res=has_res, has_next=has_next,
                               want_act=want_act,
                               apply_relu=apply_relu,
                               apply_log_softmax=apply_log_softmax,
                               valid_cols=valid_cols)

    outs = pl.pallas_call(
        kernel,
        out_shape=tuple(out_shapes),
        grid_spec=pltpu.PrefetchScalarGridSpec(
            num_scalar_prefetch=0,
            grid=(N // tm, N // tk),
            in_specs=in_specs,
            out_specs=tuple(out_specs),
            scratch_shapes=[pltpu.VMEM((tm, H), jnp.float32)],
        ),
        compiler_params=pltpu.CompilerParams(
            dimension_semantics=("parallel", "arbitrary")),
    )(*args)

    outs = list(outs) if isinstance(outs, (tuple, list)) else [outs]
    if want_act and has_next:
        return outs[0], outs[1]
    return outs[0]


# --------------------------- model (glue in JAX) ----------------------------

def init_params(key, nfeat, nhid, nclass, nbaselayer):
    """Mirror GraphConvolutionBS.reset_parameters: uniform(-stdv, stdv),
    stdv = 1/sqrt(out_features)."""
    def gc_params(k, fin, fout):
        kw, kb = jax.random.split(k)
        stdv = 1.0 / np.sqrt(fout)
        w = jax.random.uniform(kw, (fin, fout), jnp.float32, -stdv, stdv)
        b = jax.random.uniform(kb, (fout,), jnp.float32, -stdv, stdv)
        return w, b

    keys = jax.random.split(key, nbaselayer + 2)
    return {
        "in": gc_params(keys[0], nfeat, nhid),
        "mid": [gc_params(keys[1 + l], nhid, nhid) for l in range(nbaselayer)],
        "out": gc_params(keys[-1], nhid, nclass),
    }


@functools.partial(jax.jit, static_argnames=("compute_dtype",))
def gcn_model_forward(fea, adj, params, *, compute_dtype=jnp.float32):
    adj_c = adj.astype(compute_dtype)        # cast adjacency once (MXU operand)

    w_in, b_in = params["in"]
    mids = params["mid"]
    w_out, b_out = params["out"]
    n_mid = len(mids)

    # output layer is lane-dense: pad class dim to a multiple of 128
    nclass = w_out.shape[1]
    ncp = _round_up(nclass, 128)
    w_out_p = _pad_cols(w_out, ncp).astype(compute_dtype)
    b_out_p = _pad_cols(b_out, ncp)

    # first feature transform: support0 = fea @ W_in
    sup = gcn_support(fea.astype(compute_dtype), w_in.astype(compute_dtype),
                      out_dtype=compute_dtype)

    # input GCN layer (ReLU); fused next-layer feature transform.
    # dropout in eval mode -> identity.
    w_next0 = (mids[0][0].astype(compute_dtype) if n_mid > 0 else w_out_p)
    x_res, sup = gcn_layer_fused(adj_c, sup, b_in, w_next=w_next0,
                                 apply_relu=True, want_act=True)

    # ResGCN block, aggrmethod='add': residual added after the last base layer
    for l in range(n_mid):
        is_last = (l == n_mid - 1)
        w_next_l = (w_out_p if is_last
                    else mids[l + 1][0].astype(compute_dtype))
        res = x_res if is_last else None
        sup = gcn_layer_fused(adj_c, sup, mids[l][1], w_next=w_next_l,
                              apply_relu=True, residual=res, want_act=False)

    # output GCN layer: identity activation + masked log_softmax fused.
    out = gcn_layer_fused(adj_c, sup, b_out_p, w_next=None,
                          apply_relu=False, apply_log_softmax=True,
                          valid_cols=nclass, want_act=True)
    return out[:, :nclass]


def gcn_model_reference(fea, adj, params):
    """Pure-JAX reference for correctness checking."""
    def layer(x, w, b, relu):
        out = adj @ (x @ w) + b
        return jnp.maximum(out, 0.0) if relu else out

    w_in, b_in = params["in"]
    x = layer(fea, w_in, b_in, True)
    block_in = x
    for (w, b) in params["mid"]:
        x = layer(x, w, b, True)
    x = x + block_in
    w_out, b_out = params["out"]
    x = layer(x, w_out, b_out, False)
    return jax.nn.log_softmax(x, axis=1)


# ----------------------------------- main ------------------------------------

if __name__ == "__main__":
    N, NFEAT, NHID, NCLASS = 256, 64, 128, 8
    NBASELAYER = 2

    key = jax.random.PRNGKey(0)
    k_fea, k_adj, k_par = jax.random.split(key, 3)

    fea = jax.random.normal(k_fea, (N, NFEAT), jnp.float32)

    # deterministic symmetric, row-normalized adjacency with self-loops
    a = (jax.random.uniform(k_adj, (N, N)) < 0.05).astype(jnp.float32)
    a = jnp.maximum(a, a.T) + jnp.eye(N, dtype=jnp.float32)
    adj = a / jnp.sum(a, axis=1, keepdims=True)

    params = init_params(k_par, NFEAT, NHID, NCLASS, NBASELAYER)

    ref = jax.block_until_ready(gcn_model_reference(fea, adj, params))

    # f32 MXU operands: tight check.
    out_f32 = jax.block_until_ready(
        gcn_model_forward(fea, adj, params, compute_dtype=jnp.float32))
    assert out_f32.shape == (N, NCLASS)
    np.testing.assert_allclose(np.asarray(out_f32), np.asarray(ref),
                               rtol=1e-4, atol=1e-4)

    # bf16 MXU operands with f32 accumulation (recommended on v6e/v7x): loose check.
    out_bf16 = jax.block_until_ready(
        gcn_model_forward(fea, adj, params, compute_dtype=jnp.bfloat16))
    np.testing.assert_allclose(np.asarray(out_bf16), np.asarray(ref),
                               rtol=5e-2, atol=5e-2)

    print("KERNEL_OK")
</pallas_src>

<mosaic_0001>
module attributes {stable_mosaic.version = 11 : i64} {
  func.func @_support_kernel(%arg0: i32, %arg1: memref<256x64xf32, #tpu.memory_space<vmem>>, %arg2: memref<64x128xf32, #tpu.memory_space<vmem>>, %arg3: memref<256x128xf32, #tpu.memory_space<vmem>>) attributes {dimension_semantics = [#tpu.dimension_semantics<parallel>], iteration_bounds = array<i64: 1>, scalar_prefetch = 0 : i64, scratch_operands = 0 : i64, tpu.core_type = #tpu.core_type<tc>, window_params = [{transform_indices = @transform_0, window_bounds = array<i64: 256, 64>}, {pipeline_mode = #tpu.pipeline_mode<synchronous>, transform_indices = @transform_1, window_bounds = array<i64: 64, 128>}, {transform_indices = @transform_2, window_bounds = array<i64: 256, 128>}]} {
    %c0 = arith.constant 0 : index
    %c0_0 = arith.constant 0 : index
    %0 = vector.load %arg1[%c0, %c0_0] : memref<256x64xf32, #tpu.memory_space<vmem>>, vector<256x64xf32>
    %c0_1 = arith.constant 0 : index
    %c0_2 = arith.constant 0 : index
    %1 = vector.load %arg2[%c0_1, %c0_2] : memref<64x128xf32, #tpu.memory_space<vmem>>, vector<64x128xf32>
    %cst = arith.constant dense<0.000000e+00> : vector<256x128xf32>
    %2 = tpu.matmul %0, %1, %cst {dimension_numbers = #tpu.dot_dimension_numbers<[1], [0], [0], [1], [0, 0, 1, 1], [], []>} : vector<256x64xf32>, vector<64x128xf32>, vector<256x128xf32> -> vector<256x128xf32>
    %c0_3 = arith.constant 0 : index
    %c0_4 = arith.constant 0 : index
    %3 = vector.load %arg3[%c0_3, %c0_4] : memref<256x128xf32, #tpu.memory_space<vmem>>, vector<256x128xf32>
    tpu.vector_store %arg3[%c0_3, %c0_4], %2 {strides = array<i32>} : memref<256x128xf32, #tpu.memory_space<vmem>>, vector<256x128xf32>,
    return
  }
  func.func @transform_0(%arg0: i32) -> (i32, i32) {
    %c0_i32 = arith.constant 0 : i32
    %c0_i32_0 = arith.constant 0 : i32
    return %arg0, %c0_i32 : i32, i32
  }
  func.func @transform_1(%arg0: i32) -> (i32, i32) {
    %c0_i32 = arith.constant 0 : i32
    %c0_i32_0 = arith.constant 0 : i32
    %c0_i32_1 = arith.constant 0 : i32
    return %c0_i32, %c0_i32_0 : i32, i32
  }
  func.func @transform_2(%arg0: i32) -> (i32, i32) {
    %c0_i32 = arith.constant 0 : i32
    %c0_i32_0 = arith.constant 0 : i32
    return %arg0, %c0_i32 : i32, i32
  }
}

module attributes {stable_mosaic.version = 11 : i64} {
  func.func @_gcn_layer_kernel(%arg0: i32, %arg1: i32, %arg2: memref<256x256xf32, #tpu.memory_space<vmem>>, %arg3: memref<256x128xf32, #tpu.memory_space<vmem>>, %arg4: memref<1x128xf32, #tpu.memory_space<vmem>>, %arg5: memref<128x128xf32, #tpu.memory_space<vmem>>, %arg6: memref<256x128xf32, #tpu.memory_space<vmem>>, %arg7: memref<256x128xf32, #tpu.memory_space<vmem>>) attributes {dimension_semantics = [#tpu.dimension_semantics<parallel>, #tpu.dimension_semantics<arbitrary>], iteration_bounds = array<i64: 1, 1>, scalar_prefetch = 0 : i64, scratch_operands = 1 : i64, tpu.core_type = #tpu.core_type<tc>, window_params = [{transform_indices = @transform_0, window_bounds = array<i64: 256, 256>}, {transform_indices = @transform_1, window_bounds = array<i64: 256, 128>}, {pipeline_mode = #tpu.pipeline_mode<synchronous>, transform_indices = @transform_2, window_bounds = array<i64: 1, 128>}, {pipeline_mode = #tpu.pipeline_mode<synchronous>, transform_indices = @transform_3, window_bounds = array<i64: 128, 128>}, {transform_indices = @transform_4, window_bounds = array<i64: 256, 128>}]} {
    %c0_i32 = arith.constant 0 : i32
    %0 = arith.cmpi eq, %arg1, %c0_i32 : i32
    %1 = arith.extui %0 : i1 to i32
    %c0_i32_0 = arith.constant 0 : i32
    %2 = arith.cmpi ne, %1, %c0_i32_0 : i32
    scf.if %2 {
      %cst_10 = arith.constant 0.000000e+00 : f32
      %12 = vector.broadcast %cst_10 : f32 to vector<256x128xf32>
      %c0_11 = arith.constant 0 : index
      %c0_12 = arith.constant 0 : index
      %13 = vector.load %arg7[%c0_11, %c0_12] : memref<256x128xf32, #tpu.memory_space<vmem>>, vector<256x128xf32>
      tpu.vector_store %arg7[%c0_11, %c0_12], %12 {strides = array<i32>} : memref<256x128xf32, #tpu.memory_space<vmem>>, vector<256x128xf32>,
    } else {
    }
    %c0 = arith.constant 0 : index
    %c0_1 = arith.constant 0 : index
    %3 = vector.load %arg7[%c0, %c0_1] : memref<256x128xf32, #tpu.memory_space<vmem>>, vector<256x128xf32>
    %c0_2 = arith.constant 0 : index
    %c0_3 = arith.constant 0 : index
    %4 = vector.load %arg2[%c0_2, %c0_3] : memref<256x256xf32, #tpu.memory_space<vmem>>, vector<256x256xf32>
    %c0_4 = arith.constant 0 : index
    %c0_5 = arith.constant 0 : index
    %5 = vector.load %arg3[%c0_4, %c0_5] : memref<256x128xf32, #tpu.memory_space<vmem>>, vector<256x128xf32>
    %cst = arith.constant dense<0.000000e+00> : vector<256x128xf32>
    %6 = tpu.matmul %4, %5, %cst {dimension_numbers = #tpu.dot_dimension_numbers<[1], [0], [0], [1], [0, 0, 1, 1], [], []>} : vector<256x256xf32>, vector<256x128xf32>, vector<256x128xf32> -> vector<256x128xf32>
    %7 = arith.addf %3, %6 : vector<256x128xf32>
    %c0_6 = arith.constant 0 : index
    %c0_7 = arith.constant 0 : index
    %8 = vector.load %arg7[%c0_6, %c0_7] : memref<256x128xf32, #tpu.memory_space<vmem>>, vector<256x128xf32>
    tpu.vector_store %arg7[%c0_6, %c0_7], %7 {strides = array<i32>} : memref<256x128xf32, #tpu.memory_space<vmem>>, vector<256x128xf32>,
    %c0_i32_8 = arith.constant 0 : i32
    %9 = arith.cmpi eq, %arg1, %c0_i32_8 : i32
    %10 = arith.extui %9 : i1 to i32
    %c0_i32_9 = arith.constant 0 : i32
    %11 = arith.cmpi ne, %10, %c0_i32_9 : i32
    scf.if %11 {
      %c0_10 = arith.constant 0 : index
      %c0_11 = arith.constant 0 : index
      %12 = vector.load %arg7[%c0_10, %c0_11] : memref<256x128xf32, #tpu.memory_space<vmem>>, vector<256x128xf32>
      %c0_12 = arith.constant 0 : index
      %c0_13 = arith.constant 0 : index
      %13 = vector.load %arg4[%c0_12, %c0_13] : memref<1x128xf32, #tpu.memory_space<vmem>>, vector<1x128xf32>
      %14 = vector.broadcast %13 : vector<1x128xf32> to vector<256x128xf32>
      %15 = arith.addf %12, %14 : vector<256x128xf32>
      %cst_14 = arith.constant 0.000000e+00 : f32
      %16 = vector.broadcast %cst_14 : f32 to vector<256x128xf32>
      %17 = arith.maximumf %15, %16 : vector<256x128xf32>
      %c0_15 = arith.constant 0 : index
      %c0_16 = arith.constant 0 : index
      %18 = vector.load %arg5[%c0_15, %c0_16] : memref<128x128xf32, #tpu.memory_space<vmem>>, vector<128x128xf32>
      %cst_17 = arith.constant dense<0.000000e+00> : vector<256x128xf32>
      %19 = tpu.matmul %17, %18, %cst_17 {dimension_numbers = #tpu.dot_dimension_numbers<[1], [0], [0], [1], [0, 0, 1, 1], [], []>} : vector<256x128xf32>, vector<128x128xf32>, vector<256x128xf32> -> vector<256x128xf32>
      %c0_18 = arith.constant 0 : index
      %c0_19 = arith.constant 0 : index
      %20 = vector.load %arg6[%c0_18, %c0_19] : memref<256x128xf32, #tpu.memory_space<vmem>>, vector<256x128xf32>
      tpu.vector_store %arg6[%c0_18, %c0_19], %19 {strides = array<i32>} : memref<256x128xf32, #tpu.memory_space<vmem>>, vector<256x128xf32>,
    } else {
    }
    return
  }
  func.func @transform_0(%arg0: i32, %arg1: i32) -> (i32, i32) {
    %c0_i32 = arith.constant 0 : i32
    return %arg0, %arg1 : i32, i32
  }
  func.func @transform_1(%arg0: i32, %arg1: i32) -> (i32, i32) {
    %c0_i32 = arith.constant 0 : i32
    %c0_i32_0 = arith.constant 0 : i32
    return %arg1, %c0_i32 : i32, i32
  }
  func.func @transform_2(%arg0: i32, %arg1: i32) -> (i32, i32) {
    %c0_i32 = arith.constant 0 : i32
    %c0_i32_0 = arith.constant 0 : i32
    %c0_i32_1 = arith.constant 0 : i32
    return %c0_i32, %c0_i32_0 : i32, i32
  }
  func.func @transform_3(%arg0: i32, %arg1: i32) -> (i32, i32) {
    %c0_i32 = arith.constant 0 : i32
    %c0_i32_0 = arith.constant 0 : i32
    %c0_i32_1 = arith.constant 0 : i32
    return %c0_i32, %c0_i32_0 : i32, i32
  }
  func.func @transform_4(%arg0: i32, %arg1: i32) -> (i32, i32) {
    %c0_i32 = arith.constant 0 : i32
    %c0_i32_0 = arith.constant 0 : i32
    return %arg0, %c0_i32 : i32, i32
  }
}

module attributes {stable_mosaic.version = 11 : i64} {
  func.func @_gcn_layer_kernel(%arg0: i32, %arg1: i32, %arg2: memref<256x256xf32, #tpu.memory_space<vmem>>, %arg3: memref<256x128xf32, #tpu.memory_space<vmem>>, %arg4: memref<1x128xf32, #tpu.memory_space<vmem>>, %arg5: memref<128x128xf32, #tpu.memory_space<vmem>>, %arg6: memref<256x128xf32, #tpu.memory_space<vmem>>, %arg7: memref<256x128xf32, #tpu.memory_space<vmem>>, %arg8: memref<256x128xf32, #tpu.memory_space<vmem>>) attributes {dimension_semantics = [#tpu.dimension_semantics<parallel>, #tpu.dimension_semantics<arbitrary>], iteration_bounds = array<i64: 1, 1>, scalar_prefetch = 0 : i64, scratch_operands = 1 : i64, tpu.core_type = #tpu.core_type<tc>, window_params = [{transform_indices = @transform_0, window_bounds = array<i64: 256, 256>}, {transform_indices = @transform_1, window_bounds = array<i64: 256, 128>}, {pipeline_mode = #tpu.pipeline_mode<synchronous>, transform_indices = @transform_2, window_bounds = array<i64: 1, 128>}, {pipeline_mode = #tpu.pipeline_mode<synchronous>, transform_indices = @transform_3, window_bounds = array<i64: 128, 128>}, {transform_indices = @transform_4, window_bounds = array<i64: 256, 128>}, {transform_indices = @transform_5, window_bounds = array<i64: 256, 128>}]} {
    %c0_i32 = arith.constant 0 : i32
    %0 = arith.cmpi eq, %arg1, %c0_i32 : i32
    %1 = arith.extui %0 : i1 to i32
    %c0_i32_0 = arith.constant 0 : i32
    %2 = arith.cmpi ne, %1, %c0_i32_0 : i32
    scf.if %2 {
      %cst_10 = arith.constant 0.000000e+00 : f32
      %12 = vector.broadcast %cst_10 : f32 to vector<256x128xf32>
      %c0_11 = arith.constant 0 : index
      %c0_12 = arith.constant 0 : index
      %13 = vector.load %arg8[%c0_11, %c0_12] : memref<256x128xf32, #tpu.memory_space<vmem>>, vector<256x128xf32>
      tpu.vector_store %arg8[%c0_11, %c0_12], %12 {strides = array<i32>} : memref<256x128xf32, #tpu.memory_space<vmem>>, vector<256x128xf32>,
    } else {
    }
    %c0 = arith.constant 0 : index
    %c0_1 = arith.constant 0 : index
    %3 = vector.load %arg8[%c0, %c0_1] : memref<256x128xf32, #tpu.memory_space<vmem>>, vector<256x128xf32>
    %c0_2 = arith.constant 0 : index
    %c0_3 = arith.constant 0 : index
    %4 = vector.load %arg2[%c0_2, %c0_3] : memref<256x256xf32, #tpu.memory_space<vmem>>, vector<256x256xf32>
    %c0_4 = arith.constant 0 : index
    %c0_5 = arith.constant 0 : index
    %5 = vector.load %arg3[%c0_4, %c0_5] : memref<256x128xf32, #tpu.memory_space<vmem>>, vector<256x128xf32>
    %cst = arith.constant dense<0.000000e+00> : vector<256x128xf32>
    %6 = tpu.matmul %4, %5, %cst {dimension_numbers = #tpu.dot_dimension_numbers<[1], [0], [0], [1], [0, 0, 1, 1], [], []>} : vector<256x256xf32>, vector<256x128xf32>, vector<256x128xf32> -> vector<256x128xf32>
    %7 = arith.addf %3, %6 : vector<256x128xf32>
    %c0_6 = arith.constant 0 : index
    %c0_7 = arith.constant 0 : index
    %8 = vector.load %arg8[%c0_6, %c0_7] : memref<256x128xf32, #tpu.memory_space<vmem>>, vector<256x128xf32>
    tpu.vector_store %arg8[%c0_6, %c0_7], %7 {strides = array<i32>} : memref<256x128xf32, #tpu.memory_space<vmem>>, vector<256x128xf32>,
    %c0_i32_8 = arith.constant 0 : i32
    %9 = arith.cmpi eq, %arg1, %c0_i32_8 : i32
    %10 = arith.extui %9 : i1 to i32
    %c0_i32_9 = arith.constant 0 : i32
    %11 = arith.cmpi ne, %10, %c0_i32_9 : i32
    scf.if %11 {
      %c0_10 = arith.constant 0 : index
      %c0_11 = arith.constant 0 : index
      %12 = vector.load %arg8[%c0_10, %c0_11] : memref<256x128xf32, #tpu.memory_space<vmem>>, vector<256x128xf32>
      %c0_12 = arith.constant 0 : index
      %c0_13 = arith.constant 0 : index
      %13 = vector.load %arg4[%c0_12, %c0_13] : memref<1x128xf32, #tpu.memory_space<vmem>>, vector<1x128xf32>
      %14 = vector.broadcast %13 : vector<1x128xf32> to vector<256x128xf32>
      %15 = arith.addf %12, %14 : vector<256x128xf32>
      %cst_14 = arith.constant 0.000000e+00 : f32
      %16 = vector.broadcast %cst_14 : f32 to vector<256x128xf32>
      %17 = arith.maximumf %15, %16 : vector<256x128xf32>
      %c0_15 = arith.constant 0 : index
      %c0_16 = arith.constant 0 : index
      %18 = vector.load %arg6[%c0_15, %c0_16] : memref<256x128xf32, #tpu.memory_space<vmem>>, vector<256x128xf32>
      tpu.vector_store %arg6[%c0_15, %c0_16], %17 {strides = array<i32>} : memref<256x128xf32, #tpu.memory_space<vmem>>, vector<256x128xf32>,
      %c0_17 = arith.constant 0 : index
      %c0_18 = arith.constant 0 : index
      %19 = vector.load %arg5[%c0_17, %c0_18] : memref<128x128xf32, #tpu.memory_space<vmem>>, vector<128x128xf32>
      %cst_19 = arith.constant dense<0.000000e+00> : vector<256x128xf32>
      %20 = tpu.matmul %17, %19, %cst_19 {dimension_numbers = #tpu.dot_dimension_numbers<[1], [0], [0], [1], [0, 0, 1, 1], [], []>} : vector<256x128xf32>, vector<128x128xf32>, vector<256x128xf32> -> vector<256x128xf32>
      %c0_20 = arith.constant 0 : index
      %c0_21 = arith.constant 0 : index
      %21 = vector.load %arg7[%c0_20, %c0_21] : memref<256x128xf32, #tpu.memory_space<vmem>>, vector<256x128xf32>
      tpu.vector_store %arg7[%c0_20, %c0_21], %20 {strides = array<i32>} : memref<256x128xf32, #tpu.memory_space<vmem>>, vector<256x128xf32>,
    } else {
    }
    return
  }
  func.func @transform_0(%arg0: i32, %arg1: i32) -> (i32, i32) {
    %c0_i32 = arith.constant 0 : i32
    return %arg0, %arg1 : i32, i32
  }
  func.func @transform_1(%arg0: i32, %arg1: i32) -> (i32, i32) {
    %c0_i32 = arith.constant 0 : i32
    %c0_i32_0 = arith.constant 0 : i32
    return %arg1, %c0_i32 : i32, i32
  }
  func.func @transform_2(%arg0: i32, %arg1: i32) -> (i32, i32) {
    %c0_i32 = arith.constant 0 : i32
    %c0_i32_0 = arith.constant 0 : i32
    %c0_i32_1 = arith.constant 0 : i32
    return %c0_i32, %c0_i32_0 : i32, i32
  }
  func.func @transform_3(%arg0: i32, %arg1: i32) -> (i32, i32) {
    %c0_i32 = arith.constant 0 : i32
    %c0_i32_0 = arith.constant 0 : i32
    %c0_i32_1 = arith.constant 0 : i32
    return %c0_i32, %c0_i32_0 : i32, i32
  }
  func.func @transform_4(%arg0: i32, %arg1: i32) -> (i32, i32) {
    %c0_i32 = arith.constant 0 : i32
    %c0_i32_0 = arith.constant 0 : i32
    return %arg0, %c0_i32 : i32, i32
  }
  func.func @transform_5(%arg0: i32, %arg1: i32) -> (i32, i32) {
    %c0_i32 = arith.constant 0 : i32
    %c0_i32_0 = arith.constant 0 : i32
    return %arg0, %c0_i32 : i32, i32
  }
}

module attributes {stable_mosaic.version = 11 : i64} {
  func.func @_gcn_layer_kernel(%arg0: i32, %arg1: i32, %arg2: memref<256x256xf32, #tpu.memory_space<vmem>>, %arg3: memref<256x128xf32, #tpu.memory_space<vmem>>, %arg4: memref<1x128xf32, #tpu.memory_space<vmem>>, %arg5: memref<256x128xf32, #tpu.memory_space<vmem>>, %arg6: memref<128x128xf32, #tpu.memory_space<vmem>>, %arg7: memref<256x128xf32, #tpu.memory_space<vmem>>, %arg8: memref<256x128xf32, #tpu.memory_space<vmem>>) attributes {dimension_semantics = [#tpu.dimension_semantics<parallel>, #tpu.dimension_semantics<arbitrary>], iteration_bounds = array<i64: 1, 1>, scalar_prefetch = 0 : i64, scratch_operands = 1 : i64, tpu.core_type = #tpu.core_type<tc>, window_params = [{transform_indices = @transform_0, window_bounds = array<i64: 256, 256>}, {transform_indices = @transform_1, window_bounds = array<i64: 256, 128>}, {pipeline_mode = #tpu.pipeline_mode<synchronous>, transform_indices = @transform_2, window_bounds = array<i64: 1, 128>}, {transform_indices = @transform_3, window_bounds = array<i64: 256, 128>}, {pipeline_mode = #tpu.pipeline_mode<synchronous>, transform_indices = @transform_4, window_bounds = array<i64: 128, 128>}, {transform_indices = @transform_5, window_bounds = array<i64: 256, 128>}]} {
    %c0_i32 = arith.constant 0 : i32
    %0 = arith.cmpi eq, %arg1, %c0_i32 : i32
    %1 = arith.extui %0 : i1 to i32
    %c0_i32_0 = arith.constant 0 : i32
    %2 = arith.cmpi ne, %1, %c0_i32_0 : i32
    scf.if %2 {
      %cst_10 = arith.constant 0.000000e+00 : f32
      %12 = vector.broadcast %cst_10 : f32 to vector<256x128xf32>
      %c0_11 = arith.constant 0 : index
      %c0_12 = arith.constant 0 : index
      %13 = vector.load %arg8[%c0_11, %c0_12] : memref<256x128xf32, #tpu.memory_space<vmem>>, vector<256x128xf32>
      tpu.vector_store %arg8[%c0_11, %c0_12], %12 {strides = array<i32>} : memref<256x128xf32, #tpu.memory_space<vmem>>, vector<256x128xf32>,
    } else {
    }
    %c0 = arith.constant 0 : index
    %c0_1 = arith.constant 0 : index
    %3 = vector.load %arg8[%c0, %c0_1] : memref<256x128xf32, #tpu.memory_space<vmem>>, vector<256x128xf32>
    %c0_2 = arith.constant 0 : index
    %c0_3 = arith.constant 0 : index
    %4 = vector.load %arg2[%c0_2, %c0_3] : memref<256x256xf32, #tpu.memory_space<vmem>>, vector<256x256xf32>
    %c0_4 = arith.constant 0 : index
    %c0_5 = arith.constant 0 : index
    %5 = vector.load %arg3[%c0_4, %c0_5] : memref<256x128xf32, #tpu.memory_space<vmem>>, vector<256x128xf32>
    %cst = arith.constant dense<0.000000e+00> : vector<256x128xf32>
    %6 = tpu.matmul %4, %5, %cst {dimension_numbers = #tpu.dot_dimension_numbers<[1], [0], [0], [1], [0, 0, 1, 1], [], []>} : vector<256x256xf32>, vector<256x128xf32>, vector<256x128xf32> -> vector<256x128xf32>
    %7 = arith.addf %3, %6 : vector<256x128xf32>
    %c0_6 = arith.constant 0 : index
    %c0_7 = arith.constant 0 : index
    %8 = vector.load %arg8[%c0_6, %c0_7] : memref<256x128xf32, #tpu.memory_space<vmem>>, vector<256x128xf32>
    tpu.vector_store %arg8[%c0_6, %c0_7], %7 {strides = array<i32>} : memref<256x128xf32, #tpu.memory_space<vmem>>, vector<256x128xf32>,
    %c0_i32_8 = arith.constant 0 : i32
    %9 = arith.cmpi eq, %arg1, %c0_i32_8 : i32
    %10 = arith.extui %9 : i1 to i32
    %c0_i32_9 = arith.constant 0 : i32
    %11 = arith.cmpi ne, %10, %c0_i32_9 : i32
    scf.if %11 {
      %c0_10 = arith.constant 0 : index
      %c0_11 = arith.constant 0 : index
      %12 = vector.load %arg8[%c0_10, %c0_11] : memref<256x128xf32, #tpu.memory_space<vmem>>, vector<256x128xf32>
      %c0_12 = arith.constant 0 : index
      %c0_13 = arith.constant 0 : index
      %13 = vector.load %arg4[%c0_12, %c0_13] : memref<1x128xf32, #tpu.memory_space<vmem>>, vector<1x128xf32>
      %14 = vector.broadcast %13 : vector<1x128xf32> to vector<256x128xf32>
      %15 = arith.addf %12, %14 : vector<256x128xf32>
      %cst_14 = arith.constant 0.000000e+00 : f32
      %16 = vector.broadcast %cst_14 : f32 to vector<256x128xf32>
      %17 = arith.maximumf %15, %16 : vector<256x128xf32>
      %c0_15 = arith.constant 0 : index
      %c0_16 = arith.constant 0 : index
      %18 = vector.load %arg5[%c0_15, %c0_16] : memref<256x128xf32, #tpu.memory_space<vmem>>, vector<256x128xf32>
      %19 = arith.addf %17, %18 : vector<256x128xf32>
      %c0_17 = arith.constant 0 : index
      %c0_18 = arith.constant 0 : index
      %20 = vector.load %arg6[%c0_17, %c0_18] : memref<128x128xf32, #tpu.memory_space<vmem>>, vector<128x128xf32>
      %cst_19 = arith.constant dense<0.000000e+00> : vector<256x128xf32>
      %21 = tpu.matmul %19, %20, %cst_19 {dimension_numbers = #tpu.dot_dimension_numbers<[1], [0], [0], [1], [0, 0, 1, 1], [], []>} : vector<256x128xf32>, vector<128x128xf32>, vector<256x128xf32> -> vector<256x128xf32>
      %c0_20 = arith.constant 0 : index
      %c0_21 = arith.constant 0 : index
      %22 = vector.load %arg7[%c0_20, %c0_21] : memref<256x128xf32, #tpu.memory_space<vmem>>, vector<256x128xf32>
      tpu.vector_store %arg7[%c0_20, %c0_21], %21 {strides = array<i32>} : memref<256x128xf32, #tpu.memory_space<vmem>>, vector<256x128xf32>,
    } else {
    }
    return
  }
  func.func @transform_0(%arg0: i32, %arg1: i32) -> (i32, i32) {
    %c0_i32 = arith.constant 0 : i32
    return %arg0, %arg1 : i32, i32
  }
  func.func @transform_1(%arg0: i32, %arg1: i32) -> (i32, i32) {
    %c0_i32 = arith.constant 0 : i32
    %c0_i32_0 = arith.constant 0 : i32
    return %arg1, %c0_i32 : i32, i32
  }
  func.func @transform_2(%arg0: i32, %arg1: i32) -> (i32, i32) {
    %c0_i32 = arith.constant 0 : i32
    %c0_i32_0 = arith.constant 0 : i32
    %c0_i32_1 = arith.constant 0 : i32
    return %c0_i32, %c0_i32_0 : i32, i32
  }
  func.func @transform_3(%arg0: i32, %arg1: i32) -> (i32, i32) {
    %c0_i32 = arith.constant 0 : i32
    %c0_i32_0 = arith.constant 0 : i32
    return %arg0, %c0_i32 : i32, i32
  }
  func.func @transform_4(%arg0: i32, %arg1: i32) -> (i32, i32) {
    %c0_i32 = arith.constant 0 : i32
    %c0_i32_0 = arith.constant 0 : i32
    %c0_i32_1 = arith.constant 0 : i32
    return %c0_i32, %c0_i32_0 : i32, i32
  }
  func.func @transform_5(%arg0: i32, %arg1: i32) -> (i32, i32) {
    %c0_i32 = arith.constant 0 : i32
    %c0_i32_0 = arith.constant 0 : i32
    return %arg0, %c0_i32 : i32, i32
  }
}

module attributes {stable_mosaic.version = 11 : i64} {
  func.func @_gcn_layer_kernel(%arg0: i32, %arg1: i32, %arg2: memref<256x256xf32, #tpu.memory_space<vmem>>, %arg3: memref<256x128xf32, #tpu.memory_space<vmem>>, %arg4: memref<1x128xf32, #tpu.memory_space<vmem>>, %arg5: memref<256x128xf32, #tpu.memory_space<vmem>>, %arg6: memref<256x128xf32, #tpu.memory_space<vmem>>) attributes {dimension_semantics = [#tpu.dimension_semantics<parallel>, #tpu.dimension_semantics<arbitrary>], iteration_bounds = array<i64: 1, 1>, scalar_prefetch = 0 : i64, scratch_operands = 1 : i64, tpu.core_type = #tpu.core_type<tc>, window_params = [{transform_indices = @transform_0, window_bounds = array<i64: 256, 256>}, {transform_indices = @transform_1, window_bounds = array<i64: 256, 128>}, {pipeline_mode = #tpu.pipeline_mode<synchronous>, transform_indices = @transform_2, window_bounds = array<i64: 1, 128>}, {transform_indices = @transform_3, window_bounds = array<i64: 256, 128>}]} {
    %c0_i32 = arith.constant 0 : i32
    %0 = arith.cmpi eq, %arg1, %c0_i32 : i32
    %1 = arith.extui %0 : i1 to i32
    %c0_i32_0 = arith.constant 0 : i32
    %2 = arith.cmpi ne, %1, %c0_i32_0 : i32
    scf.if %2 {
      %cst_10 = arith.constant 0.000000e+00 : f32
      %12 = vector.broadcast %cst_10 : f32 to vector<256x128xf32>
      %c0_11 = arith.constant 0 : index
      %c0_12 = arith.constant 0 : index
      %13 = vector.load %arg6[%c0_11, %c0_12] : memref<256x128xf32, #tpu.memory_space<vmem>>, vector<256x128xf32>
      tpu.vector_store %arg6[%c0_11, %c0_12], %12 {strides = array<i32>} : memref<256x128xf32, #tpu.memory_space<vmem>>, vector<256x128xf32>,
    } else {
    }
    %c0 = arith.constant 0 : index
    %c0_1 = arith.constant 0 : index
    %3 = vector.load %arg6[%c0, %c0_1] : memref<256x128xf32, #tpu.memory_space<vmem>>, vector<256x128xf32>
    %c0_2 = arith.constant 0 : index
    %c0_3 = arith.constant 0 : index
    %4 = vector.load %arg2[%c0_2, %c0_3] : memref<256x256xf32, #tpu.memory_space<vmem>>, vector<256x256xf32>
    %c0_4 = arith.constant 0 : index
    %c0_5 = arith.constant 0 : index
    %5 = vector.load %arg3[%c0_4, %c0_5] : memref<256x128xf32, #tpu.memory_space<vmem>>, vector<256x128xf32>
    %cst = arith.constant dense<0.000000e+00> : vector<256x128xf32>
    %6 = tpu.matmul %4, %5, %cst {dimension_numbers = #tpu.dot_dimension_numbers<[1], [0], [0], [1], [0, 0, 1, 1], [], []>} : vector<256x256xf32>, vector<256x128xf32>, vector<256x128xf32> -> vector<256x128xf32>
    %7 = arith.addf %3, %6 : vector<256x128xf32>
    %c0_6 = arith.constant 0 : index
    %c0_7 = arith.constant 0 : index
    %8 = vector.load %arg6[%c0_6, %c0_7] : memref<256x128xf32, #tpu.memory_space<vmem>>, vector<256x128xf32>
    tpu.vector_store %arg6[%c0_6, %c0_7], %7 {strides = array<i32>} : memref<256x128xf32, #tpu.memory_space<vmem>>, vector<256x128xf32>,
    %c0_i32_8 = arith.constant 0 : i32
    %9 = arith.cmpi eq, %arg1, %c0_i32_8 : i32
    %10 = arith.extui %9 : i1 to i32
    %c0_i32_9 = arith.constant 0 : i32
    %11 = arith.cmpi ne, %10, %c0_i32_9 : i32
    scf.if %11 {
      %c0_10 = arith.constant 0 : index
      %c0_11 = arith.constant 0 : index
      %12 = vector.load %arg6[%c0_10, %c0_11] : memref<256x128xf32, #tpu.memory_space<vmem>>, vector<256x128xf32>
      %c0_12 = arith.constant 0 : index
      %c0_13 = arith.constant 0 : index
      %13 = vector.load %arg4[%c0_12, %c0_13] : memref<1x128xf32, #tpu.memory_space<vmem>>, vector<1x128xf32>
      %14 = vector.broadcast %13 : vector<1x128xf32> to vector<256x128xf32>
      %15 = arith.addf %12, %14 : vector<256x128xf32>
      %16 = tpu.iota {dimensions = array<i32: 1>} : vector<256x128xi32>
      %c8_i32 = arith.constant 8 : i32
      %17 = vector.broadcast %c8_i32 : i32 to vector<256x128xi32>
      %18 = arith.cmpi slt, %16, %17 : vector<256x128xi32>
      %cst_14 = arith.constant -1.000000e+30 : f32
      %19 = vector.broadcast %cst_14 : f32 to vector<256x128xf32>
      %20 = arith.select %18, %15, %19 : vector<256x128xi1>, vector<256x128xf32>
      %cst_15 = arith.constant dense<0xFF800000> : vector<256xf32>
      %21 = vector.multi_reduction <maximumf>, %20, %cst_15 [1] : vector<256x128xf32> to vector<256xf32>
      %22 = vector.shape_cast %21 : vector<256xf32> to vector<256x1xf32>
      %23 = vector.broadcast %22 : vector<256x1xf32> to vector<256x128xf32>
      %24 = arith.subf %20, %23 : vector<256x128xf32>
      %25 = math.exp %24 : vector<256x128xf32>
      %cst_16 = arith.constant dense<0.000000e+00> : vector<256xf32>
      %26 = vector.multi_reduction <add>, %25, %cst_16 [1] : vector<256x128xf32> to vector<256xf32>
      %27 = vector.shape_cast %26 : vector<256xf32> to vector<256x1xf32>
      %28 = math.log %27 : vector<256x1xf32>
      %29 = vector.broadcast %28 : vector<256x1xf32> to vector<256x128xf32>
      %30 = arith.subf %24, %29 : vector<256x128xf32>
      %c0_17 = arith.constant 0 : index
      %c0_18 = arith.constant 0 : index
      %31 = vector.load %arg5[%c0_17, %c0_18] : memref<256x128xf32, #tpu.memory_space<vmem>>, vector<256x128xf32>
      tpu.vector_store %arg5[%c0_17, %c0_18], %30 {strides = array<i32>} : memref<256x128xf32, #tpu.memory_space<vmem>>, vector<256x128xf32>,
    } else {
    }
    return
  }
  func.func @transform_0(%arg0: i32, %arg1: i32) -> (i32, i32) {
    %c0_i32 = arith.constant 0 : i32
    return %arg0, %arg1 : i32, i32
  }
  func.func @transform_1(%arg0: i32, %arg1: i32) -> (i32, i32) {
    %c0_i32 = arith.constant 0 : i32
    %c0_i32_0 = arith.constant 0 : i32
    return %arg1, %c0_i32 : i32, i32
  }
  func.func @transform_2(%arg0: i32, %arg1: i32) -> (i32, i32) {
    %c0_i32 = arith.constant 0 : i32
    %c0_i32_0 = arith.constant 0 : i32
    %c0_i32_1 = arith.constant 0 : i32
    return %c0_i32, %c0_i32_0 : i32, i32
  }
  func.func @transform_3(%arg0: i32, %arg1: i32) -> (i32, i32) {
    %c0_i32 = arith.constant 0 : i32
    %c0_i32_0 = arith.constant 0 : i32
    return %arg0, %c0_i32 : i32, i32
  }
}

</mosaic_0001>

<bundles_post_ra>
// kernel: gcn_model_forward.5
= control target key start
LH: loop header
LB: loop body
LE: loop exit
PB: predicated region body
PF: predicated region fallthrough
CT: control target
= control target key end

     0   :  { %vm51_vm0 = vcmask 523264   ;;  %s616_s1 = inlined_call_operand.vmem [shape: f32[64,128], index: 1, kind: input, shape index: {}]   ;;  %s617_s0 = inlined_call_operand.vmem [shape: f32[256,64], index: 0, kind: input, shape index: {}]   ;;  %s618_s2 = inlined_call_operand.vmem [shape: f32[256,128], index: 2, kind: output, shape index: {}]  }
   0x1   :  { %v50_v0 = vld [vmem:[%s616_s1 + $0x38] sm:$0xff]  ;;  %v49_v1 = vld [vmem:[%s616_s1 + $0x30] sm:$0xff]  ;;  %v48_v2 = vld [vmem:[%s616_s1 + $0x28] sm:$0xff] }
   0x2   :  { %330 = vmatpush.msra.mxu2 %v50_v0  ;;  %331 = vmatpush.msra.mxu3 %v50_v0  ;;  %v47_v3 = vld [vmem:[%s616_s1 + $0x20] sm:$0xff]  ;;  %v46_v4 = vld [vmem:[%s616_s1 + $0x18] sm:$0xff]  ;;  %v45_v5 = vld [vmem:[%s616_s1 + $0x10] sm:$0xff] }
   0x3   :  { %156 = vmatpush.msra.mxu0 %v50_v0  ;;  %329 = vmatpush.msra.mxu1 %v50_v0  ;;  %v44_v6 = vld [vmem:[%s616_s1 + $0x8] sm:$0xff]  ;;  %v43_v7 = vld [vmem:[%s616_s1] sm:$0xff]  ;;  %v29_v16 = vld [vmem:[%s617_s0 + $0x90] sm:$0xff] }
   0x4   :  { %333 = vmatpush.msra.mxu2 %v49_v1  ;;  %334 = vmatpush.msra.mxu3 %v49_v1  ;;  %v27_v8 = vld [vmem:[%s617_s0 + $0x80] sm:$0xff]  ;;  %v28_v12 = vld [vmem:[%s617_s0 + $0x88] sm:$0xff]  ;;  %v37_v17 = vld [vmem:[%s617_s0 + $0xd0] sm:$0xff] }
   0x5   :  { %157 = vmatpush.msra.mxu0 %v49_v1  ;;  %332 = vmatpush.msra.mxu1 %v49_v1  ;;  %v35_v9 = vld [vmem:[%s617_s0 + $0xc0] sm:$0xff]  ;;  %v36_v13 = vld [vmem:[%s617_s0 + $0xc8] sm:$0xff]  ;;  %v13_v18 = vld [vmem:[%s617_s0 + $0x10] sm:$0xff] }
   0x6   :  { %336 = vmatpush.msra.mxu2 %v48_v2  ;;  %337 = vmatpush.msra.mxu3 %v48_v2  ;;  %v11_v10 = vld [vmem:[%s617_s0] sm:$0xff]  ;;  %v12_v14 = vld [vmem:[%s617_s0 + $0x8] sm:$0xff]  ;;  %v21_v19 = vld [vmem:[%s617_s0 + $0x50] sm:$0xff] }
   0x7   :  { %158 = vmatpush.msra.mxu0 %v48_v2  ;;  %335 = vmatpush.msra.mxu1 %v48_v2  ;;  %v19_v11 = vld [vmem:[%s617_s0 + $0x40] sm:$0xff]  ;;  %v20_v15 = vld [vmem:[%s617_s0 + $0x48] sm:$0xff]  ;;  %v30_v20 = vld [vmem:[%s617_s0 + $0x98] sm:$0xff] }
   0x8   :  { %339 = vmatpush.msra.mxu2 %v47_v3  ;;  %340 = vmatpush.msra.mxu3 %v47_v3  ;;  %v38_v21 = vld [vmem:[%s617_s0 + $0xd8] sm:$0xff]  ;;  %v31_v24 = vld [vmem:[%s617_s0 + $0xa0] sm:$0xff]  ;;  %v32_v28 = vld [vmem:[%s617_s0 + $0xa8] sm:$0xff] }
   0x9   :  { %159 = vmatpush.msra.mxu0 %v47_v3  ;;  %338 = vmatpush.msra.mxu1 %v47_v3  ;;  %v14_v22 = vld [vmem:[%s617_s0 + $0x18] sm:$0xff]  ;;  %v39_v25 = vld [vmem:[%s617_s0 + $0xe0] sm:$0xff]  ;;  %v40_v29 = vld [vmem:[%s617_s0 + $0xe8] sm:$0xff] }
   0xa   :  { %342 = vmatpush.msra.mxu2 %v46_v4  ;;  %343 = vmatpush.msra.mxu3 %v46_v4  ;;  %v22_v23 = vld [vmem:[%s617_s0 + $0x58] sm:$0xff]  ;;  %v15_v26 = vld [vmem:[%s617_s0 + $0x20] sm:$0xff]  ;;  %v16_v30 = vld [vmem:[%s617_s0 + $0x28] sm:$0xff] }
   0xb   :  { %160 = vmatpush.msra.mxu0 %v46_v4  ;;  %341 = vmatpush.msra.mxu1 %v46_v4  ;;  %v23_v27 = vld [vmem:[%s617_s0 + $0x60] sm:$0xff]  ;;  %v24_v31 = vld [vmem:[%s617_s0 + $0x68] sm:$0xff]  ;;  %v33_v32 = vld [vmem:[%s617_s0 + $0xb0] sm:$0xff] }
   0xc   :  { %345 = vmatpush.msra.mxu2 %v45_v5  ;;  %346 = vmatpush.msra.mxu3 %v45_v5  ;;  %v41_v33 = vld [vmem:[%s617_s0 + $0xf0] sm:$0xff]  ;;  %v34_v36 = vld [vmem:[%s617_s0 + $0xb8] sm:$0xff] }
   0xd   :  { %161 = vmatpush.msra.mxu0 %v45_v5  ;;  %344 = vmatpush.msra.mxu1 %v45_v5  ;;  %v17_v34 = vld [vmem:[%s617_s0 + $0x30] sm:$0xff]  ;;  %v42_v37 = vld [vmem:[%s617_s0 + $0xf8] sm:$0xff] }
   0xe   :  { %348 = vmatpush.msra.mxu2 %v44_v6  ;;  %349 = vmatpush.msra.mxu3 %v44_v6  ;;  %v25_v35 = vld [vmem:[%s617_s0 + $0x70] sm:$0xff]  ;;  %v18_v38 = vld [vmem:[%s617_s0 + $0x38] sm:$0xff] }
   0xf   :  { %162 = vmatpush.msra.mxu0 %v44_v6  ;;  %347 = vmatpush.msra.mxu1 %v44_v6  ;;  %v26_v39 = vld [vmem:[%s617_s0 + $0x78] sm:$0xff] }
  0x10   :  { %351 = vmatpush.msra.mxu2 %v43_v7  ;;  %352 = vmatpush.msra.mxu3 %v43_v7 }
  0x11   :  { %313 = vmatmul.msk.f32.vlgmr.msra.gmra.mxu2 %vm51_vm0, %v27_v8  ;;  %321 = vmatmul.msk.f32.vlgmr.msra.gmra.mxu3 %vm51_vm0, %v35_v9 }
  0x12   :  { %163 = vmatpush.msra.mxu0 %v43_v7  ;;  %350 = vmatpush.msra.mxu1 %v43_v7 }
  0x13   :  { %297 = vmatmul.msk.f32.vlgmr.msra.gmra.mxu0 %vm51_vm0, %v11_v10  ;;  %305 = vmatmul.msk.f32.vlgmr.msra.gmra.mxu1 %vm51_vm0, %v19_v11 }
  0x19   :  { %314 = vmatmul.msk.f32.gmra.mxu2 %vm51_vm0, %v28_v12  ;;  %322 = vmatmul.msk.f32.gmra.mxu3 %vm51_vm0, %v36_v13 }
  0x1b   :  { %298 = vmatmul.msk.f32.gmra.mxu0 %vm51_vm0, %v12_v14  ;;  %306 = vmatmul.msk.f32.gmra.mxu1 %vm51_vm0, %v20_v15 }
  0x21   :  { %315 = vmatmul.msk.f32.gmra.mxu2 %vm51_vm0, %v29_v16  ;;  %323 = vmatmul.msk.f32.gmra.mxu3 %vm51_vm0, %v37_v17 }
  0x23   :  { %299 = vmatmul.msk.f32.gmra.mxu0 %vm51_vm0, %v13_v18  ;;  %307 = vmatmul.msk.f32.gmra.mxu1 %vm51_vm0, %v21_v19 }
  0x29   :  { %316 = vmatmul.msk.f32.gmra.mxu2 %vm51_vm0, %v30_v20  ;;  %324 = vmatmul.msk.f32.gmra.mxu3 %vm51_vm0, %v38_v21 }
  0x2b   :  { %300 = vmatmul.msk.f32.gmra.mxu0 %vm51_vm0, %v14_v22  ;;  %308 = vmatmul.msk.f32.gmra.mxu1 %vm51_vm0, %v22_v23 }
  0x31   :  { %317 = vmatmul.msk.f32.gmra.mxu2 %vm51_vm0, %v31_v24  ;;  %325 = vmatmul.msk.f32.gmra.mxu3 %vm51_vm0, %v39_v25 }
  0x33   :  { %301 = vmatmul.msk.f32.gmra.mxu0 %vm51_vm0, %v15_v26  ;;  %309 = vmatmul.msk.f32.gmra.mxu1 %vm51_vm0, %v23_v27 }
  0x39   :  { %318 = vmatmul.msk.f32.gmra.mxu2 %vm51_vm0, %v32_v28  ;;  %326 = vmatmul.msk.f32.gmra.mxu3 %vm51_vm0, %v40_v29 }
  0x3b   :  { %302 = vmatmul.msk.f32.gmra.mxu0 %vm51_vm0, %v16_v30  ;;  %310 = vmatmul.msk.f32.gmra.mxu1 %vm51_vm0, %v24_v31 }
  0x41   :  { %319 = vmatmul.msk.f32.gmra.mxu2 %vm51_vm0, %v33_v32  ;;  %327 = vmatmul.msk.f32.gmra.mxu3 %vm51_vm0, %v41_v33 }
  0x43   :  { %303 = vmatmul.msk.f32.gmra.mxu0 %vm51_vm0, %v17_v34  ;;  %311 = vmatmul.msk.f32.gmra.mxu1 %vm51_vm0, %v25_v35 }
  0x49   :  { %320 = vmatmul.msk.f32.gmra.mxu2 %vm51_vm0, %v34_v36  ;;  %328 = vmatmul.msk.f32.gmra.mxu3 %vm51_vm0, %v42_v37 }
  0x4b   :  { %304 = vmatmul.msk.f32.gmra.mxu0 %vm51_vm0, %v18_v38  ;;  %312 = vmatmul.msk.f32.gmra.mxu1 %vm51_vm0, %v26_v39 }
  0x90   :  { %v165_v40 = vpop.f32.mrf.mxu0  ;;  %v189_v41 = vpop.f32.mrf.mxu1 }
  0x91   :  { %261 = vst [vmem:[%s618_s2] sm:$0xff] %v165_v40 }
  0x92   :  { %269 = vst [vmem:[%s618_s2 + $0x40] sm:$0xff] %v189_v41 }
  0x94   :  { %v213_v42 = vpop.f32.mrf.mxu2  ;;  %v237_v43 = vpop.f32.mrf.mxu3 }
  0x95   :  { %277 = vst [vmem:[%s618_s2 + $0x80] sm:$0xff] %v213_v42 }
  0x96   :  { %285 = vst [vmem:[%s618_s2 + $0xc0] sm:$0xff] %v237_v43 }
  0x98   :  { %v168_v44 = vpop.f32.mrf.mxu0  ;;  %v192_v45 = vpop.f32.mrf.mxu1 }
  0x99   :  { %262 = vst [vmem:[%s618_s2 + $0x8] sm:$0xff] %v168_v44 }
  0x9a   :  { %270 = vst [vmem:[%s618_s2 + $0x48] sm:$0xff] %v192_v45 }
  0x9c   :  { %v216_v46 = vpop.f32.mrf.mxu2  ;;  %v240_v47 = vpop.f32.mrf.mxu3 }
  0x9d   :  { %278 = vst [vmem:[%s618_s2 + $0x88] sm:$0xff] %v216_v46 }
  0x9e   :  { %286 = vst [vmem:[%s618_s2 + $0xc8] sm:$0xff] %v240_v47 }
  0xa0   :  { %v171_v48 = vpop.f32.mrf.mxu0  ;;  %v195_v49 = vpop.f32.mrf.mxu1 }
  0xa1   :  { %263 = vst [vmem:[%s618_s2 + $0x10] sm:$0xff] %v171_v48 }
  0xa2   :  { %271 = vst [vmem:[%s618_s2 + $0x50] sm:$0xff] %v195_v49 }
  0xa4   :  { %v219_v50 = vpop.f32.mrf.mxu2  ;;  %v243_v51 = vpop.f32.mrf.mxu3 }
  0xa5   :  { %279 = vst [vmem:[%s618_s2 + $0x90] sm:$0xff] %v219_v50 }
  0xa6   :  { %287 = vst [vmem:[%s618_s2 + $0xd0] sm:$0xff] %v243_v51 }
  0xa8   :  { %v174_v52 = vpop.f32.mrf.mxu0  ;;  %v198_v53 = vpop.f32.mrf.mxu1 }
  0xa9   :  { %264 = vst [vmem:[%s618_s2 + $0x18] sm:$0xff] %v174_v52 }
  0xaa   :  { %272 = vst [vmem:[%s618_s2 + $0x58] sm:$0xff] %v198_v53 }
  0xac   :  { %v222_v54 = vpop.f32.mrf.mxu2  ;;  %v246_v55 = vpop.f32.mrf.mxu3 }
  0xad   :  { %280 = vst [vmem:[%s618_s2 + $0x98] sm:$0xff] %v222_v54 }
  0xae   :  { %288 = vst [vmem:[%s618_s2 + $0xd8] sm:$0xff] %v246_v55 }
  0xb0   :  { %v177_v56 = vpop.f32.mrf.mxu0  ;;  %v201_v57 = vpop.f32.mrf.mxu1 }
  0xb1   :  { %265 = vst [vmem:[%s618_s2 + $0x20] sm:$0xff] %v177_v56 }
  0xb2   :  { %273 = vst [vmem:[%s618_s2 + $0x60] sm:$0xff] %v201_v57 }
  0xb4   :  { %v225_v58 = vpop.f32.mrf.mxu2  ;;  %v249_v59 = vpop.f32.mrf.mxu3 }
  0xb5   :  { %281 = vst [vmem:[%s618_s2 + $0xa0] sm:$0xff] %v225_v58 }
  0xb6   :  { %289 = vst [vmem:[%s618_s2 + $0xe0] sm:$0xff] %v249_v59 }
  0xb8   :  { %v180_v60 = vpop.f32.mrf.mxu0  ;;  %v204_v61 = vpop.f32.mrf.mxu1 }
  0xb9   :  { %266 = vst [vmem:[%s618_s2 + $0x28] sm:$0xff] %v180_v60 }
  0xba   :  { %274 = vst [vmem:[%s618_s2 + $0x68] sm:$0xff] %v204_v61 }
  0xbc   :  { %v228_v62 = vpop.f32.mrf.mxu2  ;;  %v252_v63 = vpop.f32.mrf.mxu3 }
  0xbd   :  { %282 = vst [vmem:[%s618_s2 + $0xa8] sm:$0xff] %v228_v62 }
  0xbe   :  { %290 = vst [vmem:[%s618_s2 + $0xe8] sm:$0xff] %v252_v63 }
  0xc0   :  { %v183_v0 = vpop.f32.mrf.mxu0  ;;  %v207_v1 = vpop.f32.mrf.mxu1 }
  0xc1   :  { %267 = vst [vmem:[%s618_s2 + $0x30] sm:$0xff] %v183_v0 }
  0xc2   :  { %275 = vst [vmem:[%s618_s2 + $0x70] sm:$0xff] %v207_v1 }
  0xc4   :  { %v231_v2 = vpop.f32.mrf.mxu2  ;;  %v255_v3 = vpop.f32.mrf.mxu3 }
  0xc5   :  { %283 = vst [vmem:[%s618_s2 + $0xb0] sm:$0xff] %v231_v2 }
  0xc6   :  { %291 = vst [vmem:[%s618_s2 + $0xf0] sm:$0xff] %v255_v3 }
  0xc8   :  { %v186_v4 = vpop.f32.mrf.mxu0  ;;  %v210_v5 = vpop.f32.mrf.mxu1 }
  0xc9   :  { %268 = vst [vmem:[%s618_s2 + $0x38] sm:$0xff] %v186_v4 }
  0xca   :  { %276 = vst [vmem:[%s618_s2 + $0x78] sm:$0xff] %v210_v5 }
  0xcc   :  { %v234_v6 = vpop.f32.mrf.mxu2  ;;  %v258_v7 = vpop.f32.mrf.mxu3 }
  0xcd   :  { %284 = vst [vmem:[%s618_s2 + $0xb8] sm:$0xff] %v234_v6 }
  0xce   :  { %292 = vst [vmem:[%s618_s2 + $0xf8] sm:$0xff] %v258_v7 }

// kernel: gcn_model_forward.7
= control target key start
LH: loop header
LB: loop body
LE: loop exit
PB: predicated region body
PF: predicated region fallthrough
CT: control target
= control target key end

     0   :  { %9 = vsyncpa [#allocation4], 0  ;;  %s1245_s0 = inlined_call_operand.hbm [shape: f32[256,256], index: 0, kind: input, shape index: {}]   ;;  %s1246_s1 = inlined_call_operand.vmem [shape: f32[256,128], index: 1, kind: input, shape index: {}]   ;;  %s1247_s2 = inlined_call_operand.hbm [shape: f32[1,128], index: 2, kind: input, shape index: {}]   ;;  %s1248_s3 = inlined_call_operand.hbm [shape: f32[128,128], index: 3, kind: input, shape index: {}]   ;;  %s1249_s4 = inlined_call_operand.vmem [shape: f32[256,128], index: 4, kind: output, shape index: {}]  }
   0x1   :  { %10 = vsyncpa [#allocation6], 0  ;;  %s31_s17 = sshll.u32 %s1247_s2, 4  ;;  %s918_s18 = smov [#allocation5]   ;;  %s32_s17 = int_to_ptr.hbm [resolvable:$true] %s31_s17 }
   0x2   :  { %s33_s19 = sshll.u32 %s918_s18, 4  ;;  %s15_s22 = sshll.u32 %s1245_s0, 4  ;;  %s34_s19 = int_to_ptr.vmem [resolvable:$true] %s33_s19  ;;  %s16_s22 = int_to_ptr.hbm [resolvable:$true] %s15_s22 }
   0x3   :  { %36 = dma.hbm_to_vmem [thread:$0]  %s32_s17, 16, %s34_s19, [#allocation6]  }
   0x4   :  { %s919_s23 = smov [#allocation3]   ;;  %s920_s25 = smov 256  }
   0x5   :  { %s17_s24 = sshll.u32 %s919_s23, 4  ;;  %s921_s26 = smov 16   ;;  %s18_s24 = int_to_ptr.vmem [resolvable:$true] %s17_s24 }
   0x6   :  { %23 = dma.hbm_to_vmem [thread:$0]  %s16_s22, 8192, %s18_s24, [#allocation4], %s920_s25, %s920_s25, %s921_s26  }
   0x7   :  { %s41_s2 = sshll.u32 %s1248_s3, 4  ;;  %s922_s29 = smov [#allocation7]   ;;  %s42_s2 = int_to_ptr.hbm [resolvable:$true] %s41_s2 }
   0x8   :  { %s43_s30 = sshll.u32 %s922_s29, 4  ;;  %s923_s5 = smov 128   ;;  %s44_s30 = int_to_ptr.vmem [resolvable:$true] %s43_s30 }
   0x9   :  { %s924_s6 = smov 8  }
   0xa   :  { %49 = dma.hbm_to_vmem [thread:$0]  %s42_s2, 2048, %s44_s30, [#allocation6], %s923_s5, %s923_s5, %s924_s6  }
   0xb   :  { %914 = dma.done.wait [#allocation4], 8192  }
   0xc   :  { %915 = vsyncadd [#allocation4], 4294959104 }
   0xd   :  { %916 = dma.done.wait [#allocation6], 2064  }
   0xe   :  { %917 = vsyncadd [#allocation6], 4294965232  ;;  %v209_v0 = vld [vmem:[%s1246_s1 + $0x78] sm:$0xff]  ;;  %v208_v2 = vld [vmem:[%s1246_s1 + $0x70] sm:$0xff] }
   0xf   :  { %v965_v1 = vld [vmem:[%s1246_s1 + $0xf8] sm:$0xff]  ;;  %226 = vmatpush.msra.mxu0 %v209_v0  ;;  %786 = vmatpush.msra.mxu3 %v209_v0  ;;  %v973_v3 = vld [vmem:[%s1246_s1 + $0xf0] sm:$0xff]  ;;  %v207_v4 = vld [vmem:[%s1246_s1 + $0x68] sm:$0xff] }
  0x10   :  { %339 = vmatpush.msra.mxu1 %v965_v1  ;;  %v982_v5 = vld [vmem:[%s1246_s1 + $0xe8] sm:$0xff]  ;;  %v206_v6 = vld [vmem:[%s1246_s1 + $0x60] sm:$0xff]  ;;  %v205_v8 = vld [vmem:[%s1246_s1 + $0x58] sm:$0xff] }
  0x11   :  { %227 = vmatpush.msra.mxu0 %v208_v2  ;;  %787 = vmatpush.msra.mxu3 %v208_v2  ;;  %v991_v7 = vld [vmem:[%s1246_s1 + $0xe0] sm:$0xff]  ;;  %v1000_v9 = vld [vmem:[%s1246_s1 + $0xd8] sm:$0xff]  ;;  %v204_v10 = vld [vmem:[%s1246_s1 + $0x50] sm:$0xff] }
  0x12   :  { %340 = vmatpush.msra.mxu1 %v973_v3  ;;  %v1009_v11 = vld [vmem:[%s1246_s1 + $0xd0] sm:$0xff]  ;;  %v203_v12 = vld [vmem:[%s1246_s1 + $0x48] sm:$0xff]  ;;  %v202_v14 = vld [vmem:[%s1246_s1 + $0x40] sm:$0xff] }
  0x13   :  { %228 = vmatpush.msra.mxu0 %v207_v4  ;;  %788 = vmatpush.msra.mxu3 %v207_v4  ;;  %v1018_v13 = vld [vmem:[%s1246_s1 + $0xc8] sm:$0xff]  ;;  %v1027_v15 = vld [vmem:[%s1246_s1 + $0xc0] sm:$0xff]  ;;  %v201_v16 = vld [vmem:[%s1246_s1 + $0x38] sm:$0xff] }
  0x14   :  { %341 = vmatpush.msra.mxu1 %v982_v5  ;;  %v1036_v17 = vld [vmem:[%s1246_s1 + $0xb8] sm:$0xff]  ;;  %v200_v18 = vld [vmem:[%s1246_s1 + $0x30] sm:$0xff]  ;;  %v199_v20 = vld [vmem:[%s1246_s1 + $0x28] sm:$0xff] }
  0x15   :  { %229 = vmatpush.msra.mxu0 %v206_v6  ;;  %789 = vmatpush.msra.mxu3 %v206_v6  ;;  %v216_v19 = vld [vmem:[%s1246_s1 + $0xb0] sm:$0xff]  ;;  %v215_v21 = vld [vmem:[%s1246_s1 + $0xa8] sm:$0xff]  ;;  %v198_v22 = vld [vmem:[%s1246_s1 + $0x20] sm:$0xff] }
  0x16   :  { %342 = vmatpush.msra.mxu1 %v991_v7  ;;  %v214_v23 = vld [vmem:[%s1246_s1 + $0xa0] sm:$0xff]  ;;  %v197_v24 = vld [vmem:[%s1246_s1 + $0x18] sm:$0xff]  ;;  %v196_v26 = vld [vmem:[%s1246_s1 + $0x10] sm:$0xff] }
  0x17   :  { %230 = vmatpush.msra.mxu0 %v205_v8  ;;  %790 = vmatpush.msra.mxu3 %v205_v8  ;;  %v213_v25 = vld [vmem:[%s1246_s1 + $0x98] sm:$0xff]  ;;  %v212_v27 = vld [vmem:[%s1246_s1 + $0x90] sm:$0xff]  ;;  %v195_v28 = vld [vmem:[%s1246_s1 + $0x8] sm:$0xff] }
  0x18   :  { %343 = vmatpush.msra.mxu1 %v1000_v9  ;;  %v211_v29 = vld [vmem:[%s1246_s1 + $0x88] sm:$0xff]  ;;  %v194_v30 = vld [vmem:[%s1246_s1] sm:$0xff]  ;;  %v132_v35 = vld [vmem:[#allocation3 + $0x10] sm:$0xff] }
  0x19   :  { %231 = vmatpush.msra.mxu0 %v204_v10  ;;  %791 = vmatpush.msra.mxu3 %v204_v10  ;;  %v210_v31 = vld [vmem:[%s1246_s1 + $0x80] sm:$0xff]  ;;  %v131_v34 = vld [vmem:[#allocation3 + $0x8] sm:$0xff]  ;;  %v180_v36 = vld [vmem:[#allocation3 + $0x190] sm:$0xff] }
  0x1a   :  { %344 = vmatpush.msra.mxu1 %v1009_v11  ;;  %v130_v32 = vld [vmem:[#allocation3] sm:$0xff]  ;;  %v133_v37 = vld [vmem:[#allocation3 + $0x18] sm:$0xff]  ;;  %v135_v40 = vld [vmem:[#allocation3 + $0x28] sm:$0xff] }
  0x1b   :  { %232 = vmatpush.msra.mxu0 %v203_v12  ;;  %792 = vmatpush.msra.mxu3 %v203_v12  ;;  %v178_v33 = vld [vmem:[#allocation3 + $0x180] sm:$0xff]  ;;  %v136_v41 = vld [vmem:[#allocation3 + $0x30] sm:$0xff]  ;;  %v137_v43 = vld [vmem:[#allocation3 + $0x38] sm:$0xff] }
  0x1c   :  { %345 = vmatpush.msra.mxu1 %v1018_v13  ;;  %v134_v38 = vld [vmem:[#allocation3 + $0x20] sm:$0xff]  ;;  %v184_v42 = vld [vmem:[#allocation3 + $0x1b0] sm:$0xff]  ;;  %v139_v46 = vld [vmem:[#allocation3 + $0x48] sm:$0xff] }
  0x1d   :  { %233 = vmatpush.msra.mxu0 %v202_v14  ;;  %793 = vmatpush.msra.mxu3 %v202_v14  ;;  %v182_v39 = vld [vmem:[#allocation3 + $0x1a0] sm:$0xff]  ;;  %v140_v47 = vld [vmem:[#allocation3 + $0x50] sm:$0xff]  ;;  %v141_v49 = vld [vmem:[#allocation3 + $0x58] sm:$0xff] }
  0x1e   :  { %346 = vmatpush.msra.mxu1 %v1027_v15  ;;  %v138_v44 = vld [vmem:[#allocation3 + $0x40] sm:$0xff]  ;;  %v188_v48 = vld [vmem:[#allocation3 + $0x1d0] sm:$0xff]  ;;  %v143_v52 = vld [vmem:[#allocation3 + $0x68] sm:$0xff] }
  0x1f   :  { %234 = vmatpush.msra.mxu0 %v201_v16  ;;  %794 = vmatpush.msra.mxu3 %v201_v16  ;;  %v186_v45 = vld [vmem:[#allocation3 + $0x1c0] sm:$0xff]  ;;  %v144_v53 = vld [vmem:[#allocation3 + $0x70] sm:$0xff]  ;;  %v145_v55 = vld [vmem:[#allocation3 + $0x78] sm:$0xff] }
  0x20   :  { %347 = vmatpush.msra.mxu1 %v1036_v17  ;;  %v142_v50 = vld [vmem:[#allocation3 + $0x60] sm:$0xff]  ;;  %v192_v54 = vld [vmem:[#allocation3 + $0x1f0] sm:$0xff]  ;;  %v147_v57 = vld [vmem:[#allocation3 + $0x88] sm:$0xff] }
  0x21   :  { %235 = vmatpush.msra.mxu0 %v200_v18  ;;  %795 = vmatpush.msra.mxu3 %v200_v18  ;;  %v190_v51 = vld [vmem:[#allocation3 + $0x1e0] sm:$0xff]  ;;  %v179_v58 = vld [vmem:[#allocation3 + $0x188] sm:$0xff]  ;;  %v633_v60 = vld [vmem:[#allocation7 + $0x70] sm:$0xff] }
  0x22   :  { %348 = vmatpush.msra.mxu1 %v216_v19  ;;  %v146_v56 = vld [vmem:[#allocation3 + $0x80] sm:$0xff]  ;;  %v148_v61 = vld [vmem:[#allocation3 + $0x90] sm:$0xff]  ;;  %v149_v62 = vld [vmem:[#allocation3 + $0x98] sm:$0xff] }
  0x23   :  { %236 = vmatpush.msra.mxu0 %v199_v20  ;;  %796 = vmatpush.msra.mxu3 %v199_v20  ;;  %v634_v59 = vld [vmem:[#allocation7 + $0x78] sm:$0xff]  ;;  %v632_v0 = vld [vmem:[#allocation7 + $0x68] sm:$0xff]  ;;  %v629_v4 = vld [vmem:[#allocation7 + $0x50] sm:$0xff] }
  0x24   :  { %349 = vmatpush.msra.mxu1 %v215_v21  ;;  %635 = vmatpush.msra.mxu2 %v634_v59  ;;  %v181_v63 = vld [vmem:[#allocation3 + $0x198] sm:$0xff]  ;;  %v183_v6 = vld [vmem:[#allocation3 + $0x1a8] sm:$0xff]  ;;  %v152_v10 = vld [vmem:[#allocation3 + $0xb0] sm:$0xff] }
  0x25   :  { %237 = vmatpush.msra.mxu0 %v198_v22  ;;  %797 = vmatpush.msra.mxu3 %v198_v22  ;;  %v630_v2 = vld [vmem:[#allocation7 + $0x58] sm:$0xff]  ;;  %v627_v8 = vld [vmem:[#allocation7 + $0x40] sm:$0xff]  ;;  %v624_v14 = vld [vmem:[#allocation7 + $0x28] sm:$0xff] }
  0x26   :  { %350 = vmatpush.msra.mxu1 %v214_v23  ;;  %636 = vmatpush.msra.mxu2 %v633_v60  ;;  %v153_v12 = vld [vmem:[#allocation3 + $0xb8] sm:$0xff]  ;;  %v154_v16 = vld [vmem:[#allocation3 + $0xc0] sm:$0xff]  ;;  %v155_v18 = vld [vmem:[#allocation3 + $0xc8] sm:$0xff] }
  0x27   :  { %238 = vmatpush.msra.mxu0 %v197_v24  ;;  %798 = vmatpush.msra.mxu3 %v197_v24  ;;  %v621_v20 = vld [vmem:[#allocation7 + $0x10] sm:$0xff]  ;;  %v619_v22 = vld [vmem:[#allocation7] sm:$0xff] }
  0x28   :  { %351 = vmatpush.msra.mxu1 %v213_v25  ;;  %637 = vmatpush.msra.mxu2 %v632_v0  ;;  %v157_v24 = vld [vmem:[#allocation3 + $0xd8] sm:$0xff] }
  0x29   :  { %239 = vmatpush.msra.mxu0 %v196_v26  ;;  %799 = vmatpush.msra.mxu3 %v196_v26  ;;  %v158_v26 = vld [vmem:[#allocation3 + $0xe0] sm:$0xff] }
  0x2a   :  { %352 = vmatpush.msra.mxu1 %v212_v27 }
  0x2b   :  { %240 = vmatpush.msra.mxu0 %v195_v28  ;;  %800 = vmatpush.msra.mxu3 %v195_v28  ;;  %v191_v28 = vld [vmem:[#allocation3 + $0x1e8] sm:$0xff] }
  0x2c   :  { %353 = vmatpush.msra.mxu1 %v211_v29 }
  0x2d   :  { %241 = vmatpush.msra.mxu0 %v194_v30  ;;  %801 = vmatpush.msra.mxu3 %v194_v30  ;;  %v161_v30 = vld [vmem:[#allocation3 + $0xf8] sm:$0xff] }
  0x2e   :  { %354 = vmatpush.msra.mxu1 %v210_v31  ;;  %242 = vmatmul.f32.vlgmr.msra.gmra.mxu0 %v130_v32 }
  0x2f   :  { %314 = vmatmul.f32.vlgmr.msra.gmra.mxu3 %v178_v33  ;;  %355 = vmatmul.f32.vlgmr.msra.gmra.mxu1 %v131_v34  ;;  %v162_v33 = vld [vmem:[#allocation3 + $0x100] sm:$0xff] }
  0x30   :  { %802 = vmatpush.msrb.mxu3 %v965_v1  ;;  %v631_v1 = vld [vmem:[#allocation7 + $0x60] sm:$0xff]  ;;  %v1091_v34 = vld [vmem:[#allocation5] ss:$0 sm:$0xff] }
  0x31   :  { %638 = vmatpush.msra.mxu2 %v631_v1 }
  0x32   :  { %803 = vmatpush.msrb.mxu3 %v973_v3  ;;  %v150_v3 = vld [vmem:[#allocation3 + $0xa0] sm:$0xff] }
  0x33   :  { %639 = vmatpush.msra.mxu2 %v630_v2 }
  0x34   :  { %804 = vmatpush.msrb.mxu3 %v982_v5  ;;  %v151_v5 = vld [vmem:[#allocation3 + $0xa8] sm:$0xff] }
  0x35   :  { %640 = vmatpush.msra.mxu2 %v629_v4 }
  0x36   :  { %245 = vmatmul.f32.gmra.mxu0 %v132_v35  ;;  %805 = vmatpush.msrb.mxu3 %v991_v7  ;;  %v628_v7 = vld [vmem:[#allocation7 + $0x48] sm:$0xff] }
  0x37   :  { %317 = vmatmul.f32.gmra.mxu3 %v180_v36  ;;  %358 = vmatmul.f32.gmra.mxu1 %v133_v37  ;;  %v163_v36 = vld [vmem:[#allocation3 + $0x108] sm:$0xff] }
  0x38   :  { %806 = vmatpush.msrb.mxu3 %v1000_v9  ;;  %641 = vmatpush.msra.mxu2 %v628_v7  ;;  %v626_v9 = vld [vmem:[#allocation7 + $0x38] sm:$0xff] }
  0x3a   :  { %807 = vmatpush.msrb.mxu3 %v1009_v11  ;;  %642 = vmatpush.msra.mxu2 %v627_v8  ;;  %v625_v11 = vld [vmem:[#allocation7 + $0x30] sm:$0xff] }
  0x3c   :  { %808 = vmatpush.msrb.mxu3 %v1018_v13  ;;  %v185_v13 = vld [vmem:[#allocation3 + $0x1b8] sm:$0xff]  ;;  %643 = vmatpush.msra.mxu2 %v626_v9 }
  0x3e   :  { %248 = vmatmul.f32.gmra.mxu0 %v134_v38  ;;  %809 = vmatpush.msrb.mxu3 %v1027_v15  ;;  %v623_v15 = vld [vmem:[#allocation7 + $0x20] sm:$0xff] }
  0x3f   :  { %320 = vmatmul.f32.gmra.mxu3 %v182_v39  ;;  %361 = vmatmul.f32.gmra.mxu1 %v135_v40 }
  0x40   :  { %810 = vmatpush.msrb.mxu3 %v1036_v17  ;;  %644 = vmatpush.msra.mxu2 %v625_v11  ;;  %v622_v17 = vld [vmem:[#allocation7 + $0x18] sm:$0xff] }
  0x42   :  { %811 = vmatpush.msrb.mxu3 %v216_v19  ;;  %645 = vmatpush.msra.mxu2 %v624_v14  ;;  %v187_v19 = vld [vmem:[#allocation3 + $0x1c8] sm:$0xff] }
  0x44   :  { %812 = vmatpush.msrb.mxu3 %v215_v21  ;;  %646 = vmatpush.msra.mxu2 %v623_v15  ;;  %v620_v21 = vld [vmem:[#allocation7 + $0x8] sm:$0xff] }
  0x46   :  { %251 = vmatmul.f32.gmra.mxu0 %v136_v41  ;;  %813 = vmatpush.msrb.mxu3 %v214_v23  ;;  %v156_v23 = vld [vmem:[#allocation3 + $0xd0] sm:$0xff] }
  0x47   :  { %323 = vmatmul.f32.gmra.mxu3 %v184_v42  ;;  %364 = vmatmul.f32.gmra.mxu1 %v137_v43  ;;  %v164_v42 = vld [vmem:[#allocation3 + $0x110] sm:$0xff] }
  0x48   :  { %814 = vmatpush.msrb.mxu3 %v213_v25  ;;  %647 = vmatpush.msra.mxu2 %v622_v17  ;;  %v189_v25 = vld [vmem:[#allocation3 + $0x1d8] sm:$0xff] }
  0x4a   :  { %815 = vmatpush.msrb.mxu3 %v212_v27  ;;  %648 = vmatpush.msra.mxu2 %v621_v20  ;;  %v159_v27 = vld [vmem:[#allocation3 + $0xe8] sm:$0xff] }
  0x4c   :  { %816 = vmatpush.msrb.mxu3 %v211_v29  ;;  %649 = vmatpush.msra.mxu2 %v620_v21  ;;  %v160_v29 = vld [vmem:[#allocation3 + $0xf0] sm:$0xff] }
  0x4e   :  { %254 = vmatmul.f32.gmra.mxu0 %v138_v44  ;;  %817 = vmatpush.msrb.mxu3 %v210_v31  ;;  %v193_v31 = vld [vmem:[#allocation3 + $0x1f8] sm:$0xff] }
  0x4f   :  { %326 = vmatmul.f32.gmra.mxu3 %v186_v45  ;;  %367 = vmatmul.f32.gmra.mxu1 %v139_v46  ;;  %v165_v44 = vld [vmem:[#allocation3 + $0x118] sm:$0xff] }
  0x50   :  { %818 = vmatpush.msra.mxu3 %v634_v59  ;;  %650 = vmatpush.msra.mxu2 %v619_v22 }
  0x52   :  { %819 = vmatpush.msra.mxu3 %v633_v60  ;;  %v169_v60 = vld [vmem:[#allocation3 + $0x138] sm:$0xff] }
  0x54   :  { %820 = vmatpush.msra.mxu3 %v632_v0 }
  0x56   :  { %257 = vmatmul.f32.gmra.mxu0 %v140_v47  ;;  %821 = vmatpush.msra.mxu3 %v631_v1 }
  0x57   :  { %329 = vmatmul.f32.gmra.mxu3 %v188_v48  ;;  %370 = vmatmul.f32.gmra.mxu1 %v141_v49 }
  0x58   :  { %822 = vmatpush.msra.mxu3 %v630_v2  ;;  %v170_v2 = vld [vmem:[#allocation3 + $0x140] sm:$0xff] }
  0x5a   :  { %823 = vmatpush.msra.mxu3 %v629_v4  ;;  %v171_v4 = vld [vmem:[#allocation3 + $0x148] sm:$0xff] }
  0x5c   :  { %824 = vmatpush.msra.mxu3 %v628_v7 }
  0x5e   :  { %260 = vmatmul.f32.gmra.mxu0 %v142_v50  ;;  %825 = vmatpush.msra.mxu3 %v627_v8  ;;  %v166_v50 = vld [vmem:[#allocation3 + $0x120] sm:$0xff] }
  0x5f   :  { %332 = vmatmul.f32.gmra.mxu3 %v190_v51  ;;  %373 = vmatmul.f32.gmra.mxu1 %v143_v52  ;;  %v167_v52 = vld [vmem:[#allocation3 + $0x128] sm:$0xff] }
  0x60   :  { %826 = vmatpush.msra.mxu3 %v626_v9 }
  0x62   :  { %827 = vmatpush.msra.mxu3 %v625_v11 }
  0x64   :  { %828 = vmatpush.msra.mxu3 %v624_v14 }
  0x66   :  { %263 = vmatmul.f32.gmra.mxu0 %v144_v53  ;;  %829 = vmatpush.msra.mxu3 %v623_v15 }
  0x67   :  { %335 = vmatmul.f32.gmra.mxu3 %v192_v54  ;;  %376 = vmatmul.f32.gmra.mxu1 %v145_v55 }
  0x68   :  { %830 = vmatpush.msra.mxu3 %v622_v17 }
  0x6a   :  { %831 = vmatpush.msra.mxu3 %v621_v20  ;;  %v175_v20 = vld [vmem:[#allocation3 + $0x168] sm:$0xff] }
  0x6c   :  { %832 = vmatpush.msra.mxu3 %v620_v21 }
  0x6e   :  { %266 = vmatmul.f32.gmra.mxu0 %v146_v56  ;;  %833 = vmatpush.msra.mxu3 %v619_v22 }
  0x6f   :  { %379 = vmatmul.f32.gmra.mxu1 %v147_v57  ;;  %427 = vmatmul.f32.vlgmr.msrb.gmra.mxu3 %v179_v58  ;;  %v168_v58 = vld [vmem:[#allocation3 + $0x130] sm:$0xff] }
  0x76   :  { %269 = vmatmul.f32.gmra.mxu0 %v148_v61 }
  0x77   :  { %382 = vmatmul.f32.gmra.mxu1 %v149_v62  ;;  %430 = vmatmul.f32.gmra.mxu3 %v181_v63 }
  0x7e   :  { %272 = vmatmul.f32.gmra.mxu0 %v150_v3 }
  0x7f   :  { %385 = vmatmul.f32.gmra.mxu1 %v151_v5  ;;  %433 = vmatmul.f32.gmra.mxu3 %v183_v6 }
  0x86   :  { %275 = vmatmul.f32.gmra.mxu0 %v152_v10  ;;  %v172_v10 = vld [vmem:[#allocation3 + $0x150] sm:$0xff] }
  0x87   :  { %388 = vmatmul.f32.gmra.mxu1 %v153_v12  ;;  %436 = vmatmul.f32.gmra.mxu3 %v185_v13  ;;  %v173_v12 = vld [vmem:[#allocation3 + $0x158] sm:$0xff] }
  0x8e   :  { %278 = vmatmul.f32.gmra.mxu0 %v154_v16 }
  0x8f   :  { %391 = vmatmul.f32.gmra.mxu1 %v155_v18  ;;  %439 = vmatmul.f32.gmra.mxu3 %v187_v19  ;;  %v174_v18 = vld [vmem:[#allocation3 + $0x160] sm:$0xff] }
  0x96   :  { %281 = vmatmul.f32.gmra.mxu0 %v156_v23 }
  0x97   :  { %394 = vmatmul.f32.gmra.mxu1 %v157_v24  ;;  %442 = vmatmul.f32.gmra.mxu3 %v189_v25 }
  0x9e   :  { %284 = vmatmul.f32.gmra.mxu0 %v158_v26  ;;  %v176_v26 = vld [vmem:[#allocation3 + $0x170] sm:$0xff] }
  0x9f   :  { %397 = vmatmul.f32.gmra.mxu1 %v159_v27  ;;  %445 = vmatmul.f32.gmra.mxu3 %v191_v28  ;;  %v177_v28 = vld [vmem:[#allocation3 + $0x178] sm:$0xff] }
  0xa6   :  { %287 = vmatmul.f32.gmra.mxu0 %v160_v29 }
  0xa7   :  { %400 = vmatmul.f32.gmra.mxu1 %v161_v30  ;;  %448 = vmatmul.f32.gmra.mxu3 %v193_v31 }
  0xab   :  { %v243_v32 = vpop.f32.mrf.mxu0 }
  0xac   :  { %v356_v35 = vpop.f32.mrf.mxu1 }
  0xad   :  { %v357_v37 = vadd.f32 %v356_v35, %v243_v32 }
  0xae   :  { %290 = vmatmul.f32.gmra.mxu0 %v162_v33 }
  0xaf   :  { %403 = vmatmul.f32.gmra.mxu1 %v163_v36  ;;  %v555_v38 = vadd.f32 %v1091_v34, %v357_v37 }
  0xb1   :  { %v587_v39 = vmax.f32 %v555_v38, 0.0 }
  0xb2   :  { %v1094_v40 = vpop.f32.mrf.mxu3 }
  0xb3   :  { %651 = vmatmul.f32.vlgmr.msra.gmra.mxu2 %v587_v39  ;;  %v246_v41 = vpop.f32.mrf.mxu0 }
  0xb4   :  { %v359_v43 = vpop.f32.mrf.mxu1 }
  0xb5   :  { %v360_v45 = vadd.f32 %v359_v43, %v246_v41 }
  0xb6   :  { %293 = vmatmul.f32.gmra.mxu0 %v164_v42 }
  0xb7   :  { %406 = vmatmul.f32.gmra.mxu1 %v165_v44  ;;  %v556_v46 = vadd.f32 %v1091_v34, %v360_v45 }
  0xb9   :  { %v588_v47 = vmax.f32 %v556_v46, 0.0 }
  0xba   :  { %v1097_v48 = vpop.f32.mrf.mxu3 }
  0xbb   :  { %654 = vmatmul.f32.gmra.mxu2 %v588_v47  ;;  %v249_v49 = vpop.f32.mrf.mxu0 }
  0xbc   :  { %v362_v51 = vpop.f32.mrf.mxu1 }
  0xbd   :  { %v363_v53 = vadd.f32 %v362_v51, %v249_v49 }
  0xbe   :  { %296 = vmatmul.f32.gmra.mxu0 %v166_v50 }
  0xbf   :  { %409 = vmatmul.f32.gmra.mxu1 %v167_v52  ;;  %v557_v54 = vadd.f32 %v1091_v34, %v363_v53 }
  0xc1   :  { %v589_v55 = vmax.f32 %v557_v54, 0.0 }
  0xc2   :  { %v1100_v56 = vpop.f32.mrf.mxu3 }
  0xc3   :  { %657 = vmatmul.f32.gmra.mxu2 %v589_v55  ;;  %v252_v57 = vpop.f32.mrf.mxu0 }
  0xc4   :  { %v365_v59 = vpop.f32.mrf.mxu1 }
  0xc5   :  { %v366_v61 = vadd.f32 %v365_v59, %v252_v57 }
  0xc6   :  { %299 = vmatmul.f32.gmra.mxu0 %v168_v58 }
  0xc7   :  { %412 = vmatmul.f32.gmra.mxu1 %v169_v60  ;;  %v558_v62 = vadd.f32 %v1091_v34, %v366_v61 }
  0xc9   :  { %v590_v63 = vmax.f32 %v558_v62, 0.0 }
  0xca   :  { %v1103_v0 = vpop.f32.mrf.mxu3 }
  0xcb   :  { %660 = vmatmul.f32.gmra.mxu2 %v590_v63  ;;  %v255_v1 = vpop.f32.mrf.mxu0 }
  0xcc   :  { %v368_v3 = vpop.f32.mrf.mxu1 }
  0xcd   :  { %v369_v5 = vadd.f32 %v368_v3, %v255_v1 }
  0xce   :  { %302 = vmatmul.f32.gmra.mxu0 %v170_v2 }
  0xcf   :  { %415 = vmatmul.f32.gmra.mxu1 %v171_v4  ;;  %v559_v6 = vadd.f32 %v1091_v34, %v369_v5 }
  0xd1   :  { %v591_v7 = vmax.f32 %v559_v6, 0.0 }
  0xd2   :  { %v1106_v8 = vpop.f32.mrf.mxu3 }
  0xd3   :  { %663 = vmatmul.f32.gmra.mxu2 %v591_v7  ;;  %v258_v9 = vpop.f32.mrf.mxu0 }
  0xd4   :  { %v371_v11 = vpop.f32.mrf.mxu1 }
  0xd5   :  { %v372_v13 = vadd.f32 %v371_v11, %v258_v9 }
  0xd6   :  { %305 = vmatmul.f32.gmra.mxu0 %v172_v10 }
  0xd7   :  { %418 = vmatmul.f32.gmra.mxu1 %v173_v12  ;;  %v560_v14 = vadd.f32 %v1091_v34, %v372_v13 }
  0xd9   :  { %v592_v15 = vmax.f32 %v560_v14, 0.0 }
  0xda   :  { %v1109_v16 = vpop.f32.mrf.mxu3 }
  0xdb   :  { %666 = vmatmul.f32.gmra.mxu2 %v592_v15  ;;  %v261_v17 = vpop.f32.mrf.mxu0 }
  0xdc   :  { %v374_v19 = vpop.f32.mrf.mxu1 }
  0xdd   :  { %v375_v21 = vadd.f32 %v374_v19, %v261_v17 }
  0xde   :  { %308 = vmatmul.f32.gmra.mxu0 %v174_v18 }
  0xdf   :  { %421 = vmatmul.f32.gmra.mxu1 %v175_v20  ;;  %v561_v22 = vadd.f32 %v1091_v34, %v375_v21 }
  0xe1   :  { %v593_v23 = vmax.f32 %v561_v22, 0.0 }
  0xe2   :  { %v1112_v24 = vpop.f32.mrf.mxu3 }
  0xe3   :  { %669 = vmatmul.f32.gmra.mxu2 %v593_v23  ;;  %v264_v25 = vpop.f32.mrf.mxu0 }
  0xe4   :  { %v377_v27 = vpop.f32.mrf.mxu1 }
  0xe5   :  { %v378_v29 = vadd.f32 %v377_v27, %v264_v25 }
  0xe6   :  { %311 = vmatmul.f32.gmra.mxu0 %v176_v26 }
  0xe7   :  { %424 = vmatmul.f32.gmra.mxu1 %v177_v28  ;;  %v562_v30 = vadd.f32 %v1091_v34, %v378_v29 }
  0xe9   :  { %v594_v31 = vmax.f32 %v562_v30, 0.0 }
  0xea   :  { %v1115_v32 = vpop.f32.mrf.mxu3 }
  0xeb   :  { %672 = vmatmul.f32.gmra.mxu2 %v594_v31  ;;  %v267_v33 = vpop.f32.mrf.mxu0 }
  0xec   :  { %v380_v35 = vpop.f32.mrf.mxu1 }
  0xed   :  { %v381_v36 = vadd.f32 %v380_v35, %v267_v33 }
  0xef   :  { %v563_v37 = vadd.f32 %v1091_v34, %v381_v36 }
  0xf1   :  { %v595_v38 = vmax.f32 %v563_v37, 0.0 }
  0xf2   :  { %v428_v39 = vpop.f32.mrf.mxu3 }
  0xf3   :  { %v429_v41 = vadd.f32 %v428_v39, %v1094_v40  ;;  %675 = vmatmul.f32.gmra.mxu2 %v595_v38  ;;  %v270_v42 = vpop.f32.mrf.mxu0 }
  0xf4   :  { %v383_v43 = vpop.f32.mrf.mxu1 }
  0xf5   :  { %v579_v44 = vadd.f32 %v1091_v34, %v429_v41  ;;  %v384_v45 = vadd.f32 %v383_v43, %v270_v42 }
  0xf7   :  { %v611_v46 = vmax.f32 %v579_v44, 0.0  ;;  %v564_v47 = vadd.f32 %v1091_v34, %v384_v45 }
  0xf9   :  { %723 = vmatmul.f32.vlgmr.msra.gmra.mxu3 %v611_v46  ;;  %v596_v49 = vmax.f32 %v564_v47, 0.0 }
  0xfa   :  { %v431_v50 = vpop.f32.mrf.mxu3 }
  0xfb   :  { %v432_v51 = vadd.f32 %v431_v50, %v1097_v48  ;;  %678 = vmatmul.f32.gmra.mxu2 %v596_v49  ;;  %v273_v52 = vpop.f32.mrf.mxu0 }
  0xfc   :  { %v386_v53 = vpop.f32.mrf.mxu1 }
  0xfd   :  { %v387_v54 = vadd.f32 %v386_v53, %v273_v52  ;;  %v580_v40 = vadd.f32 %v1091_v34, %v432_v51 }
  0xff   :  { %v612_v55 = vmax.f32 %v580_v40, 0.0  ;;  %v565_v57 = vadd.f32 %v1091_v34, %v387_v54 }
 0x101   :  { %726 = vmatmul.f32.gmra.mxu3 %v612_v55  ;;  %v597_v58 = vmax.f32 %v565_v57, 0.0 }
 0x102   :  { %v434_v59 = vpop.f32.mrf.mxu3 }
 0x103   :  { %v435_v60 = vadd.f32 %v434_v59, %v1100_v56  ;;  %681 = vmatmul.f32.gmra.mxu2 %v597_v58  ;;  %v276_v61 = vpop.f32.mrf.mxu0 }
 0x104   :  { %v389_v62 = vpop.f32.mrf.mxu1 }
 0x105   :  { %v390_v63 = vadd.f32 %v389_v62, %v276_v61  ;;  %v581_v48 = vadd.f32 %v1091_v34, %v435_v60 }
 0x107   :  { %v613_v1 = vmax.f32 %v581_v48, 0.0  ;;  %v566_v2 = vadd.f32 %v1091_v34, %v390_v63 }
 0x109   :  { %729 = vmatmul.f32.gmra.mxu3 %v613_v1  ;;  %v598_v3 = vmax.f32 %v566_v2, 0.0 }
 0x10a   :  { %v437_v4 = vpop.f32.mrf.mxu3 }
 0x10b   :  { %v438_v5 = vadd.f32 %v437_v4, %v1103_v0  ;;  %684 = vmatmul.f32.gmra.mxu2 %v598_v3  ;;  %v279_v6 = vpop.f32.mrf.mxu0 }
 0x10c   :  { %v392_v7 = vpop.f32.mrf.mxu1 }
 0x10d   :  { %v393_v9 = vadd.f32 %v392_v7, %v279_v6  ;;  %v582_v56 = vadd.f32 %v1091_v34, %v438_v5 }
 0x10f   :  { %v614_v10 = vmax.f32 %v582_v56, 0.0  ;;  %v567_v11 = vadd.f32 %v1091_v34, %v393_v9 }
 0x111   :  { %732 = vmatmul.f32.gmra.mxu3 %v614_v10  ;;  %v599_v12 = vmax.f32 %v567_v11, 0.0 }
 0x112   :  { %v440_v13 = vpop.f32.mrf.mxu3 }
 0x113   :  { %v441_v14 = vadd.f32 %v440_v13, %v1106_v8  ;;  %687 = vmatmul.f32.gmra.mxu2 %v599_v12  ;;  %v282_v15 = vpop.f32.mrf.mxu0 }
 0x114   :  { %v395_v17 = vpop.f32.mrf.mxu1 }
 0x115   :  { %v396_v18 = vadd.f32 %v395_v17, %v282_v15  ;;  %v583_v0 = vadd.f32 %v1091_v34, %v441_v14 }
 0x117   :  { %v615_v19 = vmax.f32 %v583_v0, 0.0  ;;  %v568_v20 = vadd.f32 %v1091_v34, %v396_v18 }
 0x119   :  { %735 = vmatmul.f32.gmra.mxu3 %v615_v19  ;;  %v600_v21 = vmax.f32 %v568_v20, 0.0 }
 0x11a   :  { %v443_v22 = vpop.f32.mrf.mxu3 }
 0x11b   :  { %v444_v23 = vadd.f32 %v443_v22, %v1109_v16  ;;  %690 = vmatmul.f32.gmra.mxu2 %v600_v21  ;;  %v285_v25 = vpop.f32.mrf.mxu0 }
 0x11c   :  { %v398_v26 = vpop.f32.mrf.mxu1 }
 0x11d   :  { %v399_v27 = vadd.f32 %v398_v26, %v285_v25  ;;  %v584_v8 = vadd.f32 %v1091_v34, %v444_v23 }
 0x11f   :  { %v616_v28 = vmax.f32 %v584_v8, 0.0  ;;  %v569_v29 = vadd.f32 %v1091_v34, %v399_v27 }
 0x121   :  { %738 = vmatmul.f32.gmra.mxu3 %v616_v28  ;;  %v601_v30 = vmax.f32 %v569_v29, 0.0 }
 0x122   :  { %v446_v31 = vpop.f32.mrf.mxu3 }
 0x123   :  { %v447_v33 = vadd.f32 %v446_v31, %v1112_v24  ;;  %693 = vmatmul.f32.gmra.mxu2 %v601_v30  ;;  %v288_v35 = vpop.f32.mrf.mxu0 }
 0x124   :  { %v401_v36 = vpop.f32.mrf.mxu1 }
 0x125   :  { %v402_v37 = vadd.f32 %v401_v36, %v288_v35  ;;  %v585_v16 = vadd.f32 %v1091_v34, %v447_v33 }
 0x127   :  { %v617_v38 = vmax.f32 %v585_v16, 0.0  ;;  %v570_v39 = vadd.f32 %v1091_v34, %v402_v37 }
 0x129   :  { %741 = vmatmul.f32.gmra.mxu3 %v617_v38  ;;  %v602_v41 = vmax.f32 %v570_v39, 0.0 }
 0x12a   :  { %v449_v42 = vpop.f32.mrf.mxu3 }
 0x12b   :  { %v450_v43 = vadd.f32 %v449_v42, %v1115_v32  ;;  %696 = vmatmul.f32.gmra.mxu2 %v602_v41  ;;  %v291_v44 = vpop.f32.mrf.mxu0 }
 0x12c   :  { %v404_v45 = vpop.f32.mrf.mxu1 }
 0x12d   :  { %v405_v46 = vadd.f32 %v404_v45, %v291_v44  ;;  %v586_v24 = vadd.f32 %v1091_v34, %v450_v43 }
 0x12f   :  { %v618_v47 = vmax.f32 %v586_v24, 0.0  ;;  %v571_v49 = vadd.f32 %v1091_v34, %v405_v46 }
 0x131   :  { %744 = vmatmul.f32.gmra.mxu3 %v618_v47  ;;  %v603_v50 = vmax.f32 %v571_v49, 0.0 }
 0x133   :  { %699 = vmatmul.f32.gmra.mxu2 %v603_v50  ;;  %v294_v51 = vpop.f32.mrf.mxu0 }
 0x134   :  { %v407_v52 = vpop.f32.mrf.mxu1 }
 0x135   :  { %v408_v53 = vadd.f32 %v407_v52, %v294_v51 }
 0x136   :  { %v652_v54 = vpop.f32.mrf.mxu2 }
 0x137   :  { %748 = vst [vmem:[%s1249_s4] sm:$0xff] %v652_v54  ;;  %v572_v32 = vadd.f32 %v1091_v34, %v408_v53 }
 0x139   :  { %v604_v40 = vmax.f32 %v572_v32, 0.0 }
 0x13b   :  { %702 = vmatmul.f32.gmra.mxu2 %v604_v40  ;;  %v297_v55 = vpop.f32.mrf.mxu0 }
 0x13c   :  { %v410_v57 = vpop.f32.mrf.mxu1 }
 0x13d   :  { %v411_v58 = vadd.f32 %v410_v57, %v297_v55 }
 0x13e   :  { %v655_v59 = vpop.f32.mrf.mxu2 }
 0x13f   :  { %749 = vst [vmem:[%s1249_s4 + $0x8] sm:$0xff] %v655_v59  ;;  %v573_v60 = vadd.f32 %v1091_v34, %v411_v58 }
 0x141   :  { %v605_v61 = vmax.f32 %v573_v60, 0.0 }
 0x143   :  { %705 = vmatmul.f32.gmra.mxu2 %v605_v61  ;;  %v300_v62 = vpop.f32.mrf.mxu0 }
 0x144   :  { %v413_v63 = vpop.f32.mrf.mxu1 }
 0x145   :  { %v414_v48 = vadd.f32 %v413_v63, %v300_v62 }
 0x146   :  { %v658_v1 = vpop.f32.mrf.mxu2 }
 0x147   :  { %750 = vst [vmem:[%s1249_s4 + $0x10] sm:$0xff] %v658_v1  ;;  %v574_v2 = vadd.f32 %v1091_v34, %v414_v48 }
 0x149   :  { %v606_v3 = vmax.f32 %v574_v2, 0.0 }
 0x14b   :  { %708 = vmatmul.f32.gmra.mxu2 %v606_v3  ;;  %v303_v4 = vpop.f32.mrf.mxu0 }
 0x14c   :  { %v416_v5 = vpop.f32.mrf.mxu1 }
 0x14d   :  { %v417_v6 = vadd.f32 %v416_v5, %v303_v4 }
 0x14e   :  { %v661_v7 = vpop.f32.mrf.mxu2 }
 0x14f   :  { %751 = vst [vmem:[%s1249_s4 + $0x18] sm:$0xff] %v661_v7  ;;  %v575_v9 = vadd.f32 %v1091_v34, %v417_v6 }
 0x151   :  { %v607_v56 = vmax.f32 %v575_v9, 0.0 }
 0x153   :  { %711 = vmatmul.f32.gmra.mxu2 %v607_v56  ;;  %v306_v10 = vpop.f32.mrf.mxu0 }
 0x154   :  { %v419_v11 = vpop.f32.mrf.mxu1 }
 0x155   :  { %v420_v12 = vadd.f32 %v419_v11, %v306_v10 }
 0x156   :  { %v664_v13 = vpop.f32.mrf.mxu2 }
 0x157   :  { %752 = vst [vmem:[%s1249_s4 + $0x20] sm:$0xff] %v664_v13  ;;  %v576_v14 = vadd.f32 %v1091_v34, %v420_v12 }
 0x159   :  { %v608_v15 = vmax.f32 %v576_v14, 0.0 }
 0x15b   :  { %714 = vmatmul.f32.gmra.mxu2 %v608_v15  ;;  %v309_v17 = vpop.f32.mrf.mxu0 }
 0x15c   :  { %v422_v18 = vpop.f32.mrf.mxu1 }
 0x15d   :  { %v423_v0 = vadd.f32 %v422_v18, %v309_v17 }
 0x15e   :  { %v667_v19 = vpop.f32.mrf.mxu2 }
 0x15f   :  { %753 = vst [vmem:[%s1249_s4 + $0x28] sm:$0xff] %v667_v19  ;;  %v577_v20 = vadd.f32 %v1091_v34, %v423_v0 }
 0x161   :  { %v609_v21 = vmax.f32 %v577_v20, 0.0 }
 0x163   :  { %717 = vmatmul.f32.gmra.mxu2 %v609_v21  ;;  %v312_v22 = vpop.f32.mrf.mxu0 }
 0x164   :  { %v425_v23 = vpop.f32.mrf.mxu1 }
 0x165   :  { %v426_v25 = vadd.f32 %v425_v23, %v312_v22 }
 0x166   :  { %v670_v26 = vpop.f32.mrf.mxu2 }
 0x167   :  { %754 = vst [vmem:[%s1249_s4 + $0x30] sm:$0xff] %v670_v26  ;;  %v578_v27 = vadd.f32 %v1091_v34, %v426_v25 }
 0x169   :  { %v610_v8 = vmax.f32 %v578_v27, 0.0 }
 0x16b   :  { %720 = vmatmul.f32.gmra.mxu2 %v610_v8 }
 0x16e   :  { %v673_v28 = vpop.f32.mrf.mxu2 }
 0x16f   :  { %755 = vst [vmem:[%s1249_s4 + $0x38] sm:$0xff] %v673_v28 }
 0x176   :  { %v676_v29 = vpop.f32.mrf.mxu2 }
 0x177   :  { %756 = vst [vmem:[%s1249_s4 + $0x40] sm:$0xff] %v676_v29 }
 0x17c   :  { %v724_v30 = vpop.f32.mrf.mxu3 }
 0x17d   :  { %772 = vst [vmem:[%s1249_s4 + $0xc0] sm:$0xff] %v724_v30 }
 0x17e   :  { %v679_v31 = vpop.f32.mrf.mxu2 }
 0x17f   :  { %757 = vst [vmem:[%s1249_s4 + $0x48] sm:$0xff] %v679_v31 }
 0x184   :  { %v727_v34 = vpop.f32.mrf.mxu3 }
 0x185   :  { %773 = vst [vmem:[%s1249_s4 + $0xc8] sm:$0xff] %v727_v34 }
 0x186   :  { %v682_v33 = vpop.f32.mrf.mxu2 }
 0x187   :  { %758 = vst [vmem:[%s1249_s4 + $0x50] sm:$0xff] %v682_v33 }
 0x18c   :  { %v730_v35 = vpop.f32.mrf.mxu3 }
 0x18d   :  { %774 = vst [vmem:[%s1249_s4 + $0xd0] sm:$0xff] %v730_v35 }
 0x18e   :  { %v685_v36 = vpop.f32.mrf.mxu2 }
 0x18f   :  { %759 = vst [vmem:[%s1249_s4 + $0x58] sm:$0xff] %v685_v36 }
 0x194   :  { %v733_v37 = vpop.f32.mrf.mxu3 }
 0x195   :  { %775 = vst [vmem:[%s1249_s4 + $0xd8] sm:$0xff] %v733_v37 }
 0x196   :  { %v688_v16 = vpop.f32.mrf.mxu2 }
 0x197   :  { %760 = vst [vmem:[%s1249_s4 + $0x60] sm:$0xff] %v688_v16 }
 0x19c   :  { %v736_v38 = vpop.f32.mrf.mxu3 }
 0x19d   :  { %776 = vst [vmem:[%s1249_s4 + $0xe0] sm:$0xff] %v736_v38 }
 0x19e   :  { %v691_v39 = vpop.f32.mrf.mxu2 }
 0x19f   :  { %761 = vst [vmem:[%s1249_s4 + $0x68] sm:$0xff] %v691_v39 }
 0x1a4   :  { %v739_v41 = vpop.f32.mrf.mxu3 }
 0x1a5   :  { %777 = vst [vmem:[%s1249_s4 + $0xe8] sm:$0xff] %v739_v41 }
 0x1a6   :  { %v694_v42 = vpop.f32.mrf.mxu2 }
 0x1a7   :  { %762 = vst [vmem:[%s1249_s4 + $0x70] sm:$0xff] %v694_v42 }
 0x1ac   :  { %v742_v43 = vpop.f32.mrf.mxu3 }
 0x1ad   :  { %778 = vst [vmem:[%s1249_s4 + $0xf0] sm:$0xff] %v742_v43 }
 0x1ae   :  { %v697_v44 = vpop.f32.mrf.mxu2 }
 0x1af   :  { %763 = vst [vmem:[%s1249_s4 + $0x78] sm:$0xff] %v697_v44 }
 0x1b4   :  { %v745_v45 = vpop.f32.mrf.mxu3 }
 0x1b5   :  { %779 = vst [vmem:[%s1249_s4 + $0xf8] sm:$0xff] %v745_v45 }
 0x1b6   :  { %v700_v46 = vpop.f32.mrf.mxu2 }
 0x1b7   :  { %764 = vst [vmem:[%s1249_s4 + $0x80] sm:$0xff] %v700_v46 }
 0x1be   :  { %v703_v24 = vpop.f32.mrf.mxu2 }
 0x1bf   :  { %765 = vst [vmem:[%s1249_s4 + $0x88] sm:$0xff] %v703_v24 }
 0x1c6   :  { %v706_v47 = vpop.f32.mrf.mxu2 }
 0x1c7   :  { %766 = vst [vmem:[%s1249_s4 + $0x90] sm:$0xff] %v706_v47 }
 0x1ce   :  { %v709_v49 = vpop.f32.mrf.mxu2 }
 0x1cf   :  { %767 = vst [vmem:[%s1249_s4 + $0x98] sm:$0xff] %v709_v49 }
 0x1d6   :  { %v712_v50 = vpop.f32.mrf.mxu2 }
 0x1d7   :  { %768 = vst [vmem:[%s1249_s4 + $0xa0] sm:$0xff] %v712_v50 }
 0x1de   :  { %v715_v51 = vpop.f32.mrf.mxu2 }
 0x1df   :  { %769 = vst [vmem:[%s1249_s4 + $0xa8] sm:$0xff] %v715_v51 }
 0x1e6   :  { %v718_v52 = vpop.f32.mrf.mxu2 }
 0x1e7   :  { %770 = vst [vmem:[%s1249_s4 + $0xb0] sm:$0xff] %v718_v52 }
 0x1ee   :  { %v721_v53 = vpop.f32.mrf.mxu2 }
 0x1ef   :  { %771 = vst [vmem:[%s1249_s4 + $0xb8] sm:$0xff] %v721_v53 }
 0x1f0   :  { %784 = vsyncpa [#allocation4], 1 }
 0x1f1   :  { %785 = vsyncpa [#allocation6], 1 }

// kernel: gcn_model_forward.6
= control target key start
LH: loop header
LB: loop body
LE: loop exit
PB: predicated region body
PF: predicated region fallthrough
CT: control target
= control target key end

     0   :  { %11 = vsyncpa [#allocation4], 0  ;;  %s872_s21 = smov [#allocation3]   ;;  %s873_s23 = smov 256   ;;  %s1341_s0 = inlined_call_operand.hbm [shape: f32[256,256], index: 0, kind: input, shape index: {}]   ;;  %s1342_s1 = inlined_call_operand.vmem [shape: f32[256,128], index: 1, kind: input, shape index: {}]   ;;  %s1343_s2 = inlined_call_operand.vmem [shape: f32[1,128], index: 2, kind: input, shape index: {}]   ;;  %s1344_s3 = inlined_call_operand.vmem [shape: f32[128,128], index: 3, kind: input, shape index: {}]   ;;  %s1345_s4 = inlined_call_operand.vmem [shape: f32[256,128], index: 4, kind: output, shape index: {0}]   ;;  %s1346_s5 = inlined_call_operand.vmem [shape: f32[256,128], index: 5, kind: output, shape index: {1}]  }
   0x1   :  { %s16_s20 = sshll.u32 %s1341_s0, 4  ;;  %s18_s22 = sshll.u32 %s872_s21, 4  ;;  %s17_s20 = int_to_ptr.hbm [resolvable:$true] %s16_s20  ;;  %s19_s22 = int_to_ptr.vmem [resolvable:$true] %s18_s22 }
   0x2   :  { %s874_s24 = smov 16  }
   0x3   :  { %24 = dma.hbm_to_vmem [thread:$0]  %s17_s20, 8192, %s19_s22, [#allocation4], %s873_s23, %s873_s23, %s874_s24  }
   0x4   :  { %870 = dma.done.wait [#allocation4], 8192  }
   0x5   :  { %871 = vsyncadd [#allocation4], 4294959104  ;;  %v182_v0 = vld [vmem:[%s1342_s1 + $0x78] sm:$0xff]  ;;  %v181_v2 = vld [vmem:[%s1342_s1 + $0x70] sm:$0xff] }
   0x6   :  { %v914_v1 = vld [vmem:[%s1342_s1 + $0xf8] sm:$0xff]  ;;  %199 = vmatpush.msra.mxu0 %v182_v0  ;;  %794 = vmatpush.msra.mxu3 %v182_v0  ;;  %v922_v3 = vld [vmem:[%s1342_s1 + $0xf0] sm:$0xff]  ;;  %v180_v4 = vld [vmem:[%s1342_s1 + $0x68] sm:$0xff] }
   0x7   :  { %312 = vmatpush.msra.mxu1 %v914_v1  ;;  %v931_v5 = vld [vmem:[%s1342_s1 + $0xe8] sm:$0xff]  ;;  %v179_v6 = vld [vmem:[%s1342_s1 + $0x60] sm:$0xff]  ;;  %v178_v8 = vld [vmem:[%s1342_s1 + $0x58] sm:$0xff] }
   0x8   :  { %200 = vmatpush.msra.mxu0 %v181_v2  ;;  %795 = vmatpush.msra.mxu3 %v181_v2  ;;  %v940_v7 = vld [vmem:[%s1342_s1 + $0xe0] sm:$0xff]  ;;  %v949_v9 = vld [vmem:[%s1342_s1 + $0xd8] sm:$0xff]  ;;  %v177_v10 = vld [vmem:[%s1342_s1 + $0x50] sm:$0xff] }
   0x9   :  { %313 = vmatpush.msra.mxu1 %v922_v3  ;;  %v958_v11 = vld [vmem:[%s1342_s1 + $0xd0] sm:$0xff]  ;;  %v176_v12 = vld [vmem:[%s1342_s1 + $0x48] sm:$0xff]  ;;  %v175_v14 = vld [vmem:[%s1342_s1 + $0x40] sm:$0xff] }
   0xa   :  { %201 = vmatpush.msra.mxu0 %v180_v4  ;;  %796 = vmatpush.msra.mxu3 %v180_v4  ;;  %v967_v13 = vld [vmem:[%s1342_s1 + $0xc8] sm:$0xff]  ;;  %v976_v15 = vld [vmem:[%s1342_s1 + $0xc0] sm:$0xff]  ;;  %v174_v16 = vld [vmem:[%s1342_s1 + $0x38] sm:$0xff] }
   0xb   :  { %314 = vmatpush.msra.mxu1 %v931_v5  ;;  %v985_v17 = vld [vmem:[%s1342_s1 + $0xb8] sm:$0xff]  ;;  %v173_v18 = vld [vmem:[%s1342_s1 + $0x30] sm:$0xff]  ;;  %v172_v20 = vld [vmem:[%s1342_s1 + $0x28] sm:$0xff] }
   0xc   :  { %202 = vmatpush.msra.mxu0 %v179_v6  ;;  %797 = vmatpush.msra.mxu3 %v179_v6  ;;  %v189_v19 = vld [vmem:[%s1342_s1 + $0xb0] sm:$0xff]  ;;  %v188_v21 = vld [vmem:[%s1342_s1 + $0xa8] sm:$0xff]  ;;  %v171_v22 = vld [vmem:[%s1342_s1 + $0x20] sm:$0xff] }
   0xd   :  { %315 = vmatpush.msra.mxu1 %v940_v7  ;;  %v187_v23 = vld [vmem:[%s1342_s1 + $0xa0] sm:$0xff]  ;;  %v170_v24 = vld [vmem:[%s1342_s1 + $0x18] sm:$0xff]  ;;  %v169_v26 = vld [vmem:[%s1342_s1 + $0x10] sm:$0xff] }
   0xe   :  { %203 = vmatpush.msra.mxu0 %v178_v8  ;;  %798 = vmatpush.msra.mxu3 %v178_v8  ;;  %v186_v25 = vld [vmem:[%s1342_s1 + $0x98] sm:$0xff]  ;;  %v185_v27 = vld [vmem:[%s1342_s1 + $0x90] sm:$0xff]  ;;  %v168_v28 = vld [vmem:[%s1342_s1 + $0x8] sm:$0xff] }
   0xf   :  { %316 = vmatpush.msra.mxu1 %v949_v9  ;;  %v184_v29 = vld [vmem:[%s1342_s1 + $0x88] sm:$0xff]  ;;  %v167_v30 = vld [vmem:[%s1342_s1] sm:$0xff]  ;;  %v105_v35 = vld [vmem:[#allocation3 + $0x10] sm:$0xff] }
  0x10   :  { %204 = vmatpush.msra.mxu0 %v177_v10  ;;  %799 = vmatpush.msra.mxu3 %v177_v10  ;;  %v183_v31 = vld [vmem:[%s1342_s1 + $0x80] sm:$0xff]  ;;  %v104_v34 = vld [vmem:[#allocation3 + $0x8] sm:$0xff]  ;;  %v153_v36 = vld [vmem:[#allocation3 + $0x190] sm:$0xff] }
  0x11   :  { %317 = vmatpush.msra.mxu1 %v958_v11  ;;  %v103_v32 = vld [vmem:[#allocation3] sm:$0xff]  ;;  %v106_v37 = vld [vmem:[#allocation3 + $0x18] sm:$0xff]  ;;  %v108_v40 = vld [vmem:[#allocation3 + $0x28] sm:$0xff] }
  0x12   :  { %205 = vmatpush.msra.mxu0 %v176_v12  ;;  %800 = vmatpush.msra.mxu3 %v176_v12  ;;  %v151_v33 = vld [vmem:[#allocation3 + $0x180] sm:$0xff]  ;;  %v109_v41 = vld [vmem:[#allocation3 + $0x30] sm:$0xff]  ;;  %v110_v43 = vld [vmem:[#allocation3 + $0x38] sm:$0xff] }
  0x13   :  { %318 = vmatpush.msra.mxu1 %v967_v13  ;;  %v107_v38 = vld [vmem:[#allocation3 + $0x20] sm:$0xff]  ;;  %v157_v42 = vld [vmem:[#allocation3 + $0x1b0] sm:$0xff]  ;;  %v112_v46 = vld [vmem:[#allocation3 + $0x48] sm:$0xff] }
  0x14   :  { %206 = vmatpush.msra.mxu0 %v175_v14  ;;  %801 = vmatpush.msra.mxu3 %v175_v14  ;;  %v155_v39 = vld [vmem:[#allocation3 + $0x1a0] sm:$0xff]  ;;  %v113_v47 = vld [vmem:[#allocation3 + $0x50] sm:$0xff]  ;;  %v114_v49 = vld [vmem:[#allocation3 + $0x58] sm:$0xff] }
  0x15   :  { %319 = vmatpush.msra.mxu1 %v976_v15  ;;  %v111_v44 = vld [vmem:[#allocation3 + $0x40] sm:$0xff]  ;;  %v161_v48 = vld [vmem:[#allocation3 + $0x1d0] sm:$0xff]  ;;  %v116_v52 = vld [vmem:[#allocation3 + $0x68] sm:$0xff] }
  0x16   :  { %207 = vmatpush.msra.mxu0 %v174_v16  ;;  %802 = vmatpush.msra.mxu3 %v174_v16  ;;  %v159_v45 = vld [vmem:[#allocation3 + $0x1c0] sm:$0xff]  ;;  %v117_v53 = vld [vmem:[#allocation3 + $0x70] sm:$0xff]  ;;  %v118_v55 = vld [vmem:[#allocation3 + $0x78] sm:$0xff] }
  0x17   :  { %320 = vmatpush.msra.mxu1 %v985_v17  ;;  %v115_v50 = vld [vmem:[#allocation3 + $0x60] sm:$0xff]  ;;  %v165_v54 = vld [vmem:[#allocation3 + $0x1f0] sm:$0xff]  ;;  %v120_v57 = vld [vmem:[#allocation3 + $0x88] sm:$0xff] }
  0x18   :  { %208 = vmatpush.msra.mxu0 %v173_v18  ;;  %803 = vmatpush.msra.mxu3 %v173_v18  ;;  %v163_v51 = vld [vmem:[#allocation3 + $0x1e0] sm:$0xff]  ;;  %v152_v58 = vld [vmem:[#allocation3 + $0x188] sm:$0xff]  ;;  %v639_v59 = vld [vmem:[%s1344_s3 + $0x78] sm:$0xff] }
  0x19   :  { %321 = vmatpush.msra.mxu1 %v189_v19  ;;  %v119_v56 = vld [vmem:[#allocation3 + $0x80] sm:$0xff]  ;;  %v638_v60 = vld [vmem:[%s1344_s3 + $0x70] sm:$0xff]  ;;  %640 = vmatpush.msra.mxu2 %v639_v59  ;;  %v122_v62 = vld [vmem:[#allocation3 + $0x98] sm:$0xff] }
  0x1a   :  { %209 = vmatpush.msra.mxu0 %v172_v20  ;;  %804 = vmatpush.msra.mxu3 %v172_v20  ;;  %v121_v61 = vld [vmem:[#allocation3 + $0x90] sm:$0xff]  ;;  %v154_v63 = vld [vmem:[#allocation3 + $0x198] sm:$0xff]  ;;  %v637_v0 = vld [vmem:[%s1344_s3 + $0x68] sm:$0xff] }
  0x1b   :  { %322 = vmatpush.msra.mxu1 %v188_v21  ;;  %641 = vmatpush.msra.mxu2 %v638_v60  ;;  %v635_v2 = vld [vmem:[%s1344_s3 + $0x58] sm:$0xff]  ;;  %v634_v4 = vld [vmem:[%s1344_s3 + $0x50] sm:$0xff]  ;;  %v156_v6 = vld [vmem:[#allocation3 + $0x1a8] sm:$0xff] }
  0x1c   :  { %210 = vmatpush.msra.mxu0 %v171_v22  ;;  %805 = vmatpush.msra.mxu3 %v171_v22  ;;  %v632_v8 = vld [vmem:[%s1344_s3 + $0x40] sm:$0xff]  ;;  %v125_v10 = vld [vmem:[#allocation3 + $0xb0] sm:$0xff]  ;;  %v126_v12 = vld [vmem:[#allocation3 + $0xb8] sm:$0xff] }
  0x1d   :  { %323 = vmatpush.msra.mxu1 %v187_v23  ;;  %642 = vmatpush.msra.mxu2 %v637_v0  ;;  %v629_v14 = vld [vmem:[%s1344_s3 + $0x28] sm:$0xff]  ;;  %v127_v16 = vld [vmem:[#allocation3 + $0xc0] sm:$0xff]  ;;  %v626_v20 = vld [vmem:[%s1344_s3 + $0x10] sm:$0xff] }
  0x1e   :  { %211 = vmatpush.msra.mxu0 %v170_v24  ;;  %806 = vmatpush.msra.mxu3 %v170_v24  ;;  %v128_v18 = vld [vmem:[#allocation3 + $0xc8] sm:$0xff]  ;;  %v624_v22 = vld [vmem:[%s1344_s3] sm:$0xff]  ;;  %v130_v24 = vld [vmem:[#allocation3 + $0xd8] sm:$0xff] }
  0x1f   :  { %324 = vmatpush.msra.mxu1 %v186_v25 }
  0x20   :  { %212 = vmatpush.msra.mxu0 %v169_v26  ;;  %807 = vmatpush.msra.mxu3 %v169_v26  ;;  %v131_v26 = vld [vmem:[#allocation3 + $0xe0] sm:$0xff] }
  0x21   :  { %325 = vmatpush.msra.mxu1 %v185_v27 }
  0x22   :  { %213 = vmatpush.msra.mxu0 %v168_v28  ;;  %808 = vmatpush.msra.mxu3 %v168_v28  ;;  %v164_v28 = vld [vmem:[#allocation3 + $0x1e8] sm:$0xff] }
  0x23   :  { %326 = vmatpush.msra.mxu1 %v184_v29 }
  0x24   :  { %214 = vmatpush.msra.mxu0 %v167_v30  ;;  %809 = vmatpush.msra.mxu3 %v167_v30  ;;  %v134_v30 = vld [vmem:[#allocation3 + $0xf8] sm:$0xff] }
  0x25   :  { %327 = vmatpush.msra.mxu1 %v183_v31  ;;  %215 = vmatmul.f32.vlgmr.msra.gmra.mxu0 %v103_v32 }
  0x26   :  { %287 = vmatmul.f32.vlgmr.msra.gmra.mxu3 %v151_v33  ;;  %328 = vmatmul.f32.vlgmr.msra.gmra.mxu1 %v104_v34  ;;  %v135_v33 = vld [vmem:[#allocation3 + $0x100] sm:$0xff] }
  0x27   :  { %810 = vmatpush.msrb.mxu3 %v914_v1  ;;  %v636_v1 = vld [vmem:[%s1344_s3 + $0x60] sm:$0xff] }
  0x28   :  { %643 = vmatpush.msra.mxu2 %v636_v1  ;;  %v1091_v34 = vld [vmem:[%s1343_s2] ss:$0 sm:$0xff] }
  0x29   :  { %811 = vmatpush.msrb.mxu3 %v922_v3  ;;  %v123_v3 = vld [vmem:[#allocation3 + $0xa0] sm:$0xff] }
  0x2a   :  { %644 = vmatpush.msra.mxu2 %v635_v2 }
  0x2b   :  { %812 = vmatpush.msrb.mxu3 %v931_v5  ;;  %v124_v5 = vld [vmem:[#allocation3 + $0xa8] sm:$0xff] }
  0x2c   :  { %645 = vmatpush.msra.mxu2 %v634_v4 }
  0x2d   :  { %218 = vmatmul.f32.gmra.mxu0 %v105_v35  ;;  %813 = vmatpush.msrb.mxu3 %v940_v7  ;;  %v633_v7 = vld [vmem:[%s1344_s3 + $0x48] sm:$0xff] }
  0x2e   :  { %290 = vmatmul.f32.gmra.mxu3 %v153_v36  ;;  %331 = vmatmul.f32.gmra.mxu1 %v106_v37  ;;  %v136_v36 = vld [vmem:[#allocation3 + $0x108] sm:$0xff] }
  0x2f   :  { %814 = vmatpush.msrb.mxu3 %v949_v9  ;;  %646 = vmatpush.msra.mxu2 %v633_v7  ;;  %v631_v9 = vld [vmem:[%s1344_s3 + $0x38] sm:$0xff] }
  0x31   :  { %815 = vmatpush.msrb.mxu3 %v958_v11  ;;  %647 = vmatpush.msra.mxu2 %v632_v8  ;;  %v630_v11 = vld [vmem:[%s1344_s3 + $0x30] sm:$0xff] }
  0x33   :  { %816 = vmatpush.msrb.mxu3 %v967_v13  ;;  %v158_v13 = vld [vmem:[#allocation3 + $0x1b8] sm:$0xff]  ;;  %648 = vmatpush.msra.mxu2 %v631_v9 }
  0x35   :  { %221 = vmatmul.f32.gmra.mxu0 %v107_v38  ;;  %817 = vmatpush.msrb.mxu3 %v976_v15  ;;  %v628_v15 = vld [vmem:[%s1344_s3 + $0x20] sm:$0xff] }
  0x36   :  { %293 = vmatmul.f32.gmra.mxu3 %v155_v39  ;;  %334 = vmatmul.f32.gmra.mxu1 %v108_v40 }
  0x37   :  { %818 = vmatpush.msrb.mxu3 %v985_v17  ;;  %649 = vmatpush.msra.mxu2 %v630_v11  ;;  %v627_v17 = vld [vmem:[%s1344_s3 + $0x18] sm:$0xff] }
  0x39   :  { %819 = vmatpush.msrb.mxu3 %v189_v19  ;;  %650 = vmatpush.msra.mxu2 %v629_v14  ;;  %v160_v19 = vld [vmem:[#allocation3 + $0x1c8] sm:$0xff] }
  0x3b   :  { %820 = vmatpush.msrb.mxu3 %v188_v21  ;;  %651 = vmatpush.msra.mxu2 %v628_v15  ;;  %v625_v21 = vld [vmem:[%s1344_s3 + $0x8] sm:$0xff] }
  0x3d   :  { %224 = vmatmul.f32.gmra.mxu0 %v109_v41  ;;  %821 = vmatpush.msrb.mxu3 %v187_v23  ;;  %v129_v23 = vld [vmem:[#allocation3 + $0xd0] sm:$0xff] }
  0x3e   :  { %296 = vmatmul.f32.gmra.mxu3 %v157_v42  ;;  %337 = vmatmul.f32.gmra.mxu1 %v110_v43  ;;  %v137_v42 = vld [vmem:[#allocation3 + $0x110] sm:$0xff] }
  0x3f   :  { %822 = vmatpush.msrb.mxu3 %v186_v25  ;;  %652 = vmatpush.msra.mxu2 %v627_v17  ;;  %v162_v25 = vld [vmem:[#allocation3 + $0x1d8] sm:$0xff] }
  0x41   :  { %823 = vmatpush.msrb.mxu3 %v185_v27  ;;  %653 = vmatpush.msra.mxu2 %v626_v20  ;;  %v132_v27 = vld [vmem:[#allocation3 + $0xe8] sm:$0xff] }
  0x43   :  { %824 = vmatpush.msrb.mxu3 %v184_v29  ;;  %654 = vmatpush.msra.mxu2 %v625_v21  ;;  %v133_v29 = vld [vmem:[#allocation3 + $0xf0] sm:$0xff] }
  0x45   :  { %227 = vmatmul.f32.gmra.mxu0 %v111_v44  ;;  %825 = vmatpush.msrb.mxu3 %v183_v31  ;;  %v166_v31 = vld [vmem:[#allocation3 + $0x1f8] sm:$0xff] }
  0x46   :  { %299 = vmatmul.f32.gmra.mxu3 %v159_v45  ;;  %340 = vmatmul.f32.gmra.mxu1 %v112_v46  ;;  %v138_v44 = vld [vmem:[#allocation3 + $0x118] sm:$0xff] }
  0x47   :  { %826 = vmatpush.msra.mxu3 %v639_v59  ;;  %655 = vmatpush.msra.mxu2 %v624_v22 }
  0x49   :  { %827 = vmatpush.msra.mxu3 %v638_v60  ;;  %v142_v60 = vld [vmem:[#allocation3 + $0x138] sm:$0xff] }
  0x4b   :  { %828 = vmatpush.msra.mxu3 %v637_v0 }
  0x4d   :  { %230 = vmatmul.f32.gmra.mxu0 %v113_v47  ;;  %829 = vmatpush.msra.mxu3 %v636_v1 }
  0x4e   :  { %302 = vmatmul.f32.gmra.mxu3 %v161_v48  ;;  %343 = vmatmul.f32.gmra.mxu1 %v114_v49 }
  0x4f   :  { %830 = vmatpush.msra.mxu3 %v635_v2  ;;  %v143_v2 = vld [vmem:[#allocation3 + $0x140] sm:$0xff] }
  0x51   :  { %831 = vmatpush.msra.mxu3 %v634_v4  ;;  %v144_v4 = vld [vmem:[#allocation3 + $0x148] sm:$0xff] }
  0x53   :  { %832 = vmatpush.msra.mxu3 %v633_v7 }
  0x55   :  { %233 = vmatmul.f32.gmra.mxu0 %v115_v50  ;;  %833 = vmatpush.msra.mxu3 %v632_v8  ;;  %v139_v50 = vld [vmem:[#allocation3 + $0x120] sm:$0xff] }
  0x56   :  { %305 = vmatmul.f32.gmra.mxu3 %v163_v51  ;;  %346 = vmatmul.f32.gmra.mxu1 %v116_v52  ;;  %v140_v52 = vld [vmem:[#allocation3 + $0x128] sm:$0xff] }
  0x57   :  { %834 = vmatpush.msra.mxu3 %v631_v9 }
  0x59   :  { %835 = vmatpush.msra.mxu3 %v630_v11 }
  0x5b   :  { %836 = vmatpush.msra.mxu3 %v629_v14 }
  0x5d   :  { %236 = vmatmul.f32.gmra.mxu0 %v117_v53  ;;  %837 = vmatpush.msra.mxu3 %v628_v15 }
  0x5e   :  { %308 = vmatmul.f32.gmra.mxu3 %v165_v54  ;;  %349 = vmatmul.f32.gmra.mxu1 %v118_v55 }
  0x5f   :  { %838 = vmatpush.msra.mxu3 %v627_v17 }
  0x61   :  { %839 = vmatpush.msra.mxu3 %v626_v20  ;;  %v148_v20 = vld [vmem:[#allocation3 + $0x168] sm:$0xff] }
  0x63   :  { %840 = vmatpush.msra.mxu3 %v625_v21 }
  0x65   :  { %239 = vmatmul.f32.gmra.mxu0 %v119_v56  ;;  %841 = vmatpush.msra.mxu3 %v624_v22 }
  0x66   :  { %352 = vmatmul.f32.gmra.mxu1 %v120_v57  ;;  %400 = vmatmul.f32.vlgmr.msrb.gmra.mxu3 %v152_v58  ;;  %v141_v58 = vld [vmem:[#allocation3 + $0x130] sm:$0xff] }
  0x6d   :  { %242 = vmatmul.f32.gmra.mxu0 %v121_v61 }
  0x6e   :  { %355 = vmatmul.f32.gmra.mxu1 %v122_v62  ;;  %403 = vmatmul.f32.gmra.mxu3 %v154_v63 }
  0x75   :  { %245 = vmatmul.f32.gmra.mxu0 %v123_v3 }
  0x76   :  { %358 = vmatmul.f32.gmra.mxu1 %v124_v5  ;;  %406 = vmatmul.f32.gmra.mxu3 %v156_v6 }
  0x7d   :  { %248 = vmatmul.f32.gmra.mxu0 %v125_v10  ;;  %v145_v10 = vld [vmem:[#allocation3 + $0x150] sm:$0xff] }
  0x7e   :  { %361 = vmatmul.f32.gmra.mxu1 %v126_v12  ;;  %409 = vmatmul.f32.gmra.mxu3 %v158_v13  ;;  %v146_v12 = vld [vmem:[#allocation3 + $0x158] sm:$0xff] }
  0x85   :  { %251 = vmatmul.f32.gmra.mxu0 %v127_v16 }
  0x86   :  { %364 = vmatmul.f32.gmra.mxu1 %v128_v18  ;;  %412 = vmatmul.f32.gmra.mxu3 %v160_v19  ;;  %v147_v18 = vld [vmem:[#allocation3 + $0x160] sm:$0xff] }
  0x8d   :  { %254 = vmatmul.f32.gmra.mxu0 %v129_v23 }
  0x8e   :  { %367 = vmatmul.f32.gmra.mxu1 %v130_v24  ;;  %415 = vmatmul.f32.gmra.mxu3 %v162_v25 }
  0x95   :  { %257 = vmatmul.f32.gmra.mxu0 %v131_v26  ;;  %v149_v26 = vld [vmem:[#allocation3 + $0x170] sm:$0xff] }
  0x96   :  { %370 = vmatmul.f32.gmra.mxu1 %v132_v27  ;;  %418 = vmatmul.f32.gmra.mxu3 %v164_v28  ;;  %v150_v28 = vld [vmem:[#allocation3 + $0x178] sm:$0xff] }
  0x9d   :  { %260 = vmatmul.f32.gmra.mxu0 %v133_v29 }
  0x9e   :  { %373 = vmatmul.f32.gmra.mxu1 %v134_v30  ;;  %421 = vmatmul.f32.gmra.mxu3 %v166_v31 }
  0xa2   :  { %v216_v32 = vpop.f32.mrf.mxu0 }
  0xa3   :  { %v329_v35 = vpop.f32.mrf.mxu1 }
  0xa4   :  { %v330_v37 = vadd.f32 %v329_v35, %v216_v32 }
  0xa5   :  { %263 = vmatmul.f32.gmra.mxu0 %v135_v33 }
  0xa6   :  { %376 = vmatmul.f32.gmra.mxu1 %v136_v36  ;;  %v528_v38 = vadd.f32 %v1091_v34, %v330_v37 }
  0xa8   :  { %v560_v39 = vmax.f32 %v528_v38, 0.0 }
  0xa9   :  { %v1094_v40 = vpop.f32.mrf.mxu3 }
  0xaa   :  { %592 = vst [vmem:[%s1345_s4] sm:$0xff] %v560_v39  ;;  %656 = vmatmul.f32.vlgmr.msra.gmra.mxu2 %v560_v39  ;;  %v219_v41 = vpop.f32.mrf.mxu0 }
  0xab   :  { %v332_v43 = vpop.f32.mrf.mxu1 }
  0xac   :  { %v333_v45 = vadd.f32 %v332_v43, %v219_v41 }
  0xad   :  { %266 = vmatmul.f32.gmra.mxu0 %v137_v42 }
  0xae   :  { %379 = vmatmul.f32.gmra.mxu1 %v138_v44  ;;  %v529_v46 = vadd.f32 %v1091_v34, %v333_v45 }
  0xb0   :  { %v561_v47 = vmax.f32 %v529_v46, 0.0 }
  0xb1   :  { %v1100_v48 = vpop.f32.mrf.mxu3 }
  0xb2   :  { %593 = vst [vmem:[%s1345_s4 + $0x8] sm:$0xff] %v561_v47  ;;  %659 = vmatmul.f32.gmra.mxu2 %v561_v47  ;;  %v222_v49 = vpop.f32.mrf.mxu0 }
  0xb3   :  { %v335_v51 = vpop.f32.mrf.mxu1 }
  0xb4   :  { %v336_v53 = vadd.f32 %v335_v51, %v222_v49 }
  0xb5   :  { %269 = vmatmul.f32.gmra.mxu0 %v139_v50 }
  0xb6   :  { %382 = vmatmul.f32.gmra.mxu1 %v140_v52  ;;  %v530_v54 = vadd.f32 %v1091_v34, %v336_v53 }
  0xb8   :  { %v562_v55 = vmax.f32 %v530_v54, 0.0 }
  0xb9   :  { %v1106_v56 = vpop.f32.mrf.mxu3 }
  0xba   :  { %594 = vst [vmem:[%s1345_s4 + $0x10] sm:$0xff] %v562_v55  ;;  %662 = vmatmul.f32.gmra.mxu2 %v562_v55  ;;  %v225_v57 = vpop.f32.mrf.mxu0 }
  0xbb   :  { %v338_v59 = vpop.f32.mrf.mxu1 }
  0xbc   :  { %v339_v61 = vadd.f32 %v338_v59, %v225_v57 }
  0xbd   :  { %272 = vmatmul.f32.gmra.mxu0 %v141_v58 }
  0xbe   :  { %385 = vmatmul.f32.gmra.mxu1 %v142_v60  ;;  %v531_v62 = vadd.f32 %v1091_v34, %v339_v61 }
  0xc0   :  { %v563_v63 = vmax.f32 %v531_v62, 0.0 }
  0xc1   :  { %v1112_v0 = vpop.f32.mrf.mxu3 }
  0xc2   :  { %595 = vst [vmem:[%s1345_s4 + $0x18] sm:$0xff] %v563_v63  ;;  %665 = vmatmul.f32.gmra.mxu2 %v563_v63  ;;  %v228_v1 = vpop.f32.mrf.mxu0 }
  0xc3   :  { %v341_v3 = vpop.f32.mrf.mxu1 }
  0xc4   :  { %v342_v5 = vadd.f32 %v341_v3, %v228_v1 }
  0xc5   :  { %275 = vmatmul.f32.gmra.mxu0 %v143_v2 }
  0xc6   :  { %388 = vmatmul.f32.gmra.mxu1 %v144_v4  ;;  %v532_v6 = vadd.f32 %v1091_v34, %v342_v5 }
  0xc8   :  { %v564_v7 = vmax.f32 %v532_v6, 0.0 }
  0xc9   :  { %v1118_v8 = vpop.f32.mrf.mxu3 }
  0xca   :  { %596 = vst [vmem:[%s1345_s4 + $0x20] sm:$0xff] %v564_v7  ;;  %668 = vmatmul.f32.gmra.mxu2 %v564_v7  ;;  %v231_v9 = vpop.f32.mrf.mxu0 }
  0xcb   :  { %v344_v11 = vpop.f32.mrf.mxu1 }
  0xcc   :  { %v345_v13 = vadd.f32 %v344_v11, %v231_v9 }
  0xcd   :  { %278 = vmatmul.f32.gmra.mxu0 %v145_v10 }
  0xce   :  { %391 = vmatmul.f32.gmra.mxu1 %v146_v12  ;;  %v533_v14 = vadd.f32 %v1091_v34, %v345_v13 }
  0xd0   :  { %v565_v15 = vmax.f32 %v533_v14, 0.0 }
  0xd1   :  { %v1124_v16 = vpop.f32.mrf.mxu3 }
  0xd2   :  { %597 = vst [vmem:[%s1345_s4 + $0x28] sm:$0xff] %v565_v15  ;;  %671 = vmatmul.f32.gmra.mxu2 %v565_v15  ;;  %v234_v17 = vpop.f32.mrf.mxu0 }
  0xd3   :  { %v347_v19 = vpop.f32.mrf.mxu1 }
  0xd4   :  { %v348_v21 = vadd.f32 %v347_v19, %v234_v17 }
  0xd5   :  { %281 = vmatmul.f32.gmra.mxu0 %v147_v18 }
  0xd6   :  { %394 = vmatmul.f32.gmra.mxu1 %v148_v20  ;;  %v534_v22 = vadd.f32 %v1091_v34, %v348_v21 }
  0xd8   :  { %v566_v23 = vmax.f32 %v534_v22, 0.0 }
  0xd9   :  { %v1130_v24 = vpop.f32.mrf.mxu3 }
  0xda   :  { %598 = vst [vmem:[%s1345_s4 + $0x30] sm:$0xff] %v566_v23  ;;  %674 = vmatmul.f32.gmra.mxu2 %v566_v23  ;;  %v237_v25 = vpop.f32.mrf.mxu0 }
  0xdb   :  { %v350_v27 = vpop.f32.mrf.mxu1 }
  0xdc   :  { %v351_v29 = vadd.f32 %v350_v27, %v237_v25 }
  0xdd   :  { %284 = vmatmul.f32.gmra.mxu0 %v149_v26 }
  0xde   :  { %397 = vmatmul.f32.gmra.mxu1 %v150_v28  ;;  %v535_v30 = vadd.f32 %v1091_v34, %v351_v29 }
  0xe0   :  { %v567_v31 = vmax.f32 %v535_v30, 0.0 }
  0xe1   :  { %v1136_v32 = vpop.f32.mrf.mxu3 }
  0xe2   :  { %599 = vst [vmem:[%s1345_s4 + $0x38] sm:$0xff] %v567_v31  ;;  %677 = vmatmul.f32.gmra.mxu2 %v567_v31  ;;  %v240_v33 = vpop.f32.mrf.mxu0 }
  0xe3   :  { %v353_v35 = vpop.f32.mrf.mxu1 }
  0xe4   :  { %v354_v36 = vadd.f32 %v353_v35, %v240_v33 }
  0xe6   :  { %v536_v37 = vadd.f32 %v1091_v34, %v354_v36 }
  0xe8   :  { %v568_v38 = vmax.f32 %v536_v37, 0.0 }
  0xe9   :  { %v401_v39 = vpop.f32.mrf.mxu3 }
  0xea   :  { %v402_v41 = vadd.f32 %v401_v39, %v1094_v40  ;;  %600 = vst [vmem:[%s1345_s4 + $0x40] sm:$0xff] %v568_v38  ;;  %680 = vmatmul.f32.gmra.mxu2 %v568_v38  ;;  %v243_v42 = vpop.f32.mrf.mxu0 }
  0xeb   :  { %v356_v43 = vpop.f32.mrf.mxu1 }
  0xec   :  { %v552_v44 = vadd.f32 %v1091_v34, %v402_v41  ;;  %v357_v45 = vadd.f32 %v356_v43, %v243_v42 }
  0xee   :  { %v584_v46 = vmax.f32 %v552_v44, 0.0  ;;  %v537_v47 = vadd.f32 %v1091_v34, %v357_v45 }
  0xf0   :  { %616 = vst [vmem:[%s1345_s4 + $0xc0] sm:$0xff] %v584_v46  ;;  %728 = vmatmul.f32.vlgmr.msra.gmra.mxu3 %v584_v46  ;;  %v569_v49 = vmax.f32 %v537_v47, 0.0 }
  0xf1   :  { %v404_v40 = vpop.f32.mrf.mxu3 }
  0xf2   :  { %v405_v50 = vadd.f32 %v404_v40, %v1100_v48  ;;  %601 = vst [vmem:[%s1345_s4 + $0x48] sm:$0xff] %v569_v49  ;;  %683 = vmatmul.f32.gmra.mxu2 %v569_v49  ;;  %v246_v51 = vpop.f32.mrf.mxu0 }
  0xf3   :  { %v359_v52 = vpop.f32.mrf.mxu1 }
  0xf4   :  { %v360_v53 = vadd.f32 %v359_v52, %v246_v51  ;;  %v553_v54 = vadd.f32 %v1091_v34, %v405_v50 }
  0xf6   :  { %v585_v55 = vmax.f32 %v553_v54, 0.0  ;;  %v538_v57 = vadd.f32 %v1091_v34, %v360_v53 }
  0xf8   :  { %617 = vst [vmem:[%s1345_s4 + $0xc8] sm:$0xff] %v585_v55  ;;  %731 = vmatmul.f32.gmra.mxu3 %v585_v55  ;;  %v570_v58 = vmax.f32 %v538_v57, 0.0 }
  0xf9   :  { %v407_v48 = vpop.f32.mrf.mxu3 }
  0xfa   :  { %v408_v59 = vadd.f32 %v407_v48, %v1106_v56  ;;  %602 = vst [vmem:[%s1345_s4 + $0x50] sm:$0xff] %v570_v58  ;;  %686 = vmatmul.f32.gmra.mxu2 %v570_v58  ;;  %v249_v60 = vpop.f32.mrf.mxu0 }
  0xfb   :  { %v362_v61 = vpop.f32.mrf.mxu1 }
  0xfc   :  { %v363_v62 = vadd.f32 %v362_v61, %v249_v60  ;;  %v554_v63 = vadd.f32 %v1091_v34, %v408_v59 }
  0xfe   :  { %v586_v1 = vmax.f32 %v554_v63, 0.0  ;;  %v539_v2 = vadd.f32 %v1091_v34, %v363_v62 }
 0x100   :  { %618 = vst [vmem:[%s1345_s4 + $0xd0] sm:$0xff] %v586_v1  ;;  %734 = vmatmul.f32.gmra.mxu3 %v586_v1  ;;  %v571_v3 = vmax.f32 %v539_v2, 0.0 }
 0x101   :  { %v410_v56 = vpop.f32.mrf.mxu3 }
 0x102   :  { %v411_v4 = vadd.f32 %v410_v56, %v1112_v0  ;;  %603 = vst [vmem:[%s1345_s4 + $0x58] sm:$0xff] %v571_v3  ;;  %689 = vmatmul.f32.gmra.mxu2 %v571_v3  ;;  %v252_v5 = vpop.f32.mrf.mxu0 }
 0x103   :  { %v365_v6 = vpop.f32.mrf.mxu1 }
 0x104   :  { %v366_v7 = vadd.f32 %v365_v6, %v252_v5  ;;  %v555_v9 = vadd.f32 %v1091_v34, %v411_v4 }
 0x106   :  { %v587_v10 = vmax.f32 %v555_v9, 0.0  ;;  %v540_v11 = vadd.f32 %v1091_v34, %v366_v7 }
 0x108   :  { %619 = vst [vmem:[%s1345_s4 + $0xd8] sm:$0xff] %v587_v10  ;;  %737 = vmatmul.f32.gmra.mxu3 %v587_v10  ;;  %v572_v12 = vmax.f32 %v540_v11, 0.0 }
 0x109   :  { %v413_v0 = vpop.f32.mrf.mxu3 }
 0x10a   :  { %v414_v13 = vadd.f32 %v413_v0, %v1118_v8  ;;  %604 = vst [vmem:[%s1345_s4 + $0x60] sm:$0xff] %v572_v12  ;;  %692 = vmatmul.f32.gmra.mxu2 %v572_v12  ;;  %v255_v14 = vpop.f32.mrf.mxu0 }
 0x10b   :  { %v368_v15 = vpop.f32.mrf.mxu1 }
 0x10c   :  { %v369_v17 = vadd.f32 %v368_v15, %v255_v14  ;;  %v556_v18 = vadd.f32 %v1091_v34, %v414_v13 }
 0x10e   :  { %v588_v19 = vmax.f32 %v556_v18, 0.0  ;;  %v541_v20 = vadd.f32 %v1091_v34, %v369_v17 }
 0x110   :  { %620 = vst [vmem:[%s1345_s4 + $0xe0] sm:$0xff] %v588_v19  ;;  %740 = vmatmul.f32.gmra.mxu3 %v588_v19  ;;  %v573_v21 = vmax.f32 %v541_v20, 0.0 }
 0x111   :  { %v416_v8 = vpop.f32.mrf.mxu3 }
 0x112   :  { %v417_v22 = vadd.f32 %v416_v8, %v1124_v16  ;;  %605 = vst [vmem:[%s1345_s4 + $0x68] sm:$0xff] %v573_v21  ;;  %695 = vmatmul.f32.gmra.mxu2 %v573_v21  ;;  %v258_v23 = vpop.f32.mrf.mxu0 }
 0x113   :  { %v371_v25 = vpop.f32.mrf.mxu1 }
 0x114   :  { %v372_v26 = vadd.f32 %v371_v25, %v258_v23  ;;  %v557_v27 = vadd.f32 %v1091_v34, %v417_v22 }
 0x116   :  { %v589_v28 = vmax.f32 %v557_v27, 0.0  ;;  %v542_v29 = vadd.f32 %v1091_v34, %v372_v26 }
 0x118   :  { %621 = vst [vmem:[%s1345_s4 + $0xe8] sm:$0xff] %v589_v28  ;;  %743 = vmatmul.f32.gmra.mxu3 %v589_v28  ;;  %v574_v30 = vmax.f32 %v542_v29, 0.0 }
 0x119   :  { %v419_v16 = vpop.f32.mrf.mxu3 }
 0x11a   :  { %v420_v31 = vadd.f32 %v419_v16, %v1130_v24  ;;  %606 = vst [vmem:[%s1345_s4 + $0x70] sm:$0xff] %v574_v30  ;;  %698 = vmatmul.f32.gmra.mxu2 %v574_v30  ;;  %v261_v33 = vpop.f32.mrf.mxu0 }
 0x11b   :  { %v374_v35 = vpop.f32.mrf.mxu1 }
 0x11c   :  { %v375_v36 = vadd.f32 %v374_v35, %v261_v33  ;;  %v558_v37 = vadd.f32 %v1091_v34, %v420_v31 }
 0x11e   :  { %v590_v38 = vmax.f32 %v558_v37, 0.0  ;;  %v543_v39 = vadd.f32 %v1091_v34, %v375_v36 }
 0x120   :  { %622 = vst [vmem:[%s1345_s4 + $0xf0] sm:$0xff] %v590_v38  ;;  %746 = vmatmul.f32.gmra.mxu3 %v590_v38  ;;  %v575_v41 = vmax.f32 %v543_v39, 0.0 }
 0x121   :  { %v422_v24 = vpop.f32.mrf.mxu3 }
 0x122   :  { %v423_v42 = vadd.f32 %v422_v24, %v1136_v32  ;;  %607 = vst [vmem:[%s1345_s4 + $0x78] sm:$0xff] %v575_v41  ;;  %701 = vmatmul.f32.gmra.mxu2 %v575_v41  ;;  %v264_v43 = vpop.f32.mrf.mxu0 }
 0x123   :  { %v377_v44 = vpop.f32.mrf.mxu1 }
 0x124   :  { %v378_v45 = vadd.f32 %v377_v44, %v264_v43  ;;  %v559_v46 = vadd.f32 %v1091_v34, %v423_v42 }
 0x126   :  { %v591_v47 = vmax.f32 %v559_v46, 0.0  ;;  %v544_v49 = vadd.f32 %v1091_v34, %v378_v45 }
 0x128   :  { %623 = vst [vmem:[%s1345_s4 + $0xf8] sm:$0xff] %v591_v47  ;;  %749 = vmatmul.f32.gmra.mxu3 %v591_v47  ;;  %v576_v40 = vmax.f32 %v544_v49, 0.0 }
 0x12a   :  { %608 = vst [vmem:[%s1345_s4 + $0x80] sm:$0xff] %v576_v40  ;;  %704 = vmatmul.f32.gmra.mxu2 %v576_v40  ;;  %v267_v32 = vpop.f32.mrf.mxu0 }
 0x12b   :  { %v380_v50 = vpop.f32.mrf.mxu1 }
 0x12c   :  { %v381_v51 = vadd.f32 %v380_v50, %v267_v32 }
 0x12d   :  { %v657_v52 = vpop.f32.mrf.mxu2 }
 0x12e   :  { %753 = vst [vmem:[%s1346_s5] sm:$0xff] %v657_v52  ;;  %v545_v53 = vadd.f32 %v1091_v34, %v381_v51 }
 0x130   :  { %v577_v54 = vmax.f32 %v545_v53, 0.0 }
 0x132   :  { %609 = vst [vmem:[%s1345_s4 + $0x88] sm:$0xff] %v577_v54  ;;  %707 = vmatmul.f32.gmra.mxu2 %v577_v54  ;;  %v270_v55 = vpop.f32.mrf.mxu0 }
 0x133   :  { %v383_v57 = vpop.f32.mrf.mxu1 }
 0x134   :  { %v384_v58 = vadd.f32 %v383_v57, %v270_v55 }
 0x135   :  { %v660_v48 = vpop.f32.mrf.mxu2 }
 0x136   :  { %754 = vst [vmem:[%s1346_s5 + $0x8] sm:$0xff] %v660_v48  ;;  %v546_v59 = vadd.f32 %v1091_v34, %v384_v58 }
 0x138   :  { %v578_v60 = vmax.f32 %v546_v59, 0.0 }
 0x13a   :  { %610 = vst [vmem:[%s1345_s4 + $0x90] sm:$0xff] %v578_v60  ;;  %710 = vmatmul.f32.gmra.mxu2 %v578_v60  ;;  %v273_v61 = vpop.f32.mrf.mxu0 }
 0x13b   :  { %v386_v62 = vpop.f32.mrf.mxu1 }
 0x13c   :  { %v387_v63 = vadd.f32 %v386_v62, %v273_v61 }
 0x13d   :  { %v663_v1 = vpop.f32.mrf.mxu2 }
 0x13e   :  { %755 = vst [vmem:[%s1346_s5 + $0x10] sm:$0xff] %v663_v1  ;;  %v547_v2 = vadd.f32 %v1091_v34, %v387_v63 }
 0x140   :  { %v579_v3 = vmax.f32 %v547_v2, 0.0 }
 0x142   :  { %611 = vst [vmem:[%s1345_s4 + $0x98] sm:$0xff] %v579_v3  ;;  %713 = vmatmul.f32.gmra.mxu2 %v579_v3  ;;  %v276_v56 = vpop.f32.mrf.mxu0 }
 0x143   :  { %v389_v4 = vpop.f32.mrf.mxu1 }
 0x144   :  { %v390_v5 = vadd.f32 %v389_v4, %v276_v56 }
 0x145   :  { %v666_v6 = vpop.f32.mrf.mxu2 }
 0x146   :  { %756 = vst [vmem:[%s1346_s5 + $0x18] sm:$0xff] %v666_v6  ;;  %v548_v7 = vadd.f32 %v1091_v34, %v390_v5 }
 0x148   :  { %v580_v9 = vmax.f32 %v548_v7, 0.0 }
 0x14a   :  { %612 = vst [vmem:[%s1345_s4 + $0xa0] sm:$0xff] %v580_v9  ;;  %716 = vmatmul.f32.gmra.mxu2 %v580_v9  ;;  %v279_v10 = vpop.f32.mrf.mxu0 }
 0x14b   :  { %v392_v11 = vpop.f32.mrf.mxu1 }
 0x14c   :  { %v393_v12 = vadd.f32 %v392_v11, %v279_v10 }
 0x14d   :  { %v669_v0 = vpop.f32.mrf.mxu2 }
 0x14e   :  { %757 = vst [vmem:[%s1346_s5 + $0x20] sm:$0xff] %v669_v0  ;;  %v549_v13 = vadd.f32 %v1091_v34, %v393_v12 }
 0x150   :  { %v581_v14 = vmax.f32 %v549_v13, 0.0 }
 0x152   :  { %613 = vst [vmem:[%s1345_s4 + $0xa8] sm:$0xff] %v581_v14  ;;  %719 = vmatmul.f32.gmra.mxu2 %v581_v14  ;;  %v282_v15 = vpop.f32.mrf.mxu0 }
 0x153   :  { %v395_v17 = vpop.f32.mrf.mxu1 }
 0x154   :  { %v396_v18 = vadd.f32 %v395_v17, %v282_v15 }
 0x155   :  { %v672_v19 = vpop.f32.mrf.mxu2 }
 0x156   :  { %758 = vst [vmem:[%s1346_s5 + $0x28] sm:$0xff] %v672_v19  ;;  %v550_v20 = vadd.f32 %v1091_v34, %v396_v18 }
 0x158   :  { %v582_v21 = vmax.f32 %v550_v20, 0.0 }
 0x15a   :  { %614 = vst [vmem:[%s1345_s4 + $0xb0] sm:$0xff] %v582_v21  ;;  %722 = vmatmul.f32.gmra.mxu2 %v582_v21  ;;  %v285_v8 = vpop.f32.mrf.mxu0 }
 0x15b   :  { %v398_v22 = vpop.f32.mrf.mxu1 }
 0x15c   :  { %v399_v23 = vadd.f32 %v398_v22, %v285_v8 }
 0x15d   :  { %v675_v25 = vpop.f32.mrf.mxu2 }
 0x15e   :  { %759 = vst [vmem:[%s1346_s5 + $0x30] sm:$0xff] %v675_v25  ;;  %v551_v26 = vadd.f32 %v1091_v34, %v399_v23 }
 0x160   :  { %v583_v27 = vmax.f32 %v551_v26, 0.0 }
 0x162   :  { %615 = vst [vmem:[%s1345_s4 + $0xb8] sm:$0xff] %v583_v27  ;;  %725 = vmatmul.f32.gmra.mxu2 %v583_v27 }
 0x165   :  { %v678_v28 = vpop.f32.mrf.mxu2 }
 0x166   :  { %760 = vst [vmem:[%s1346_s5 + $0x38] sm:$0xff] %v678_v28 }
 0x16d   :  { %v681_v29 = vpop.f32.mrf.mxu2 }
 0x16e   :  { %761 = vst [vmem:[%s1346_s5 + $0x40] sm:$0xff] %v681_v29 }
 0x173   :  { %v729_v30 = vpop.f32.mrf.mxu3 }
 0x174   :  { %777 = vst [vmem:[%s1346_s5 + $0xc0] sm:$0xff] %v729_v30 }
 0x175   :  { %v684_v34 = vpop.f32.mrf.mxu2 }
 0x176   :  { %762 = vst [vmem:[%s1346_s5 + $0x48] sm:$0xff] %v684_v34 }
 0x17b   :  { %v732_v16 = vpop.f32.mrf.mxu3 }
 0x17c   :  { %778 = vst [vmem:[%s1346_s5 + $0xc8] sm:$0xff] %v732_v16 }
 0x17d   :  { %v687_v31 = vpop.f32.mrf.mxu2 }
 0x17e   :  { %763 = vst [vmem:[%s1346_s5 + $0x50] sm:$0xff] %v687_v31 }
 0x183   :  { %v735_v33 = vpop.f32.mrf.mxu3 }
 0x184   :  { %779 = vst [vmem:[%s1346_s5 + $0xd0] sm:$0xff] %v735_v33 }
 0x185   :  { %v690_v35 = vpop.f32.mrf.mxu2 }
 0x186   :  { %764 = vst [vmem:[%s1346_s5 + $0x58] sm:$0xff] %v690_v35 }
 0x18b   :  { %v738_v36 = vpop.f32.mrf.mxu3 }
 0x18c   :  { %780 = vst [vmem:[%s1346_s5 + $0xd8] sm:$0xff] %v738_v36 }
 0x18d   :  { %v693_v37 = vpop.f32.mrf.mxu2 }
 0x18e   :  { %765 = vst [vmem:[%s1346_s5 + $0x60] sm:$0xff] %v693_v37 }
 0x193   :  { %v741_v38 = vpop.f32.mrf.mxu3 }
 0x194   :  { %781 = vst [vmem:[%s1346_s5 + $0xe0] sm:$0xff] %v741_v38 }
 0x195   :  { %v696_v39 = vpop.f32.mrf.mxu2 }
 0x196   :  { %766 = vst [vmem:[%s1346_s5 + $0x68] sm:$0xff] %v696_v39 }
 0x19b   :  { %v744_v41 = vpop.f32.mrf.mxu3 }
 0x19c   :  { %782 = vst [vmem:[%s1346_s5 + $0xe8] sm:$0xff] %v744_v41 }
 0x19d   :  { %v699_v24 = vpop.f32.mrf.mxu2 }
 0x19e   :  { %767 = vst [vmem:[%s1346_s5 + $0x70] sm:$0xff] %v699_v24 }
 0x1a3   :  { %v747_v42 = vpop.f32.mrf.mxu3 }
 0x1a4   :  { %783 = vst [vmem:[%s1346_s5 + $0xf0] sm:$0xff] %v747_v42 }
 0x1a5   :  { %v702_v43 = vpop.f32.mrf.mxu2 }
 0x1a6   :  { %768 = vst [vmem:[%s1346_s5 + $0x78] sm:$0xff] %v702_v43 }
 0x1ab   :  { %v750_v44 = vpop.f32.mrf.mxu3 }
 0x1ac   :  { %784 = vst [vmem:[%s1346_s5 + $0xf8] sm:$0xff] %v750_v44 }
 0x1ad   :  { %v705_v45 = vpop.f32.mrf.mxu2 }
 0x1ae   :  { %769 = vst [vmem:[%s1346_s5 + $0x80] sm:$0xff] %v705_v45 }
 0x1b5   :  { %v708_v46 = vpop.f32.mrf.mxu2 }
 0x1b6   :  { %770 = vst [vmem:[%s1346_s5 + $0x88] sm:$0xff] %v708_v46 }
 0x1bd   :  { %v711_v47 = vpop.f32.mrf.mxu2 }
 0x1be   :  { %771 = vst [vmem:[%s1346_s5 + $0x90] sm:$0xff] %v711_v47 }
 0x1c5   :  { %v714_v49 = vpop.f32.mrf.mxu2 }
 0x1c6   :  { %772 = vst [vmem:[%s1346_s5 + $0x98] sm:$0xff] %v714_v49 }
 0x1cd   :  { %v717_v40 = vpop.f32.mrf.mxu2 }
 0x1ce   :  { %773 = vst [vmem:[%s1346_s5 + $0xa0] sm:$0xff] %v717_v40 }
 0x1d5   :  { %v720_v32 = vpop.f32.mrf.mxu2 }
 0x1d6   :  { %774 = vst [vmem:[%s1346_s5 + $0xa8] sm:$0xff] %v720_v32 }
 0x1dd   :  { %v723_v50 = vpop.f32.mrf.mxu2 }
 0x1de   :  { %775 = vst [vmem:[%s1346_s5 + $0xb0] sm:$0xff] %v723_v50 }
 0x1e5   :  { %v726_v51 = vpop.f32.mrf.mxu2 }
 0x1e6   :  { %776 = vst [vmem:[%s1346_s5 + $0xb8] sm:$0xff] %v726_v51 }
 0x1e7   :  { %793 = vsyncpa [#allocation4], 1 }

// kernel: gcn_model_forward.8
= control target key start
LH: loop header
LB: loop body
LE: loop exit
PB: predicated region body
PF: predicated region fallthrough
CT: control target
= control target key end

     0   :  { %s1514_s1 = inlined_call_operand.vmem [shape: f32[256,128], index: 1, kind: input, shape index: {}]   ;;  %s1515_s0 = inlined_call_operand.vmem [shape: f32[256,256], index: 0, kind: input, shape index: {}]   ;;  %s1516_s2 = inlined_call_operand.vmem [shape: f32[1,128], index: 2, kind: input, shape index: {}]   ;;  %s1517_s4 = inlined_call_operand.vmem [shape: f32[128,128], index: 4, kind: input, shape index: {}]   ;;  %s1518_s3 = inlined_call_operand.vmem [shape: f32[256,128], index: 3, kind: input, shape index: {}]   ;;  %s1519_s5 = inlined_call_operand.vmem [shape: f32[256,128], index: 5, kind: output, shape index: {}]  }
   0x1   :  { %v167_v0 = vld [vmem:[%s1514_s1 + $0x78] sm:$0xff]  ;;  %v166_v2 = vld [vmem:[%s1514_s1 + $0x70] sm:$0xff]  ;;  %v165_v4 = vld [vmem:[%s1514_s1 + $0x68] sm:$0xff] }
   0x2   :  { %v891_v1 = vld [vmem:[%s1514_s1 + $0xf8] sm:$0xff]  ;;  %184 = vmatpush.msra.mxu0 %v167_v0  ;;  %806 = vmatpush.msra.mxu3 %v167_v0  ;;  %v899_v3 = vld [vmem:[%s1514_s1 + $0xf0] sm:$0xff]  ;;  %v908_v5 = vld [vmem:[%s1514_s1 + $0xe8] sm:$0xff] }
   0x3   :  { %297 = vmatpush.msra.mxu1 %v891_v1  ;;  %v164_v6 = vld [vmem:[%s1514_s1 + $0x60] sm:$0xff]  ;;  %v163_v8 = vld [vmem:[%s1514_s1 + $0x58] sm:$0xff]  ;;  %v162_v10 = vld [vmem:[%s1514_s1 + $0x50] sm:$0xff] }
   0x4   :  { %185 = vmatpush.msra.mxu0 %v166_v2  ;;  %807 = vmatpush.msra.mxu3 %v166_v2  ;;  %v917_v7 = vld [vmem:[%s1514_s1 + $0xe0] sm:$0xff]  ;;  %v926_v9 = vld [vmem:[%s1514_s1 + $0xd8] sm:$0xff]  ;;  %v935_v11 = vld [vmem:[%s1514_s1 + $0xd0] sm:$0xff] }
   0x5   :  { %298 = vmatpush.msra.mxu1 %v899_v3  ;;  %v161_v12 = vld [vmem:[%s1514_s1 + $0x48] sm:$0xff]  ;;  %v160_v14 = vld [vmem:[%s1514_s1 + $0x40] sm:$0xff]  ;;  %v159_v16 = vld [vmem:[%s1514_s1 + $0x38] sm:$0xff] }
   0x6   :  { %186 = vmatpush.msra.mxu0 %v165_v4  ;;  %808 = vmatpush.msra.mxu3 %v165_v4  ;;  %v944_v13 = vld [vmem:[%s1514_s1 + $0xc8] sm:$0xff]  ;;  %v953_v15 = vld [vmem:[%s1514_s1 + $0xc0] sm:$0xff]  ;;  %v962_v17 = vld [vmem:[%s1514_s1 + $0xb8] sm:$0xff] }
   0x7   :  { %299 = vmatpush.msra.mxu1 %v908_v5  ;;  %v158_v18 = vld [vmem:[%s1514_s1 + $0x30] sm:$0xff]  ;;  %v157_v20 = vld [vmem:[%s1514_s1 + $0x28] sm:$0xff]  ;;  %v156_v22 = vld [vmem:[%s1514_s1 + $0x20] sm:$0xff] }
   0x8   :  { %187 = vmatpush.msra.mxu0 %v164_v6  ;;  %809 = vmatpush.msra.mxu3 %v164_v6  ;;  %v971_v19 = vld [vmem:[%s1514_s1 + $0xb0] sm:$0xff]  ;;  %v173_v21 = vld [vmem:[%s1514_s1 + $0xa8] sm:$0xff]  ;;  %v172_v23 = vld [vmem:[%s1514_s1 + $0xa0] sm:$0xff] }
   0x9   :  { %300 = vmatpush.msra.mxu1 %v917_v7  ;;  %v155_v24 = vld [vmem:[%s1514_s1 + $0x18] sm:$0xff]  ;;  %v154_v26 = vld [vmem:[%s1514_s1 + $0x10] sm:$0xff]  ;;  %v153_v28 = vld [vmem:[%s1514_s1 + $0x8] sm:$0xff] }
   0xa   :  { %188 = vmatpush.msra.mxu0 %v163_v8  ;;  %810 = vmatpush.msra.mxu3 %v163_v8  ;;  %v171_v25 = vld [vmem:[%s1514_s1 + $0x98] sm:$0xff]  ;;  %v170_v27 = vld [vmem:[%s1514_s1 + $0x90] sm:$0xff]  ;;  %v169_v29 = vld [vmem:[%s1514_s1 + $0x88] sm:$0xff] }
   0xb   :  { %301 = vmatpush.msra.mxu1 %v926_v9  ;;  %v152_v30 = vld [vmem:[%s1514_s1] sm:$0xff]  ;;  %v89_v34 = vld [vmem:[%s1515_s0 + $0x8] sm:$0xff]  ;;  %v90_v35 = vld [vmem:[%s1515_s0 + $0x10] sm:$0xff] }
   0xc   :  { %189 = vmatpush.msra.mxu0 %v162_v10  ;;  %811 = vmatpush.msra.mxu3 %v162_v10  ;;  %v168_v31 = vld [vmem:[%s1514_s1 + $0x80] sm:$0xff]  ;;  %v138_v36 = vld [vmem:[%s1515_s0 + $0x190] sm:$0xff]  ;;  %v91_v37 = vld [vmem:[%s1515_s0 + $0x18] sm:$0xff] }
   0xd   :  { %302 = vmatpush.msra.mxu1 %v935_v11  ;;  %v88_v32 = vld [vmem:[%s1515_s0] sm:$0xff]  ;;  %v93_v40 = vld [vmem:[%s1515_s0 + $0x28] sm:$0xff]  ;;  %v94_v41 = vld [vmem:[%s1515_s0 + $0x30] sm:$0xff] }
   0xe   :  { %190 = vmatpush.msra.mxu0 %v161_v12  ;;  %812 = vmatpush.msra.mxu3 %v161_v12  ;;  %v136_v33 = vld [vmem:[%s1515_s0 + $0x180] sm:$0xff]  ;;  %v142_v42 = vld [vmem:[%s1515_s0 + $0x1b0] sm:$0xff]  ;;  %v95_v43 = vld [vmem:[%s1515_s0 + $0x38] sm:$0xff] }
   0xf   :  { %303 = vmatpush.msra.mxu1 %v944_v13  ;;  %v92_v38 = vld [vmem:[%s1515_s0 + $0x20] sm:$0xff]  ;;  %v97_v46 = vld [vmem:[%s1515_s0 + $0x48] sm:$0xff]  ;;  %v98_v47 = vld [vmem:[%s1515_s0 + $0x50] sm:$0xff] }
  0x10   :  { %191 = vmatpush.msra.mxu0 %v160_v14  ;;  %813 = vmatpush.msra.mxu3 %v160_v14  ;;  %v140_v39 = vld [vmem:[%s1515_s0 + $0x1a0] sm:$0xff]  ;;  %v146_v48 = vld [vmem:[%s1515_s0 + $0x1d0] sm:$0xff]  ;;  %v99_v49 = vld [vmem:[%s1515_s0 + $0x58] sm:$0xff] }
  0x11   :  { %304 = vmatpush.msra.mxu1 %v953_v15  ;;  %v96_v44 = vld [vmem:[%s1515_s0 + $0x40] sm:$0xff]  ;;  %v101_v52 = vld [vmem:[%s1515_s0 + $0x68] sm:$0xff]  ;;  %v102_v53 = vld [vmem:[%s1515_s0 + $0x70] sm:$0xff] }
  0x12   :  { %192 = vmatpush.msra.mxu0 %v159_v16  ;;  %814 = vmatpush.msra.mxu3 %v159_v16  ;;  %v144_v45 = vld [vmem:[%s1515_s0 + $0x1c0] sm:$0xff]  ;;  %v150_v54 = vld [vmem:[%s1515_s0 + $0x1f0] sm:$0xff]  ;;  %v103_v55 = vld [vmem:[%s1515_s0 + $0x78] sm:$0xff] }
  0x13   :  { %305 = vmatpush.msra.mxu1 %v962_v17  ;;  %v100_v50 = vld [vmem:[%s1515_s0 + $0x60] sm:$0xff]  ;;  %v105_v57 = vld [vmem:[%s1515_s0 + $0x88] sm:$0xff]  ;;  %v656_v59 = vld [vmem:[%s1517_s4 + $0x78] sm:$0xff] }
  0x14   :  { %193 = vmatpush.msra.mxu0 %v158_v18  ;;  %815 = vmatpush.msra.mxu3 %v158_v18  ;;  %v148_v51 = vld [vmem:[%s1515_s0 + $0x1e0] sm:$0xff]  ;;  %v137_v58 = vld [vmem:[%s1515_s0 + $0x188] sm:$0xff]  ;;  %v106_v60 = vld [vmem:[%s1515_s0 + $0x90] sm:$0xff] }
  0x15   :  { %306 = vmatpush.msra.mxu1 %v971_v19  ;;  %v104_v56 = vld [vmem:[%s1515_s0 + $0x80] sm:$0xff]  ;;  %657 = vmatpush.msra.mxu2 %v656_v59  ;;  %v107_v61 = vld [vmem:[%s1515_s0 + $0x98] sm:$0xff]  ;;  %v655_v63 = vld [vmem:[%s1517_s4 + $0x70] sm:$0xff] }
  0x16   :  { %194 = vmatpush.msra.mxu0 %v157_v20  ;;  %816 = vmatpush.msra.mxu3 %v157_v20  ;;  %v139_v62 = vld [vmem:[%s1515_s0 + $0x198] sm:$0xff]  ;;  %v654_v0 = vld [vmem:[%s1517_s4 + $0x68] sm:$0xff]  ;;  %v108_v2 = vld [vmem:[%s1515_s0 + $0xa0] sm:$0xff] }
  0x17   :  { %307 = vmatpush.msra.mxu1 %v173_v21  ;;  %658 = vmatpush.msra.mxu2 %v655_v63  ;;  %v109_v4 = vld [vmem:[%s1515_s0 + $0xa8] sm:$0xff]  ;;  %v651_v6 = vld [vmem:[%s1517_s4 + $0x50] sm:$0xff]  ;;  %v649_v8 = vld [vmem:[%s1517_s4 + $0x40] sm:$0xff] }
  0x18   :  { %195 = vmatpush.msra.mxu0 %v156_v22  ;;  %817 = vmatpush.msra.mxu3 %v156_v22  ;;  %v648_v10 = vld [vmem:[%s1517_s4 + $0x38] sm:$0xff]  ;;  %v646_v14 = vld [vmem:[%s1517_s4 + $0x28] sm:$0xff]  ;;  %v645_v16 = vld [vmem:[%s1517_s4 + $0x20] sm:$0xff] }
  0x19   :  { %308 = vmatpush.msra.mxu1 %v172_v23  ;;  %659 = vmatpush.msra.mxu2 %v654_v0  ;;  %v143_v12 = vld [vmem:[%s1515_s0 + $0x1b8] sm:$0xff]  ;;  %v145_v18 = vld [vmem:[%s1515_s0 + $0x1c8] sm:$0xff]  ;;  %v643_v20 = vld [vmem:[%s1517_s4 + $0x10] sm:$0xff] }
  0x1a   :  { %196 = vmatpush.msra.mxu0 %v155_v24  ;;  %818 = vmatpush.msra.mxu3 %v155_v24  ;;  %v114_v22 = vld [vmem:[%s1515_s0 + $0xd0] sm:$0xff]  ;;  %v115_v24 = vld [vmem:[%s1515_s0 + $0xd8] sm:$0xff] }
  0x1b   :  { %309 = vmatpush.msra.mxu1 %v171_v25 }
  0x1c   :  { %197 = vmatpush.msra.mxu0 %v154_v26  ;;  %819 = vmatpush.msra.mxu3 %v154_v26  ;;  %v116_v26 = vld [vmem:[%s1515_s0 + $0xe0] sm:$0xff] }
  0x1d   :  { %310 = vmatpush.msra.mxu1 %v170_v27 }
  0x1e   :  { %198 = vmatpush.msra.mxu0 %v153_v28  ;;  %820 = vmatpush.msra.mxu3 %v153_v28  ;;  %v149_v28 = vld [vmem:[%s1515_s0 + $0x1e8] sm:$0xff] }
  0x1f   :  { %311 = vmatpush.msra.mxu1 %v169_v29 }
  0x20   :  { %199 = vmatpush.msra.mxu0 %v152_v30  ;;  %821 = vmatpush.msra.mxu3 %v152_v30  ;;  %v119_v30 = vld [vmem:[%s1515_s0 + $0xf8] sm:$0xff] }
  0x21   :  { %312 = vmatpush.msra.mxu1 %v168_v31  ;;  %200 = vmatmul.f32.vlgmr.msra.gmra.mxu0 %v88_v32 }
  0x22   :  { %272 = vmatmul.f32.vlgmr.msra.gmra.mxu3 %v136_v33  ;;  %313 = vmatmul.f32.vlgmr.msra.gmra.mxu1 %v89_v34  ;;  %v1216_v33 = vld [vmem:[%s1516_s2] ss:$0 sm:$0xff] }
  0x23   :  { %822 = vmatpush.msrb.mxu3 %v891_v1  ;;  %v653_v1 = vld [vmem:[%s1517_s4 + $0x60] sm:$0xff] }
  0x24   :  { %660 = vmatpush.msra.mxu2 %v653_v1  ;;  %v120_v34 = vld [vmem:[%s1515_s0 + $0x100] sm:$0xff] }
  0x25   :  { %823 = vmatpush.msrb.mxu3 %v899_v3  ;;  %v652_v3 = vld [vmem:[%s1517_s4 + $0x58] sm:$0xff] }
  0x26   :  { %661 = vmatpush.msra.mxu2 %v652_v3 }
  0x27   :  { %824 = vmatpush.msrb.mxu3 %v908_v5  ;;  %v141_v5 = vld [vmem:[%s1515_s0 + $0x1a8] sm:$0xff] }
  0x28   :  { %662 = vmatpush.msra.mxu2 %v651_v6 }
  0x29   :  { %203 = vmatmul.f32.gmra.mxu0 %v90_v35  ;;  %825 = vmatpush.msrb.mxu3 %v917_v7  ;;  %v650_v7 = vld [vmem:[%s1517_s4 + $0x48] sm:$0xff] }
  0x2a   :  { %275 = vmatmul.f32.gmra.mxu3 %v138_v36  ;;  %316 = vmatmul.f32.gmra.mxu1 %v91_v37  ;;  %v121_v36 = vld [vmem:[%s1515_s0 + $0x108] sm:$0xff] }
  0x2b   :  { %826 = vmatpush.msrb.mxu3 %v926_v9  ;;  %663 = vmatpush.msra.mxu2 %v650_v7  ;;  %v110_v9 = vld [vmem:[%s1515_s0 + $0xb0] sm:$0xff] }
  0x2d   :  { %827 = vmatpush.msrb.mxu3 %v935_v11  ;;  %v111_v11 = vld [vmem:[%s1515_s0 + $0xb8] sm:$0xff]  ;;  %664 = vmatpush.msra.mxu2 %v649_v8 }
  0x2f   :  { %828 = vmatpush.msrb.mxu3 %v944_v13  ;;  %665 = vmatpush.msra.mxu2 %v648_v10  ;;  %v647_v13 = vld [vmem:[%s1517_s4 + $0x30] sm:$0xff] }
  0x31   :  { %206 = vmatmul.f32.gmra.mxu0 %v92_v38  ;;  %829 = vmatpush.msrb.mxu3 %v953_v15  ;;  %v112_v15 = vld [vmem:[%s1515_s0 + $0xc0] sm:$0xff] }
  0x32   :  { %278 = vmatmul.f32.gmra.mxu3 %v140_v39  ;;  %319 = vmatmul.f32.gmra.mxu1 %v93_v40  ;;  %v577_v39 = vld [vmem:[%s1518_s3] sm:$0xff] }
  0x33   :  { %830 = vmatpush.msrb.mxu3 %v962_v17  ;;  %666 = vmatpush.msra.mxu2 %v647_v13  ;;  %v113_v17 = vld [vmem:[%s1515_s0 + $0xc8] sm:$0xff] }
  0x35   :  { %831 = vmatpush.msrb.mxu3 %v971_v19  ;;  %667 = vmatpush.msra.mxu2 %v646_v14  ;;  %v644_v19 = vld [vmem:[%s1517_s4 + $0x18] sm:$0xff] }
  0x37   :  { %832 = vmatpush.msrb.mxu3 %v173_v21  ;;  %668 = vmatpush.msra.mxu2 %v645_v16  ;;  %v642_v21 = vld [vmem:[%s1517_s4 + $0x8] sm:$0xff] }
  0x39   :  { %209 = vmatmul.f32.gmra.mxu0 %v94_v41  ;;  %833 = vmatpush.msrb.mxu3 %v172_v23  ;;  %v641_v23 = vld [vmem:[%s1517_s4] sm:$0xff] }
  0x3a   :  { %281 = vmatmul.f32.gmra.mxu3 %v142_v42  ;;  %322 = vmatmul.f32.gmra.mxu1 %v95_v43 }
  0x3b   :  { %834 = vmatpush.msrb.mxu3 %v171_v25  ;;  %669 = vmatpush.msra.mxu2 %v644_v19  ;;  %v147_v25 = vld [vmem:[%s1515_s0 + $0x1d8] sm:$0xff] }
  0x3d   :  { %835 = vmatpush.msrb.mxu3 %v170_v27  ;;  %670 = vmatpush.msra.mxu2 %v643_v20  ;;  %v117_v27 = vld [vmem:[%s1515_s0 + $0xe8] sm:$0xff] }
  0x3f   :  { %836 = vmatpush.msrb.mxu3 %v169_v29  ;;  %671 = vmatpush.msra.mxu2 %v642_v21  ;;  %v118_v29 = vld [vmem:[%s1515_s0 + $0xf0] sm:$0xff] }
  0x41   :  { %212 = vmatmul.f32.gmra.mxu0 %v96_v44  ;;  %837 = vmatpush.msrb.mxu3 %v168_v31  ;;  %v151_v31 = vld [vmem:[%s1515_s0 + $0x1f8] sm:$0xff]  ;;  %v122_v44 = vld [vmem:[%s1515_s0 + $0x110] sm:$0xff] }
  0x42   :  { %284 = vmatmul.f32.gmra.mxu3 %v144_v45  ;;  %325 = vmatmul.f32.gmra.mxu1 %v97_v46  ;;  %v123_v46 = vld [vmem:[%s1515_s0 + $0x118] sm:$0xff] }
  0x43   :  { %838 = vmatpush.msra.mxu3 %v656_v59  ;;  %672 = vmatpush.msra.mxu2 %v641_v23  ;;  %v579_v59 = vld [vmem:[%s1518_s3 + $0x10] sm:$0xff] }
  0x45   :  { %839 = vmatpush.msra.mxu3 %v655_v63 }
  0x47   :  { %840 = vmatpush.msra.mxu3 %v654_v0  ;;  %v126_v0 = vld [vmem:[%s1515_s0 + $0x130] sm:$0xff] }
  0x49   :  { %215 = vmatmul.f32.gmra.mxu0 %v98_v47  ;;  %841 = vmatpush.msra.mxu3 %v653_v1 }
  0x4a   :  { %287 = vmatmul.f32.gmra.mxu3 %v146_v48  ;;  %328 = vmatmul.f32.gmra.mxu1 %v99_v49  ;;  %v578_v49 = vld [vmem:[%s1518_s3 + $0x8] sm:$0xff] }
  0x4b   :  { %842 = vmatpush.msra.mxu3 %v652_v3 }
  0x4d   :  { %843 = vmatpush.msra.mxu3 %v651_v6 }
  0x4f   :  { %844 = vmatpush.msra.mxu3 %v650_v7 }
  0x51   :  { %218 = vmatmul.f32.gmra.mxu0 %v100_v50  ;;  %845 = vmatpush.msra.mxu3 %v649_v8 }
  0x52   :  { %290 = vmatmul.f32.gmra.mxu3 %v148_v51  ;;  %331 = vmatmul.f32.gmra.mxu1 %v101_v52 }
  0x53   :  { %846 = vmatpush.msra.mxu3 %v648_v10  ;;  %v128_v10 = vld [vmem:[%s1515_s0 + $0x140] sm:$0xff] }
  0x55   :  { %847 = vmatpush.msra.mxu3 %v647_v13 }
  0x57   :  { %848 = vmatpush.msra.mxu3 %v646_v14 }
  0x59   :  { %221 = vmatmul.f32.gmra.mxu0 %v102_v53  ;;  %849 = vmatpush.msra.mxu3 %v645_v16 }
  0x5a   :  { %293 = vmatmul.f32.gmra.mxu3 %v150_v54  ;;  %334 = vmatmul.f32.gmra.mxu1 %v103_v55  ;;  %v124_v54 = vld [vmem:[%s1515_s0 + $0x120] sm:$0xff] }
  0x5b   :  { %850 = vmatpush.msra.mxu3 %v644_v19 }
  0x5d   :  { %851 = vmatpush.msra.mxu3 %v643_v20  ;;  %v130_v20 = vld [vmem:[%s1515_s0 + $0x150] sm:$0xff] }
  0x5f   :  { %852 = vmatpush.msra.mxu3 %v642_v21 }
  0x61   :  { %224 = vmatmul.f32.gmra.mxu0 %v104_v56  ;;  %853 = vmatpush.msra.mxu3 %v641_v23  ;;  %v125_v56 = vld [vmem:[%s1515_s0 + $0x128] sm:$0xff] }
  0x62   :  { %337 = vmatmul.f32.gmra.mxu1 %v105_v57  ;;  %385 = vmatmul.f32.vlgmr.msrb.gmra.mxu3 %v137_v58 }
  0x69   :  { %227 = vmatmul.f32.gmra.mxu0 %v106_v60 }
  0x6a   :  { %340 = vmatmul.f32.gmra.mxu1 %v107_v61  ;;  %388 = vmatmul.f32.gmra.mxu3 %v139_v62 }
  0x71   :  { %230 = vmatmul.f32.gmra.mxu0 %v108_v2  ;;  %v127_v2 = vld [vmem:[%s1515_s0 + $0x138] sm:$0xff] }
  0x72   :  { %343 = vmatmul.f32.gmra.mxu1 %v109_v4  ;;  %391 = vmatmul.f32.gmra.mxu3 %v141_v5  ;;  %v580_v5 = vld [vmem:[%s1518_s3 + $0x18] sm:$0xff] }
  0x79   :  { %233 = vmatmul.f32.gmra.mxu0 %v110_v9 }
  0x7a   :  { %346 = vmatmul.f32.gmra.mxu1 %v111_v11  ;;  %394 = vmatmul.f32.gmra.mxu3 %v143_v12  ;;  %v129_v12 = vld [vmem:[%s1515_s0 + $0x148] sm:$0xff] }
  0x81   :  { %236 = vmatmul.f32.gmra.mxu0 %v112_v15  ;;  %v581_v15 = vld [vmem:[%s1518_s3 + $0x20] sm:$0xff] }
  0x82   :  { %349 = vmatmul.f32.gmra.mxu1 %v113_v17  ;;  %397 = vmatmul.f32.gmra.mxu3 %v145_v18 }
  0x89   :  { %239 = vmatmul.f32.gmra.mxu0 %v114_v22  ;;  %v131_v22 = vld [vmem:[%s1515_s0 + $0x158] sm:$0xff] }
  0x8a   :  { %352 = vmatmul.f32.gmra.mxu1 %v115_v24  ;;  %400 = vmatmul.f32.gmra.mxu3 %v147_v25  ;;  %v582_v25 = vld [vmem:[%s1518_s3 + $0x28] sm:$0xff] }
  0x91   :  { %242 = vmatmul.f32.gmra.mxu0 %v116_v26 }
  0x92   :  { %355 = vmatmul.f32.gmra.mxu1 %v117_v27  ;;  %403 = vmatmul.f32.gmra.mxu3 %v149_v28 }
  0x99   :  { %245 = vmatmul.f32.gmra.mxu0 %v118_v29 }
  0x9a   :  { %358 = vmatmul.f32.gmra.mxu1 %v119_v30  ;;  %406 = vmatmul.f32.gmra.mxu3 %v151_v31  ;;  %v132_v30 = vld [vmem:[%s1515_s0 + $0x160] sm:$0xff] }
  0x9e   :  { %v201_v32 = vpop.f32.mrf.mxu0 }
  0x9f   :  { %v314_v35 = vpop.f32.mrf.mxu1 }
  0xa0   :  { %v315_v37 = vadd.f32 %v314_v35, %v201_v32  ;;  %v133_v32 = vld [vmem:[%s1515_s0 + $0x168] sm:$0xff] }
  0xa1   :  { %248 = vmatmul.f32.gmra.mxu0 %v120_v34 }
  0xa2   :  { %v513_v38 = vadd.f32 %v1216_v33, %v315_v37  ;;  %361 = vmatmul.f32.gmra.mxu1 %v121_v36  ;;  %v583_v36 = vld [vmem:[%s1518_s3 + $0x30] sm:$0xff] }
  0xa4   :  { %v545_v40 = vmax.f32 %v513_v38, 0.0 }
  0xa5   :  { %v1228_v41 = vpop.f32.mrf.mxu3 }
  0xa6   :  { %v204_v42 = vpop.f32.mrf.mxu0  ;;  %v609_v43 = vadd.f32 %v577_v39, %v545_v40 }
  0xa7   :  { %v317_v45 = vpop.f32.mrf.mxu1 }
  0xa8   :  { %v318_v47 = vadd.f32 %v317_v45, %v204_v42  ;;  %673 = vmatmul.f32.vlgmr.msra.gmra.mxu2 %v609_v43  ;;  %v134_v42 = vld [vmem:[%s1515_s0 + $0x170] sm:$0xff] }
  0xa9   :  { %251 = vmatmul.f32.gmra.mxu0 %v122_v44  ;;  %v135_v44 = vld [vmem:[%s1515_s0 + $0x178] sm:$0xff] }
  0xaa   :  { %v514_v48 = vadd.f32 %v1216_v33, %v318_v47  ;;  %364 = vmatmul.f32.gmra.mxu1 %v123_v46  ;;  %v584_v47 = vld [vmem:[%s1518_s3 + $0x38] sm:$0xff] }
  0xac   :  { %v546_v50 = vmax.f32 %v514_v48, 0.0 }
  0xad   :  { %v1240_v51 = vpop.f32.mrf.mxu3 }
  0xae   :  { %v207_v52 = vpop.f32.mrf.mxu0  ;;  %v610_v53 = vadd.f32 %v578_v49, %v546_v50 }
  0xaf   :  { %v320_v55 = vpop.f32.mrf.mxu1 }
  0xb0   :  { %v321_v57 = vadd.f32 %v320_v55, %v207_v52  ;;  %676 = vmatmul.f32.gmra.mxu2 %v610_v53 }
  0xb1   :  { %254 = vmatmul.f32.gmra.mxu0 %v124_v54 }
  0xb2   :  { %v515_v58 = vadd.f32 %v1216_v33, %v321_v57  ;;  %367 = vmatmul.f32.gmra.mxu1 %v125_v56  ;;  %v585_v56 = vld [vmem:[%s1518_s3 + $0x40] sm:$0xff] }
  0xb4   :  { %v547_v60 = vmax.f32 %v515_v58, 0.0 }
  0xb5   :  { %v1252_v61 = vpop.f32.mrf.mxu3 }
  0xb6   :  { %v210_v62 = vpop.f32.mrf.mxu0  ;;  %v611_v63 = vadd.f32 %v579_v59, %v547_v60 }
  0xb7   :  { %v323_v1 = vpop.f32.mrf.mxu1 }
  0xb8   :  { %v324_v3 = vadd.f32 %v323_v1, %v210_v62  ;;  %679 = vmatmul.f32.gmra.mxu2 %v611_v63 }
  0xb9   :  { %257 = vmatmul.f32.gmra.mxu0 %v126_v0 }
  0xba   :  { %v516_v4 = vadd.f32 %v1216_v33, %v324_v3  ;;  %370 = vmatmul.f32.gmra.mxu1 %v127_v2  ;;  %v601_v2 = vld [vmem:[%s1518_s3 + $0xc0] sm:$0xff] }
  0xbc   :  { %v548_v6 = vmax.f32 %v516_v4, 0.0 }
  0xbd   :  { %v1264_v7 = vpop.f32.mrf.mxu3 }
  0xbe   :  { %v213_v8 = vpop.f32.mrf.mxu0  ;;  %v612_v9 = vadd.f32 %v580_v5, %v548_v6  ;;  %v586_v5 = vld [vmem:[%s1518_s3 + $0x48] sm:$0xff] }
  0xbf   :  { %v326_v11 = vpop.f32.mrf.mxu1 }
  0xc0   :  { %v327_v13 = vadd.f32 %v326_v11, %v213_v8  ;;  %682 = vmatmul.f32.gmra.mxu2 %v612_v9 }
  0xc1   :  { %260 = vmatmul.f32.gmra.mxu0 %v128_v10 }
  0xc2   :  { %v517_v14 = vadd.f32 %v1216_v33, %v327_v13  ;;  %373 = vmatmul.f32.gmra.mxu1 %v129_v12 }
  0xc4   :  { %v549_v16 = vmax.f32 %v517_v14, 0.0 }
  0xc5   :  { %v1276_v17 = vpop.f32.mrf.mxu3 }
  0xc6   :  { %v216_v18 = vpop.f32.mrf.mxu0  ;;  %v613_v19 = vadd.f32 %v581_v15, %v549_v16  ;;  %v602_v15 = vld [vmem:[%s1518_s3 + $0xc8] sm:$0xff] }
  0xc7   :  { %v329_v21 = vpop.f32.mrf.mxu1 }
  0xc8   :  { %v330_v23 = vadd.f32 %v329_v21, %v216_v18  ;;  %685 = vmatmul.f32.gmra.mxu2 %v613_v19  ;;  %v587_v19 = vld [vmem:[%s1518_s3 + $0x50] sm:$0xff] }
  0xc9   :  { %263 = vmatmul.f32.gmra.mxu0 %v130_v20 }
  0xca   :  { %v518_v24 = vadd.f32 %v1216_v33, %v330_v23  ;;  %376 = vmatmul.f32.gmra.mxu1 %v131_v22 }
  0xcc   :  { %v550_v26 = vmax.f32 %v518_v24, 0.0 }
  0xcd   :  { %v1288_v27 = vpop.f32.mrf.mxu3 }
  0xce   :  { %v219_v28 = vpop.f32.mrf.mxu0  ;;  %v614_v29 = vadd.f32 %v582_v25, %v550_v26 }
  0xcf   :  { %v332_v31 = vpop.f32.mrf.mxu1 }
  0xd0   :  { %v333_v34 = vadd.f32 %v332_v31, %v219_v28  ;;  %688 = vmatmul.f32.gmra.mxu2 %v614_v29  ;;  %v603_v29 = vld [vmem:[%s1518_s3 + $0xd0] sm:$0xff] }
  0xd1   :  { %266 = vmatmul.f32.gmra.mxu0 %v132_v30 }
  0xd2   :  { %v519_v35 = vadd.f32 %v1216_v33, %v333_v34  ;;  %379 = vmatmul.f32.gmra.mxu1 %v133_v32  ;;  %v588_v32 = vld [vmem:[%s1518_s3 + $0x58] sm:$0xff] }
  0xd4   :  { %v551_v37 = vmax.f32 %v519_v35, 0.0 }
  0xd5   :  { %v1300_v38 = vpop.f32.mrf.mxu3 }
  0xd6   :  { %v222_v39 = vpop.f32.mrf.mxu0  ;;  %v615_v40 = vadd.f32 %v583_v36, %v551_v37 }
  0xd7   :  { %v335_v43 = vpop.f32.mrf.mxu1 }
  0xd8   :  { %v336_v45 = vadd.f32 %v335_v43, %v222_v39  ;;  %691 = vmatmul.f32.gmra.mxu2 %v615_v40 }
  0xd9   :  { %269 = vmatmul.f32.gmra.mxu0 %v134_v42 }
  0xda   :  { %v520_v46 = vadd.f32 %v1216_v33, %v336_v45  ;;  %382 = vmatmul.f32.gmra.mxu1 %v135_v44  ;;  %v604_v44 = vld [vmem:[%s1518_s3 + $0xd8] sm:$0xff] }
  0xdc   :  { %v552_v48 = vmax.f32 %v520_v46, 0.0 }
  0xdd   :  { %v1312_v49 = vpop.f32.mrf.mxu3 }
  0xde   :  { %v225_v50 = vpop.f32.mrf.mxu0  ;;  %v616_v52 = vadd.f32 %v584_v47, %v552_v48  ;;  %v589_v47 = vld [vmem:[%s1518_s3 + $0x60] sm:$0xff] }
  0xdf   :  { %v338_v53 = vpop.f32.mrf.mxu1 }
  0xe0   :  { %v339_v54 = vadd.f32 %v338_v53, %v225_v50  ;;  %694 = vmatmul.f32.gmra.mxu2 %v616_v52 }
  0xe2   :  { %v521_v55 = vadd.f32 %v1216_v33, %v339_v54 }
  0xe4   :  { %v553_v57 = vmax.f32 %v521_v55, 0.0 }
  0xe5   :  { %v386_v58 = vpop.f32.mrf.mxu3 }
  0xe6   :  { %v387_v59 = vadd.f32 %v386_v58, %v1228_v41  ;;  %v228_v60 = vpop.f32.mrf.mxu0  ;;  %v617_v62 = vadd.f32 %v585_v56, %v553_v57  ;;  %v605_v58 = vld [vmem:[%s1518_s3 + $0xe0] sm:$0xff] }
  0xe7   :  { %v341_v63 = vpop.f32.mrf.mxu1 }
  0xe8   :  { %v537_v0 = vadd.f32 %v1216_v33, %v387_v59  ;;  %v342_v1 = vadd.f32 %v341_v63, %v228_v60  ;;  %697 = vmatmul.f32.gmra.mxu2 %v617_v62  ;;  %v590_v62 = vld [vmem:[%s1518_s3 + $0x68] sm:$0xff] }
  0xea   :  { %v569_v3 = vmax.f32 %v537_v0, 0.0  ;;  %v522_v4 = vadd.f32 %v1216_v33, %v342_v1 }
  0xec   :  { %v633_v6 = vadd.f32 %v601_v2, %v569_v3  ;;  %v554_v41 = vmax.f32 %v522_v4, 0.0 }
  0xed   :  { %v389_v8 = vpop.f32.mrf.mxu3 }
  0xee   :  { %v390_v9 = vadd.f32 %v389_v8, %v1240_v51  ;;  %745 = vmatmul.f32.vlgmr.msra.gmra.mxu3 %v633_v6  ;;  %v231_v10 = vpop.f32.mrf.mxu0  ;;  %v618_v11 = vadd.f32 %v586_v5, %v554_v41  ;;  %v606_v41 = vld [vmem:[%s1518_s3 + $0xe8] sm:$0xff] }
  0xef   :  { %v344_v12 = vpop.f32.mrf.mxu1 }
  0xf0   :  { %v538_v13 = vadd.f32 %v1216_v33, %v390_v9  ;;  %v345_v14 = vadd.f32 %v344_v12, %v231_v10  ;;  %700 = vmatmul.f32.gmra.mxu2 %v618_v11  ;;  %v591_v10 = vld [vmem:[%s1518_s3 + $0x70] sm:$0xff] }
  0xf2   :  { %v570_v16 = vmax.f32 %v538_v13, 0.0  ;;  %v523_v18 = vadd.f32 %v1216_v33, %v345_v14 }
  0xf4   :  { %v555_v51 = vmax.f32 %v523_v18, 0.0  ;;  %v634_v20 = vadd.f32 %v602_v15, %v570_v16 }
  0xf5   :  { %v392_v21 = vpop.f32.mrf.mxu3 }
  0xf6   :  { %v393_v22 = vadd.f32 %v392_v21, %v1252_v61  ;;  %748 = vmatmul.f32.gmra.mxu3 %v634_v20  ;;  %v234_v23 = vpop.f32.mrf.mxu0  ;;  %v619_v24 = vadd.f32 %v587_v19, %v555_v51  ;;  %v607_v51 = vld [vmem:[%s1518_s3 + $0xf0] sm:$0xff] }
  0xf7   :  { %v347_v25 = vpop.f32.mrf.mxu1 }
  0xf8   :  { %v539_v26 = vadd.f32 %v1216_v33, %v393_v22  ;;  %v348_v28 = vadd.f32 %v347_v25, %v234_v23  ;;  %703 = vmatmul.f32.gmra.mxu2 %v619_v24  ;;  %v592_v22 = vld [vmem:[%s1518_s3 + $0x78] sm:$0xff] }
  0xfa   :  { %v571_v30 = vmax.f32 %v539_v26, 0.0  ;;  %v524_v31 = vadd.f32 %v1216_v33, %v348_v28 }
  0xfc   :  { %v556_v61 = vmax.f32 %v524_v31, 0.0  ;;  %v635_v34 = vadd.f32 %v603_v29, %v571_v30 }
  0xfd   :  { %v395_v35 = vpop.f32.mrf.mxu3 }
  0xfe   :  { %v396_v36 = vadd.f32 %v395_v35, %v1264_v7  ;;  %751 = vmatmul.f32.gmra.mxu3 %v635_v34  ;;  %v237_v37 = vpop.f32.mrf.mxu0  ;;  %v620_v39 = vadd.f32 %v588_v32, %v556_v61  ;;  %v608_v32 = vld [vmem:[%s1518_s3 + $0xf8] sm:$0xff]  ;;  %v593_v35 = vld [vmem:[%s1518_s3 + $0x80] sm:$0xff] }
  0xff   :  { %v350_v40 = vpop.f32.mrf.mxu1 }
 0x100   :  { %v540_v42 = vadd.f32 %v1216_v33, %v396_v36  ;;  %v351_v43 = vadd.f32 %v350_v40, %v237_v37  ;;  %706 = vmatmul.f32.gmra.mxu2 %v620_v39 }
 0x102   :  { %v572_v45 = vmax.f32 %v540_v42, 0.0  ;;  %v525_v46 = vadd.f32 %v1216_v33, %v351_v43 }
 0x104   :  { %v557_v7 = vmax.f32 %v525_v46, 0.0  ;;  %v636_v48 = vadd.f32 %v604_v44, %v572_v45  ;;  %v594_v45 = vld [vmem:[%s1518_s3 + $0x88] sm:$0xff] }
 0x105   :  { %v398_v50 = vpop.f32.mrf.mxu3 }
 0x106   :  { %v399_v52 = vadd.f32 %v398_v50, %v1276_v17  ;;  %754 = vmatmul.f32.gmra.mxu3 %v636_v48  ;;  %v240_v53 = vpop.f32.mrf.mxu0  ;;  %v621_v54 = vadd.f32 %v589_v47, %v557_v7 }
 0x107   :  { %v353_v55 = vpop.f32.mrf.mxu1 }
 0x108   :  { %v541_v56 = vadd.f32 %v1216_v33, %v399_v52  ;;  %v354_v57 = vadd.f32 %v353_v55, %v240_v53  ;;  %709 = vmatmul.f32.gmra.mxu2 %v621_v54  ;;  %v595_v54 = vld [vmem:[%s1518_s3 + $0x90] sm:$0xff] }
 0x10a   :  { %v573_v59 = vmax.f32 %v541_v56, 0.0  ;;  %v526_v60 = vadd.f32 %v1216_v33, %v354_v57 }
 0x10c   :  { %v558_v17 = vmax.f32 %v526_v60, 0.0  ;;  %v637_v63 = vadd.f32 %v605_v58, %v573_v59 }
 0x10d   :  { %v401_v0 = vpop.f32.mrf.mxu3 }
 0x10e   :  { %v402_v1 = vadd.f32 %v401_v0, %v1288_v27  ;;  %757 = vmatmul.f32.gmra.mxu3 %v637_v63  ;;  %v243_v2 = vpop.f32.mrf.mxu0  ;;  %v622_v3 = vadd.f32 %v590_v62, %v558_v17  ;;  %v596_v17 = vld [vmem:[%s1518_s3 + $0x98] sm:$0xff] }
 0x10f   :  { %v356_v4 = vpop.f32.mrf.mxu1 }
 0x110   :  { %v542_v5 = vadd.f32 %v1216_v33, %v402_v1  ;;  %v357_v6 = vadd.f32 %v356_v4, %v243_v2  ;;  %712 = vmatmul.f32.gmra.mxu2 %v622_v3 }
 0x112   :  { %v574_v8 = vmax.f32 %v542_v5, 0.0  ;;  %v527_v9 = vadd.f32 %v1216_v33, %v357_v6  ;;  %v597_v6 = vld [vmem:[%s1518_s3 + $0xa0] sm:$0xff] }
 0x114   :  { %v559_v27 = vmax.f32 %v527_v9, 0.0  ;;  %v638_v11 = vadd.f32 %v606_v41, %v574_v8 }
 0x115   :  { %v404_v12 = vpop.f32.mrf.mxu3 }
 0x116   :  { %v405_v13 = vadd.f32 %v404_v12, %v1300_v38  ;;  %760 = vmatmul.f32.gmra.mxu3 %v638_v11  ;;  %v246_v14 = vpop.f32.mrf.mxu0  ;;  %v623_v15 = vadd.f32 %v591_v10, %v559_v27 }
 0x117   :  { %v359_v16 = vpop.f32.mrf.mxu1 }
 0x118   :  { %v543_v18 = vadd.f32 %v1216_v33, %v405_v13  ;;  %v360_v19 = vadd.f32 %v359_v16, %v246_v14  ;;  %715 = vmatmul.f32.gmra.mxu2 %v623_v15  ;;  %v598_v13 = vld [vmem:[%s1518_s3 + $0xa8] sm:$0xff] }
 0x11a   :  { %v575_v20 = vmax.f32 %v543_v18, 0.0  ;;  %v528_v21 = vadd.f32 %v1216_v33, %v360_v19 }
 0x11c   :  { %v560_v38 = vmax.f32 %v528_v21, 0.0  ;;  %v639_v23 = vadd.f32 %v607_v51, %v575_v20  ;;  %v599_v21 = vld [vmem:[%s1518_s3 + $0xb0] sm:$0xff] }
 0x11d   :  { %v407_v24 = vpop.f32.mrf.mxu3 }
 0x11e   :  { %v408_v25 = vadd.f32 %v407_v24, %v1312_v49  ;;  %763 = vmatmul.f32.gmra.mxu3 %v639_v23  ;;  %v249_v26 = vpop.f32.mrf.mxu0  ;;  %v624_v28 = vadd.f32 %v592_v22, %v560_v38 }
 0x11f   :  { %v362_v29 = vpop.f32.mrf.mxu1 }
 0x120   :  { %v544_v30 = vadd.f32 %v1216_v33, %v408_v25  ;;  %v363_v31 = vadd.f32 %v362_v29, %v249_v26  ;;  %718 = vmatmul.f32.gmra.mxu2 %v624_v28  ;;  %v600_v29 = vld [vmem:[%s1518_s3 + $0xb8] sm:$0xff] }
 0x122   :  { %v576_v61 = vmax.f32 %v544_v30, 0.0  ;;  %v529_v34 = vadd.f32 %v1216_v33, %v363_v31 }
 0x124   :  { %v561_v49 = vmax.f32 %v529_v34, 0.0  ;;  %v640_v36 = vadd.f32 %v608_v32, %v576_v61 }
 0x126   :  { %766 = vmatmul.f32.gmra.mxu3 %v640_v36  ;;  %v252_v37 = vpop.f32.mrf.mxu0  ;;  %v625_v39 = vadd.f32 %v593_v35, %v561_v49 }
 0x127   :  { %v365_v40 = vpop.f32.mrf.mxu1 }
 0x128   :  { %v366_v42 = vadd.f32 %v365_v40, %v252_v37  ;;  %721 = vmatmul.f32.gmra.mxu2 %v625_v39 }
 0x12a   :  { %v530_v43 = vadd.f32 %v1216_v33, %v366_v42 }
 0x12b   :  { %v674_v44 = vpop.f32.mrf.mxu2 }
 0x12c   :  { %v562_v46 = vmax.f32 %v530_v43, 0.0  ;;  %770 = vst [vmem:[%s1519_s5] sm:$0xff] %v674_v44 }
 0x12e   :  { %v255_v47 = vpop.f32.mrf.mxu0  ;;  %v626_v7 = vadd.f32 %v594_v45, %v562_v46 }
 0x12f   :  { %v368_v48 = vpop.f32.mrf.mxu1 }
 0x130   :  { %v369_v50 = vadd.f32 %v368_v48, %v255_v47  ;;  %724 = vmatmul.f32.gmra.mxu2 %v626_v7 }
 0x132   :  { %v531_v52 = vadd.f32 %v1216_v33, %v369_v50 }
 0x133   :  { %v677_v53 = vpop.f32.mrf.mxu2 }
 0x134   :  { %v563_v55 = vmax.f32 %v531_v52, 0.0  ;;  %771 = vst [vmem:[%s1519_s5 + $0x8] sm:$0xff] %v677_v53 }
 0x136   :  { %v258_v56 = vpop.f32.mrf.mxu0  ;;  %v627_v57 = vadd.f32 %v595_v54, %v563_v55 }
 0x137   :  { %v371_v58 = vpop.f32.mrf.mxu1 }
 0x138   :  { %v372_v59 = vadd.f32 %v371_v58, %v258_v56  ;;  %727 = vmatmul.f32.gmra.mxu2 %v627_v57 }
 0x13a   :  { %v532_v60 = vadd.f32 %v1216_v33, %v372_v59 }
 0x13b   :  { %v680_v62 = vpop.f32.mrf.mxu2 }
 0x13c   :  { %v564_v63 = vmax.f32 %v532_v60, 0.0  ;;  %772 = vst [vmem:[%s1519_s5 + $0x10] sm:$0xff] %v680_v62 }
 0x13e   :  { %v261_v0 = vpop.f32.mrf.mxu0  ;;  %v628_v1 = vadd.f32 %v596_v17, %v564_v63 }
 0x13f   :  { %v374_v2 = vpop.f32.mrf.mxu1 }
 0x140   :  { %v375_v3 = vadd.f32 %v374_v2, %v261_v0  ;;  %730 = vmatmul.f32.gmra.mxu2 %v628_v1 }
 0x142   :  { %v533_v4 = vadd.f32 %v1216_v33, %v375_v3 }
 0x143   :  { %v683_v5 = vpop.f32.mrf.mxu2 }
 0x144   :  { %v565_v41 = vmax.f32 %v533_v4, 0.0  ;;  %773 = vst [vmem:[%s1519_s5 + $0x18] sm:$0xff] %v683_v5 }
 0x146   :  { %v264_v8 = vpop.f32.mrf.mxu0  ;;  %v629_v9 = vadd.f32 %v597_v6, %v565_v41 }
 0x147   :  { %v377_v10 = vpop.f32.mrf.mxu1 }
 0x148   :  { %v378_v27 = vadd.f32 %v377_v10, %v264_v8  ;;  %733 = vmatmul.f32.gmra.mxu2 %v629_v9 }
 0x14a   :  { %v534_v11 = vadd.f32 %v1216_v33, %v378_v27 }
 0x14b   :  { %v686_v12 = vpop.f32.mrf.mxu2 }
 0x14c   :  { %v566_v14 = vmax.f32 %v534_v11, 0.0  ;;  %774 = vst [vmem:[%s1519_s5 + $0x20] sm:$0xff] %v686_v12 }
 0x14e   :  { %v267_v15 = vpop.f32.mrf.mxu0  ;;  %v630_v16 = vadd.f32 %v598_v13, %v566_v14 }
 0x14f   :  { %v380_v18 = vpop.f32.mrf.mxu1 }
 0x150   :  { %v381_v19 = vadd.f32 %v380_v18, %v267_v15  ;;  %736 = vmatmul.f32.gmra.mxu2 %v630_v16 }
 0x152   :  { %v535_v51 = vadd.f32 %v1216_v33, %v381_v19 }
 0x153   :  { %v689_v20 = vpop.f32.mrf.mxu2 }
 0x154   :  { %v567_v22 = vmax.f32 %v535_v51, 0.0  ;;  %775 = vst [vmem:[%s1519_s5 + $0x28] sm:$0xff] %v689_v20 }
 0x156   :  { %v270_v38 = vpop.f32.mrf.mxu0  ;;  %v631_v23 = vadd.f32 %v599_v21, %v567_v22 }
 0x157   :  { %v383_v24 = vpop.f32.mrf.mxu1 }
 0x158   :  { %v384_v25 = vadd.f32 %v383_v24, %v270_v38  ;;  %739 = vmatmul.f32.gmra.mxu2 %v631_v23 }
 0x15a   :  { %v536_v26 = vadd.f32 %v1216_v33, %v384_v25 }
 0x15b   :  { %v692_v28 = vpop.f32.mrf.mxu2 }
 0x15c   :  { %v568_v30 = vmax.f32 %v536_v26, 0.0  ;;  %776 = vst [vmem:[%s1519_s5 + $0x30] sm:$0xff] %v692_v28 }
 0x15e   :  { %v632_v31 = vadd.f32 %v600_v29, %v568_v30 }
 0x160   :  { %742 = vmatmul.f32.gmra.mxu2 %v632_v31 }
 0x163   :  { %v695_v32 = vpop.f32.mrf.mxu2 }
 0x164   :  { %777 = vst [vmem:[%s1519_s5 + $0x38] sm:$0xff] %v695_v32 }
 0x16b   :  { %v698_v61 = vpop.f32.mrf.mxu2 }
 0x16c   :  { %778 = vst [vmem:[%s1519_s5 + $0x40] sm:$0xff] %v698_v61 }
 0x171   :  { %v746_v33 = vpop.f32.mrf.mxu3 }
 0x172   :  { %794 = vst [vmem:[%s1519_s5 + $0xc0] sm:$0xff] %v746_v33 }
 0x173   :  { %v701_v34 = vpop.f32.mrf.mxu2 }
 0x174   :  { %779 = vst [vmem:[%s1519_s5 + $0x48] sm:$0xff] %v701_v34 }
 0x179   :  { %v749_v35 = vpop.f32.mrf.mxu3 }
 0x17a   :  { %795 = vst [vmem:[%s1519_s5 + $0xc8] sm:$0xff] %v749_v35 }
 0x17b   :  { %v704_v49 = vpop.f32.mrf.mxu2 }
 0x17c   :  { %780 = vst [vmem:[%s1519_s5 + $0x50] sm:$0xff] %v704_v49 }
 0x181   :  { %v752_v36 = vpop.f32.mrf.mxu3 }
 0x182   :  { %796 = vst [vmem:[%s1519_s5 + $0xd0] sm:$0xff] %v752_v36 }
 0x183   :  { %v707_v37 = vpop.f32.mrf.mxu2 }
 0x184   :  { %781 = vst [vmem:[%s1519_s5 + $0x58] sm:$0xff] %v707_v37 }
 0x189   :  { %v755_v39 = vpop.f32.mrf.mxu3 }
 0x18a   :  { %797 = vst [vmem:[%s1519_s5 + $0xd8] sm:$0xff] %v755_v39 }
 0x18b   :  { %v710_v40 = vpop.f32.mrf.mxu2 }
 0x18c   :  { %782 = vst [vmem:[%s1519_s5 + $0x60] sm:$0xff] %v710_v40 }
 0x191   :  { %v758_v42 = vpop.f32.mrf.mxu3 }
 0x192   :  { %798 = vst [vmem:[%s1519_s5 + $0xe0] sm:$0xff] %v758_v42 }
 0x193   :  { %v713_v43 = vpop.f32.mrf.mxu2 }
 0x194   :  { %783 = vst [vmem:[%s1519_s5 + $0x68] sm:$0xff] %v713_v43 }
 0x199   :  { %v761_v44 = vpop.f32.mrf.mxu3 }
 0x19a   :  { %799 = vst [vmem:[%s1519_s5 + $0xe8] sm:$0xff] %v761_v44 }
 0x19b   :  { %v716_v45 = vpop.f32.mrf.mxu2 }
 0x19c   :  { %784 = vst [vmem:[%s1519_s5 + $0x70] sm:$0xff] %v716_v45 }
 0x1a1   :  { %v764_v46 = vpop.f32.mrf.mxu3 }
 0x1a2   :  { %800 = vst [vmem:[%s1519_s5 + $0xf0] sm:$0xff] %v764_v46 }
 0x1a3   :  { %v719_v47 = vpop.f32.mrf.mxu2 }
 0x1a4   :  { %785 = vst [vmem:[%s1519_s5 + $0x78] sm:$0xff] %v719_v47 }
 0x1a9   :  { %v767_v7 = vpop.f32.mrf.mxu3 }
 0x1aa   :  { %801 = vst [vmem:[%s1519_s5 + $0xf8] sm:$0xff] %v767_v7 }
 0x1ab   :  { %v722_v48 = vpop.f32.mrf.mxu2 }
 0x1ac   :  { %786 = vst [vmem:[%s1519_s5 + $0x80] sm:$0xff] %v722_v48 }
 0x1b3   :  { %v725_v50 = vpop.f32.mrf.mxu2 }
 0x1b4   :  { %787 = vst [vmem:[%s1519_s5 + $0x88] sm:$0xff] %v725_v50 }
 0x1bb   :  { %v728_v52 = vpop.f32.mrf.mxu2 }
 0x1bc   :  { %788 = vst [vmem:[%s1519_s5 + $0x90] sm:$0xff] %v728_v52 }
 0x1c3   :  { %v731_v53 = vpop.f32.mrf.mxu2 }
 0x1c4   :  { %789 = vst [vmem:[%s1519_s5 + $0x98] sm:$0xff] %v731_v53 }
 0x1cb   :  { %v734_v54 = vpop.f32.mrf.mxu2 }
 0x1cc   :  { %790 = vst [vmem:[%s1519_s5 + $0xa0] sm:$0xff] %v734_v54 }
 0x1d3   :  { %v737_v55 = vpop.f32.mrf.mxu2 }
 0x1d4   :  { %791 = vst [vmem:[%s1519_s5 + $0xa8] sm:$0xff] %v737_v55 }
 0x1db   :  { %v740_v56 = vpop.f32.mrf.mxu2 }
 0x1dc   :  { %792 = vst [vmem:[%s1519_s5 + $0xb0] sm:$0xff] %v740_v56 }
 0x1e3   :  { %v743_v57 = vpop.f32.mrf.mxu2 }
 0x1e4   :  { %793 = vst [vmem:[%s1519_s5 + $0xb8] sm:$0xff] %v743_v57 }

// kernel: gcn_model_forward.9
= control target key start
LH: loop header
LB: loop body
LE: loop exit
PB: predicated region body
PF: predicated region fallthrough
CT: control target
= control target key end

     0   :  { %s1855_s1 = inlined_call_operand.vmem [shape: f32[256,128], index: 1, kind: input, shape index: {}]   ;;  %s1856_s0 = inlined_call_operand.vmem [shape: f32[256,256], index: 0, kind: input, shape index: {}]   ;;  %s1857_s2 = inlined_call_operand.vmem [shape: f32[1,128], index: 2, kind: input, shape index: {}]   ;;  %s1858_s3 = inlined_call_operand.vmem [shape: f32[256,128], index: 3, kind: output, shape index: {}]  }
   0x1   :  { %v161_v0 = vld [vmem:[%s1855_s1 + $0x78] sm:$0xff]  ;;  %v160_v2 = vld [vmem:[%s1855_s1 + $0x70] sm:$0xff]  ;;  %v159_v4 = vld [vmem:[%s1855_s1 + $0x68] sm:$0xff] }
   0x2   :  { %v177_v1 = vld [vmem:[%s1855_s1 + $0xf8] sm:$0xff]  ;;  %178 = vmatpush.msra.mxu0 %v161_v0  ;;  %930 = vmatpush.msra.mxu2 %v161_v0  ;;  %v176_v3 = vld [vmem:[%s1855_s1 + $0xf0] sm:$0xff]  ;;  %v175_v5 = vld [vmem:[%s1855_s1 + $0xe8] sm:$0xff] }
   0x3   :  { %291 = vmatpush.msra.mxu1 %v177_v1  ;;  %946 = vmatpush.msra.mxu3 %v177_v1  ;;  %v158_v6 = vld [vmem:[%s1855_s1 + $0x60] sm:$0xff]  ;;  %v157_v8 = vld [vmem:[%s1855_s1 + $0x58] sm:$0xff]  ;;  %v156_v10 = vld [vmem:[%s1855_s1 + $0x50] sm:$0xff] }
   0x4   :  { %179 = vmatpush.msra.mxu0 %v160_v2  ;;  %931 = vmatpush.msra.mxu2 %v160_v2  ;;  %v174_v7 = vld [vmem:[%s1855_s1 + $0xe0] sm:$0xff]  ;;  %v173_v9 = vld [vmem:[%s1855_s1 + $0xd8] sm:$0xff]  ;;  %v172_v11 = vld [vmem:[%s1855_s1 + $0xd0] sm:$0xff] }
   0x5   :  { %292 = vmatpush.msra.mxu1 %v176_v3  ;;  %947 = vmatpush.msra.mxu3 %v176_v3  ;;  %v155_v12 = vld [vmem:[%s1855_s1 + $0x48] sm:$0xff]  ;;  %v154_v14 = vld [vmem:[%s1855_s1 + $0x40] sm:$0xff]  ;;  %v153_v16 = vld [vmem:[%s1855_s1 + $0x38] sm:$0xff] }
   0x6   :  { %180 = vmatpush.msra.mxu0 %v159_v4  ;;  %932 = vmatpush.msra.mxu2 %v159_v4  ;;  %v171_v13 = vld [vmem:[%s1855_s1 + $0xc8] sm:$0xff]  ;;  %v170_v15 = vld [vmem:[%s1855_s1 + $0xc0] sm:$0xff]  ;;  %v169_v17 = vld [vmem:[%s1855_s1 + $0xb8] sm:$0xff] }
   0x7   :  { %293 = vmatpush.msra.mxu1 %v175_v5  ;;  %948 = vmatpush.msra.mxu3 %v175_v5  ;;  %v152_v18 = vld [vmem:[%s1855_s1 + $0x30] sm:$0xff]  ;;  %v151_v20 = vld [vmem:[%s1855_s1 + $0x28] sm:$0xff]  ;;  %v150_v22 = vld [vmem:[%s1855_s1 + $0x20] sm:$0xff] }
   0x8   :  { %181 = vmatpush.msra.mxu0 %v158_v6  ;;  %933 = vmatpush.msra.mxu2 %v158_v6  ;;  %v168_v19 = vld [vmem:[%s1855_s1 + $0xb0] sm:$0xff]  ;;  %v167_v21 = vld [vmem:[%s1855_s1 + $0xa8] sm:$0xff]  ;;  %v166_v23 = vld [vmem:[%s1855_s1 + $0xa0] sm:$0xff] }
   0x9   :  { %294 = vmatpush.msra.mxu1 %v174_v7  ;;  %949 = vmatpush.msra.mxu3 %v174_v7  ;;  %v149_v24 = vld [vmem:[%s1855_s1 + $0x18] sm:$0xff]  ;;  %v148_v26 = vld [vmem:[%s1855_s1 + $0x10] sm:$0xff]  ;;  %v147_v28 = vld [vmem:[%s1855_s1 + $0x8] sm:$0xff] }
   0xa   :  { %182 = vmatpush.msra.mxu0 %v157_v8  ;;  %934 = vmatpush.msra.mxu2 %v157_v8  ;;  %v165_v25 = vld [vmem:[%s1855_s1 + $0x98] sm:$0xff]  ;;  %v164_v27 = vld [vmem:[%s1855_s1 + $0x90] sm:$0xff]  ;;  %v163_v29 = vld [vmem:[%s1855_s1 + $0x88] sm:$0xff] }
   0xb   :  { %295 = vmatpush.msra.mxu1 %v173_v9  ;;  %950 = vmatpush.msra.mxu3 %v173_v9  ;;  %v146_v30 = vld [vmem:[%s1855_s1] sm:$0xff]  ;;  %v83_v34 = vld [vmem:[%s1856_s0 + $0x8] sm:$0xff]  ;;  %v84_v36 = vld [vmem:[%s1856_s0 + $0x10] sm:$0xff] }
   0xc   :  { %183 = vmatpush.msra.mxu0 %v156_v10  ;;  %935 = vmatpush.msra.mxu2 %v156_v10  ;;  %v162_v31 = vld [vmem:[%s1855_s1 + $0x80] sm:$0xff]  ;;  %v115_v35 = vld [vmem:[%s1856_s0 + $0x108] sm:$0xff]  ;;  %v116_v37 = vld [vmem:[%s1856_s0 + $0x110] sm:$0xff] }
   0xd   :  { %296 = vmatpush.msra.mxu1 %v172_v11  ;;  %951 = vmatpush.msra.mxu3 %v172_v11  ;;  %v82_v32 = vld [vmem:[%s1856_s0] sm:$0xff]  ;;  %v85_v38 = vld [vmem:[%s1856_s0 + $0x18] sm:$0xff]  ;;  %v87_v42 = vld [vmem:[%s1856_s0 + $0x28] sm:$0xff] }
   0xe   :  { %184 = vmatpush.msra.mxu0 %v155_v12  ;;  %936 = vmatpush.msra.mxu2 %v155_v12  ;;  %v114_v33 = vld [vmem:[%s1856_s0 + $0x100] sm:$0xff]  ;;  %v117_v39 = vld [vmem:[%s1856_s0 + $0x118] sm:$0xff]  ;;  %v119_v43 = vld [vmem:[%s1856_s0 + $0x128] sm:$0xff] }
   0xf   :  { %297 = vmatpush.msra.mxu1 %v171_v13  ;;  %952 = vmatpush.msra.mxu3 %v171_v13  ;;  %v86_v40 = vld [vmem:[%s1856_s0 + $0x20] sm:$0xff]  ;;  %v88_v44 = vld [vmem:[%s1856_s0 + $0x30] sm:$0xff]  ;;  %v89_v46 = vld [vmem:[%s1856_s0 + $0x38] sm:$0xff] }
  0x10   :  { %185 = vmatpush.msra.mxu0 %v154_v14  ;;  %937 = vmatpush.msra.mxu2 %v154_v14  ;;  %v118_v41 = vld [vmem:[%s1856_s0 + $0x120] sm:$0xff]  ;;  %v120_v45 = vld [vmem:[%s1856_s0 + $0x130] sm:$0xff]  ;;  %v121_v47 = vld [vmem:[%s1856_s0 + $0x138] sm:$0xff] }
  0x11   :  { %298 = vmatpush.msra.mxu1 %v170_v15  ;;  %953 = vmatpush.msra.mxu3 %v170_v15  ;;  %v90_v48 = vld [vmem:[%s1856_s0 + $0x40] sm:$0xff]  ;;  %v91_v50 = vld [vmem:[%s1856_s0 + $0x48] sm:$0xff]  ;;  %v124_v52 = vld [vmem:[%s1856_s0 + $0x150] sm:$0xff] }
  0x12   :  { %186 = vmatpush.msra.mxu0 %v153_v16  ;;  %938 = vmatpush.msra.mxu2 %v153_v16  ;;  %v122_v49 = vld [vmem:[%s1856_s0 + $0x140] sm:$0xff]  ;;  %v123_v51 = vld [vmem:[%s1856_s0 + $0x148] sm:$0xff]  ;;  %v92_v53 = vld [vmem:[%s1856_s0 + $0x50] sm:$0xff] }
  0x13   :  { %299 = vmatpush.msra.mxu1 %v169_v17  ;;  %954 = vmatpush.msra.mxu3 %v169_v17  ;;  %v125_v54 = vld [vmem:[%s1856_s0 + $0x158] sm:$0xff]  ;;  %v126_v56 = vld [vmem:[%s1856_s0 + $0x160] sm:$0xff]  ;;  %v127_v58 = vld [vmem:[%s1856_s0 + $0x168] sm:$0xff] }
  0x14   :  { %187 = vmatpush.msra.mxu0 %v152_v18  ;;  %939 = vmatpush.msra.mxu2 %v152_v18  ;;  %v93_v55 = vld [vmem:[%s1856_s0 + $0x58] sm:$0xff]  ;;  %v94_v57 = vld [vmem:[%s1856_s0 + $0x60] sm:$0xff]  ;;  %v95_v59 = vld [vmem:[%s1856_s0 + $0x68] sm:$0xff] }
  0x15   :  { %300 = vmatpush.msra.mxu1 %v168_v19  ;;  %955 = vmatpush.msra.mxu3 %v168_v19  ;;  %v128_v60 = vld [vmem:[%s1856_s0 + $0x170] sm:$0xff]  ;;  %v129_v62 = vld [vmem:[%s1856_s0 + $0x178] sm:$0xff]  ;;  %v130_v0 = vld [vmem:[%s1856_s0 + $0x180] sm:$0xff] }
  0x16   :  { %188 = vmatpush.msra.mxu0 %v151_v20  ;;  %940 = vmatpush.msra.mxu2 %v151_v20  ;;  %v96_v61 = vld [vmem:[%s1856_s0 + $0x70] sm:$0xff]  ;;  %v97_v63 = vld [vmem:[%s1856_s0 + $0x78] sm:$0xff]  ;;  %v98_v1 = vld [vmem:[%s1856_s0 + $0x80] sm:$0xff] }
  0x17   :  { %301 = vmatpush.msra.mxu1 %v167_v21  ;;  %956 = vmatpush.msra.mxu3 %v167_v21  ;;  %v131_v2 = vld [vmem:[%s1856_s0 + $0x188] sm:$0xff]  ;;  %v132_v4 = vld [vmem:[%s1856_s0 + $0x190] sm:$0xff]  ;;  %v133_v6 = vld [vmem:[%s1856_s0 + $0x198] sm:$0xff] }
  0x18   :  { %189 = vmatpush.msra.mxu0 %v150_v22  ;;  %941 = vmatpush.msra.mxu2 %v150_v22  ;;  %v99_v3 = vld [vmem:[%s1856_s0 + $0x88] sm:$0xff]  ;;  %v100_v5 = vld [vmem:[%s1856_s0 + $0x90] sm:$0xff]  ;;  %v101_v7 = vld [vmem:[%s1856_s0 + $0x98] sm:$0xff] }
  0x19   :  { %302 = vmatpush.msra.mxu1 %v166_v23  ;;  %957 = vmatpush.msra.mxu3 %v166_v23  ;;  %v134_v8 = vld [vmem:[%s1856_s0 + $0x1a0] sm:$0xff]  ;;  %v135_v10 = vld [vmem:[%s1856_s0 + $0x1a8] sm:$0xff]  ;;  %v136_v12 = vld [vmem:[%s1856_s0 + $0x1b0] sm:$0xff] }
  0x1a   :  { %190 = vmatpush.msra.mxu0 %v149_v24  ;;  %942 = vmatpush.msra.mxu2 %v149_v24  ;;  %v102_v9 = vld [vmem:[%s1856_s0 + $0xa0] sm:$0xff]  ;;  %v103_v11 = vld [vmem:[%s1856_s0 + $0xa8] sm:$0xff]  ;;  %v104_v13 = vld [vmem:[%s1856_s0 + $0xb0] sm:$0xff] }
  0x1b   :  { %303 = vmatpush.msra.mxu1 %v165_v25  ;;  %958 = vmatpush.msra.mxu3 %v165_v25  ;;  %v137_v14 = vld [vmem:[%s1856_s0 + $0x1b8] sm:$0xff]  ;;  %v138_v16 = vld [vmem:[%s1856_s0 + $0x1c0] sm:$0xff]  ;;  %v139_v18 = vld [vmem:[%s1856_s0 + $0x1c8] sm:$0xff] }
  0x1c   :  { %191 = vmatpush.msra.mxu0 %v148_v26  ;;  %943 = vmatpush.msra.mxu2 %v148_v26  ;;  %v105_v15 = vld [vmem:[%s1856_s0 + $0xb8] sm:$0xff]  ;;  %v106_v17 = vld [vmem:[%s1856_s0 + $0xc0] sm:$0xff]  ;;  %v107_v19 = vld [vmem:[%s1856_s0 + $0xc8] sm:$0xff] }
  0x1d   :  { %304 = vmatpush.msra.mxu1 %v164_v27  ;;  %959 = vmatpush.msra.mxu3 %v164_v27  ;;  %v140_v20 = vld [vmem:[%s1856_s0 + $0x1d0] sm:$0xff]  ;;  %v141_v22 = vld [vmem:[%s1856_s0 + $0x1d8] sm:$0xff]  ;;  %v142_v24 = vld [vmem:[%s1856_s0 + $0x1e0] sm:$0xff] }
  0x1e   :  { %192 = vmatpush.msra.mxu0 %v147_v28  ;;  %944 = vmatpush.msra.mxu2 %v147_v28  ;;  %v108_v21 = vld [vmem:[%s1856_s0 + $0xd0] sm:$0xff]  ;;  %v109_v23 = vld [vmem:[%s1856_s0 + $0xd8] sm:$0xff]  ;;  %v110_v25 = vld [vmem:[%s1856_s0 + $0xe0] sm:$0xff] }
  0x1f   :  { %305 = vmatpush.msra.mxu1 %v163_v29  ;;  %960 = vmatpush.msra.mxu3 %v163_v29  ;;  %v143_v26 = vld [vmem:[%s1856_s0 + $0x1e8] sm:$0xff]  ;;  %v144_v28 = vld [vmem:[%s1856_s0 + $0x1f0] sm:$0xff] }
  0x20   :  { %193 = vmatpush.msra.mxu0 %v146_v30  ;;  %945 = vmatpush.msra.mxu2 %v146_v30  ;;  %v111_v27 = vld [vmem:[%s1856_s0 + $0xe8] sm:$0xff]  ;;  %v112_v29 = vld [vmem:[%s1856_s0 + $0xf0] sm:$0xff]  ;;  %v145_v30 = vld [vmem:[%s1856_s0 + $0x1f8] sm:$0xff] }
  0x21   :  { %306 = vmatpush.msra.mxu1 %v162_v31  ;;  %961 = vmatpush.msra.mxu3 %v162_v31  ;;  %v113_v31 = vld [vmem:[%s1856_s0 + $0xf8] sm:$0xff] }
  0x22   :  { %194 = vmatmul.f32.vlgmr.msra.gmra.mxu0 %v82_v32  ;;  %242 = vmatmul.f32.vlgmr.msra.gmra.mxu2 %v114_v33  ;;  %v539_v32 = vlaneseq }
  0x23   :  { %307 = vmatmul.f32.vlgmr.msra.gmra.mxu1 %v83_v34  ;;  %355 = vmatmul.f32.vlgmr.msra.gmra.mxu3 %v115_v35  ;;  %v1404_v35 = vld [vmem:[%s1857_s2] ss:$0 sm:$0xff] }
  0x24   :  { %v1399_v33 = vand.u32 127, %v539_v32 }
  0x26   :  { %vm541_vm0 = vcmp.lt.s32.totalorder %v1399_v33, 8 }
  0x2a   :  { %197 = vmatmul.f32.gmra.mxu0 %v84_v36  ;;  %245 = vmatmul.f32.gmra.mxu2 %v116_v37 }
  0x2b   :  { %310 = vmatmul.f32.gmra.mxu1 %v85_v38  ;;  %358 = vmatmul.f32.gmra.mxu3 %v117_v39 }
  0x32   :  { %200 = vmatmul.f32.gmra.mxu0 %v86_v40  ;;  %248 = vmatmul.f32.gmra.mxu2 %v118_v41 }
  0x33   :  { %313 = vmatmul.f32.gmra.mxu1 %v87_v42  ;;  %361 = vmatmul.f32.gmra.mxu3 %v119_v43 }
  0x3a   :  { %203 = vmatmul.f32.gmra.mxu0 %v88_v44  ;;  %251 = vmatmul.f32.gmra.mxu2 %v120_v45 }
  0x3b   :  { %316 = vmatmul.f32.gmra.mxu1 %v89_v46  ;;  %364 = vmatmul.f32.gmra.mxu3 %v121_v47 }
  0x42   :  { %206 = vmatmul.f32.gmra.mxu0 %v90_v48  ;;  %254 = vmatmul.f32.gmra.mxu2 %v122_v49 }
  0x43   :  { %319 = vmatmul.f32.gmra.mxu1 %v91_v50  ;;  %367 = vmatmul.f32.gmra.mxu3 %v123_v51 }
  0x4a   :  { %257 = vmatmul.f32.gmra.mxu2 %v124_v52  ;;  %209 = vmatmul.f32.gmra.mxu0 %v92_v53 }
  0x4b   :  { %370 = vmatmul.f32.gmra.mxu3 %v125_v54  ;;  %322 = vmatmul.f32.gmra.mxu1 %v93_v55 }
  0x52   :  { %260 = vmatmul.f32.gmra.mxu2 %v126_v56  ;;  %212 = vmatmul.f32.gmra.mxu0 %v94_v57 }
  0x53   :  { %373 = vmatmul.f32.gmra.mxu3 %v127_v58  ;;  %325 = vmatmul.f32.gmra.mxu1 %v95_v59 }
  0x5a   :  { %263 = vmatmul.f32.gmra.mxu2 %v128_v60  ;;  %215 = vmatmul.f32.gmra.mxu0 %v96_v61 }
  0x5b   :  { %376 = vmatmul.f32.gmra.mxu3 %v129_v62  ;;  %328 = vmatmul.f32.gmra.mxu1 %v97_v63 }
  0x62   :  { %266 = vmatmul.f32.gmra.mxu2 %v130_v0  ;;  %218 = vmatmul.f32.gmra.mxu0 %v98_v1 }
  0x63   :  { %379 = vmatmul.f32.gmra.mxu3 %v131_v2  ;;  %331 = vmatmul.f32.gmra.mxu1 %v99_v3 }
  0x6a   :  { %269 = vmatmul.f32.gmra.mxu2 %v132_v4  ;;  %221 = vmatmul.f32.gmra.mxu0 %v100_v5 }
  0x6b   :  { %382 = vmatmul.f32.gmra.mxu3 %v133_v6  ;;  %334 = vmatmul.f32.gmra.mxu1 %v101_v7 }
  0x72   :  { %272 = vmatmul.f32.gmra.mxu2 %v134_v8  ;;  %224 = vmatmul.f32.gmra.mxu0 %v102_v9 }
  0x73   :  { %385 = vmatmul.f32.gmra.mxu3 %v135_v10  ;;  %337 = vmatmul.f32.gmra.mxu1 %v103_v11 }
  0x7a   :  { %275 = vmatmul.f32.gmra.mxu2 %v136_v12  ;;  %227 = vmatmul.f32.gmra.mxu0 %v104_v13 }
  0x7b   :  { %388 = vmatmul.f32.gmra.mxu3 %v137_v14  ;;  %340 = vmatmul.f32.gmra.mxu1 %v105_v15 }
  0x82   :  { %278 = vmatmul.f32.gmra.mxu2 %v138_v16  ;;  %230 = vmatmul.f32.gmra.mxu0 %v106_v17 }
  0x83   :  { %391 = vmatmul.f32.gmra.mxu3 %v139_v18  ;;  %343 = vmatmul.f32.gmra.mxu1 %v107_v19 }
  0x8a   :  { %281 = vmatmul.f32.gmra.mxu2 %v140_v20  ;;  %233 = vmatmul.f32.gmra.mxu0 %v108_v21 }
  0x8b   :  { %394 = vmatmul.f32.gmra.mxu3 %v141_v22  ;;  %346 = vmatmul.f32.gmra.mxu1 %v109_v23 }
  0x92   :  { %284 = vmatmul.f32.gmra.mxu2 %v142_v24  ;;  %236 = vmatmul.f32.gmra.mxu0 %v110_v25 }
  0x93   :  { %397 = vmatmul.f32.gmra.mxu3 %v143_v26  ;;  %349 = vmatmul.f32.gmra.mxu1 %v111_v27 }
  0x9a   :  { %287 = vmatmul.f32.gmra.mxu2 %v144_v28  ;;  %239 = vmatmul.f32.gmra.mxu0 %v112_v29 }
  0x9b   :  { %400 = vmatmul.f32.gmra.mxu3 %v145_v30  ;;  %352 = vmatmul.f32.gmra.mxu1 %v113_v31 }
  0x9f   :  { %v195_v34 = vpop.f32.mrf.mxu0 }
  0xa0   :  { %v308_v36 = vpop.f32.mrf.mxu1 }
  0xa1   :  { %v309_v37 = vadd.f32 %v308_v36, %v195_v34 }
  0xa3   :  { %v507_v38 = vadd.f32 %v1404_v35, %v309_v37 }
  0xa5   :  { %v243_v39 = vpop.f32.mrf.mxu2  ;;  %v1410_v40 = vsel %vm541_vm0, %v507_v38, -1e+30 }
  0xa6   :  { %v356_v41 = vpop.f32.mrf.mxu3  ;;  %574 = vmax.xlane.f32.xlu0 %v1410_v40 }
  0xa7   :  { %v357_v42 = vadd.f32 %v356_v41, %v243_v39  ;;  %v198_v43 = vpop.f32.mrf.mxu0 }
  0xa8   :  { %v311_v44 = vpop.f32.mrf.mxu1 }
  0xa9   :  { %v312_v45 = vadd.f32 %v311_v44, %v198_v43  ;;  %v523_v46 = vadd.f32 %v1404_v35, %v357_v42 }
  0xab   :  { %v1416_v47 = vsel %vm541_vm0, %v523_v46, -1e+30  ;;  %v508_v48 = vadd.f32 %v1404_v35, %v312_v45 }
  0xac   :  { %606 = vmax.xlane.f32.xlu1 %v1416_v47 }
  0xad   :  { %v246_v49 = vpop.f32.mrf.mxu2  ;;  %v1422_v50 = vsel %vm541_vm0, %v508_v48, -1e+30 }
  0xae   :  { %v359_v51 = vpop.f32.mrf.mxu3  ;;  %576 = vmax.xlane.f32.xlu0 %v1422_v50 }
  0xaf   :  { %v360_v52 = vadd.f32 %v359_v51, %v246_v49  ;;  %v201_v53 = vpop.f32.mrf.mxu0 }
  0xb0   :  { %v314_v54 = vpop.f32.mrf.mxu1 }
  0xb1   :  { %v315_v55 = vadd.f32 %v314_v54, %v201_v53  ;;  %v524_v56 = vadd.f32 %v1404_v35, %v360_v52 }
  0xb3   :  { %v1428_v57 = vsel %vm541_vm0, %v524_v56, -1e+30  ;;  %v509_v58 = vadd.f32 %v1404_v35, %v315_v55 }
  0xb4   :  { %608 = vmax.xlane.f32.xlu2 %v1428_v57 }
  0xb5   :  { %v249_v59 = vpop.f32.mrf.mxu2  ;;  %v1434_v60 = vsel %vm541_vm0, %v509_v58, -1e+30 }
  0xb6   :  { %v362_v61 = vpop.f32.mrf.mxu3  ;;  %578 = vmax.xlane.f32.xlu1 %v1434_v60 }
  0xb7   :  { %v363_v62 = vadd.f32 %v362_v61, %v249_v59  ;;  %v204_v63 = vpop.f32.mrf.mxu0 }
  0xb8   :  { %v317_v0 = vpop.f32.mrf.mxu1 }
  0xb9   :  { %v318_v1 = vadd.f32 %v317_v0, %v204_v63  ;;  %v525_v2 = vadd.f32 %v1404_v35, %v363_v62 }
  0xbb   :  { %v1440_v3 = vsel %vm541_vm0, %v525_v2, -1e+30  ;;  %v510_v4 = vadd.f32 %v1404_v35, %v318_v1 }
  0xbc   :  { %610 = vmax.xlane.f32.xlu0 %v1440_v3 }
  0xbd   :  { %v252_v5 = vpop.f32.mrf.mxu2  ;;  %v1446_v6 = vsel %vm541_vm0, %v510_v4, -1e+30 }
  0xbe   :  { %v365_v7 = vpop.f32.mrf.mxu3  ;;  %580 = vmax.xlane.f32.xlu1 %v1446_v6 }
  0xbf   :  { %v366_v8 = vadd.f32 %v365_v7, %v252_v5  ;;  %v207_v9 = vpop.f32.mrf.mxu0 }
  0xc0   :  { %v320_v10 = vpop.f32.mrf.mxu1 }
  0xc1   :  { %v321_v11 = vadd.f32 %v320_v10, %v207_v9  ;;  %v526_v12 = vadd.f32 %v1404_v35, %v366_v8 }
  0xc3   :  { %v511_v13 = vadd.f32 %v1404_v35, %v321_v11  ;;  %v1453_v15 = vsel %vm541_vm0, %v526_v12, -1e+30 }
  0xc5   :  { %v255_v14 = vpop.f32.mrf.mxu2  ;;  %v1457_v16 = vsel %vm541_vm0, %v511_v13, -1e+30 }
  0xc6   :  { %v368_v17 = vpop.f32.mrf.mxu3  ;;  %612 = vmax.xlane.f32.xlu1 %v1453_v15  ;;  %582 = vmax.xlane.f32.xlu2 %v1457_v16 }
  0xc7   :  { %v369_v18 = vadd.f32 %v368_v17, %v255_v14  ;;  %v210_v19 = vpop.f32.mrf.mxu0 }
  0xc8   :  { %v323_v20 = vpop.f32.mrf.mxu1 }
  0xc9   :  { %v527_v21 = vadd.f32 %v1404_v35, %v369_v18  ;;  %v324_v24 = vadd.f32 %v323_v20, %v210_v19 }
  0xcb   :  { %v1464_v23 = vsel %vm541_vm0, %v527_v21, -1e+30  ;;  %v512_v30 = vadd.f32 %v1404_v35, %v324_v24 }
  0xcd   :  { %v258_v22 = vpop.f32.mrf.mxu2  ;;  %v1476_v36 = vsel %vm541_vm0, %v512_v30, -1e+30 }
  0xce   :  { %v371_v25 = vpop.f32.mrf.mxu3  ;;  %614 = vmax.xlane.f32.xlu2 %v1464_v23 }
  0xcf   :  { %v372_v26 = vadd.f32 %v371_v25, %v258_v22  ;;  %v213_v27 = vpop.f32.mrf.mxu0 }
  0xd0   :  { %v326_v28 = vpop.f32.mrf.mxu1 }
  0xd1   :  { %v528_v29 = vadd.f32 %v1404_v35, %v372_v26  ;;  %v327_v31 = vadd.f32 %v326_v28, %v213_v27 }
  0xd3   :  { %v1471_v32 = vsel %vm541_vm0, %v528_v29, -1e+30  ;;  %v513_v37 = vadd.f32 %v1404_v35, %v327_v31 }
  0xd4   :  { %616 = vmax.xlane.f32.xlu0 %v1471_v32 }
  0xd5   :  { %v261_v34 = vpop.f32.mrf.mxu2  ;;  %v1483_v44 = vsel %vm541_vm0, %v513_v37, -1e+30 }
  0xd6   :  { %v374_v38 = vpop.f32.mrf.mxu3  ;;  %584 = vmax.xlane.f32.xlu2 %v1476_v36 }
  0xd7   :  { %v375_v39 = vadd.f32 %v374_v38, %v261_v34  ;;  %v216_v41 = vpop.f32.mrf.mxu0 }
  0xd8   :  { %v329_v42 = vpop.f32.mrf.mxu1 }
  0xd9   :  { %v529_v43 = vadd.f32 %v1404_v35, %v375_v39  ;;  %v330_v45 = vadd.f32 %v329_v42, %v216_v41 }
  0xdb   :  { %v1487_v46 = vsel %vm541_vm0, %v529_v43, -1e+30  ;;  %v514_v49 = vadd.f32 %v1404_v35, %v330_v45 }
  0xdc   :  { %618 = vmax.xlane.f32.xlu1 %v1487_v46  ;;  %586 = vmax.xlane.f32.xlu0 %v1483_v44 }
  0xdd   :  { %v264_v48 = vpop.f32.mrf.mxu2  ;;  %v1495_v56 = vsel %vm541_vm0, %v514_v49, -1e+30 }
  0xde   :  { %v377_v51 = vpop.f32.mrf.mxu3 }
  0xdf   :  { %v378_v52 = vadd.f32 %v377_v51, %v264_v48  ;;  %v219_v53 = vpop.f32.mrf.mxu0 }
  0xe0   :  { %v332_v54 = vpop.f32.mrf.mxu1 }
  0xe1   :  { %v530_v55 = vadd.f32 %v1404_v35, %v378_v52  ;;  %v333_v58 = vadd.f32 %v332_v54, %v219_v53 }
  0xe3   :  { %v1499_v59 = vsel %vm541_vm0, %v530_v55, -1e+30  ;;  %v515_v62 = vadd.f32 %v1404_v35, %v333_v58 }
  0xe4   :  { %620 = vmax.xlane.f32.xlu2 %v1499_v59  ;;  %588 = vmax.xlane.f32.xlu1 %v1495_v56 }
  0xe5   :  { %v267_v61 = vpop.f32.mrf.mxu2  ;;  %v1507_v5 = vsel %vm541_vm0, %v515_v62, -1e+30 }
  0xe6   :  { %v380_v63 = vpop.f32.mrf.mxu3 }
  0xe7   :  { %v381_v0 = vadd.f32 %v380_v63, %v267_v61  ;;  %v222_v1 = vpop.f32.mrf.mxu0 }
  0xe8   :  { %v335_v2 = vpop.f32.mrf.mxu1 }
  0xe9   :  { %v531_v4 = vadd.f32 %v1404_v35, %v381_v0  ;;  %v336_v7 = vadd.f32 %v335_v2, %v222_v1 }
  0xeb   :  { %v1511_v8 = vsel %vm541_vm0, %v531_v4, -1e+30  ;;  %v516_v10 = vadd.f32 %v1404_v35, %v336_v7 }
  0xec   :  { %622 = vmax.xlane.f32.xlu0 %v1511_v8  ;;  %590 = vmax.xlane.f32.xlu2 %v1507_v5 }
  0xed   :  { %v270_v9 = vpop.f32.mrf.mxu2  ;;  %v1519_v18 = vsel %vm541_vm0, %v516_v10, -1e+30 }
  0xee   :  { %v383_v11 = vpop.f32.mrf.mxu3 }
  0xef   :  { %v384_v12 = vadd.f32 %v383_v11, %v270_v9  ;;  %v225_v13 = vpop.f32.mrf.mxu0 }
  0xf0   :  { %v338_v14 = vpop.f32.mrf.mxu1 }
  0xf1   :  { %v532_v17 = vadd.f32 %v1404_v35, %v384_v12  ;;  %v339_v19 = vadd.f32 %v338_v14, %v225_v13 }
  0xf3   :  { %v1523_v20 = vsel %vm541_vm0, %v532_v17, -1e+30  ;;  %v517_v22 = vadd.f32 %v1404_v35, %v339_v19 }
  0xf4   :  { %624 = vmax.xlane.f32.xlu1 %v1523_v20  ;;  %592 = vmax.xlane.f32.xlu0 %v1519_v18 }
  0xf5   :  { %v273_v21 = vpop.f32.mrf.mxu2  ;;  %v1531_v29 = vsel %vm541_vm0, %v517_v22, -1e+30 }
  0xf6   :  { %v386_v24 = vpop.f32.mrf.mxu3 }
  0xf7   :  { %v387_v25 = vadd.f32 %v386_v24, %v273_v21  ;;  %v228_v26 = vpop.f32.mrf.mxu0 }
  0xf8   :  { %v341_v27 = vpop.f32.mrf.mxu1 }
  0xf9   :  { %v533_v28 = vadd.f32 %v1404_v35, %v387_v25  ;;  %v342_v30 = vadd.f32 %v341_v27, %v228_v26 }
  0xfb   :  { %v1535_v31 = vsel %vm541_vm0, %v533_v28, -1e+30  ;;  %v518_v37 = vadd.f32 %v1404_v35, %v342_v30 }
  0xfc   :  { %626 = vmax.xlane.f32.xlu2 %v1535_v31  ;;  %594 = vmax.xlane.f32.xlu1 %v1531_v29 }
  0xfd   :  { %v276_v34 = vpop.f32.mrf.mxu2  ;;  %v1543_v45 = vsel %vm541_vm0, %v518_v37, -1e+30 }
  0xfe   :  { %v389_v38 = vpop.f32.mrf.mxu3 }
  0xff   :  { %v390_v39 = vadd.f32 %v389_v38, %v276_v34  ;;  %v231_v41 = vpop.f32.mrf.mxu0 }
 0x100   :  { %v344_v42 = vpop.f32.mrf.mxu1 }
 0x101   :  { %v534_v43 = vadd.f32 %v1404_v35, %v390_v39  ;;  %v345_v48 = vadd.f32 %v344_v42, %v231_v41 }
 0x103   :  { %v1547_v49 = vsel %vm541_vm0, %v534_v43, -1e+30  ;;  %v519_v52 = vadd.f32 %v1404_v35, %v345_v48 }
 0x104   :  { %628 = vmax.xlane.f32.xlu0 %v1547_v49  ;;  %596 = vmax.xlane.f32.xlu2 %v1543_v45 }
 0x105   :  { %v279_v51 = vpop.f32.mrf.mxu2  ;;  %v1555_v62 = vsel %vm541_vm0, %v519_v52, -1e+30 }
 0x106   :  { %v392_v53 = vpop.f32.mrf.mxu3 }
 0x107   :  { %v393_v54 = vadd.f32 %v392_v53, %v279_v51  ;;  %v234_v55 = vpop.f32.mrf.mxu0 }
 0x108   :  { %v347_v58 = vpop.f32.mrf.mxu1 }
 0x109   :  { %v535_v61 = vadd.f32 %v1404_v35, %v393_v54  ;;  %v348_v63 = vadd.f32 %v347_v58, %v234_v55 }
 0x10b   :  { %v1559_v0 = vsel %vm541_vm0, %v535_v61, -1e+30  ;;  %v520_v2 = vadd.f32 %v1404_v35, %v348_v63 }
 0x10c   :  { %630 = vmax.xlane.f32.xlu1 %v1559_v0  ;;  %598 = vmax.xlane.f32.xlu0 %v1555_v62 }
 0x10d   :  { %v282_v1 = vpop.f32.mrf.mxu2  ;;  %v1567_v12 = vsel %vm541_vm0, %v520_v2, -1e+30 }
 0x10e   :  { %v395_v4 = vpop.f32.mrf.mxu3 }
 0x10f   :  { %v396_v7 = vadd.f32 %v395_v4, %v282_v1  ;;  %v237_v9 = vpop.f32.mrf.mxu0 }
 0x110   :  { %v350_v10 = vpop.f32.mrf.mxu1 }
 0x111   :  { %v536_v11 = vadd.f32 %v1404_v35, %v396_v7  ;;  %v351_v13 = vadd.f32 %v350_v10, %v237_v9 }
 0x113   :  { %v1571_v14 = vsel %vm541_vm0, %v536_v11, -1e+30  ;;  %v521_v19 = vadd.f32 %v1404_v35, %v351_v13 }
 0x114   :  { %632 = vmax.xlane.f32.xlu2 %v1571_v14  ;;  %600 = vmax.xlane.f32.xlu1 %v1567_v12 }
 0x115   :  { %v285_v17 = vpop.f32.mrf.mxu2  ;;  %v1579_v28 = vsel %vm541_vm0, %v521_v19, -1e+30 }
 0x116   :  { %v398_v21 = vpop.f32.mrf.mxu3 }
 0x117   :  { %v399_v22 = vadd.f32 %v398_v21, %v285_v17  ;;  %v240_v24 = vpop.f32.mrf.mxu0 }
 0x118   :  { %v353_v25 = vpop.f32.mrf.mxu1 }
 0x119   :  { %v575_v26 = vpop.xlane.xlu0 %574  ;;  %v537_v27 = vadd.f32 %v1404_v35, %v399_v22  ;;  %v354_v30 = vadd.f32 %v353_v25, %v240_v24 }
 0x11a   :  { %v1582_v34 = vsub.f32 %v1410_v40, %v575_v26 }
 0x11b   :  { %v1586_v37 = vsel %vm541_vm0, %v537_v27, -1e+30  ;;  %v522_v41 = vadd.f32 %v1404_v35, %v354_v30 }
 0x11c   :  { %v670_v38 = vmul.f32 1.442695, %v1582_v34  ;;  %634 = vmax.xlane.f32.xlu0 %v1586_v37  ;;  %602 = vmax.xlane.f32.xlu2 %v1579_v28 }
 0x11d   :  { %v288_v39 = vpop.f32.mrf.mxu2  ;;  %v1598_v52 = vsel %vm541_vm0, %v522_v41, -1e+30 }
 0x11e   :  { %963 = vpow2.f32 %v670_v38  ;;  %v401_v42 = vpop.f32.mrf.mxu3 }
 0x11f   :  { %v402_v43 = vadd.f32 %v401_v42, %v288_v39  ;;  %v607_v48 = vpop.xlane.xlu1 %606 }
 0x120   :  { %v1593_v40 = vsub.f32 %v1416_v47, %v607_v48 }
 0x121   :  { %v538_v51 = vadd.f32 %v1404_v35, %v402_v43  ;;  %v577_v54 = vpop.xlane.xlu0 %576 }
 0x122   :  { %v702_v53 = vmul.f32 1.442695, %v1593_v40  ;;  %v1608_v47 = vsub.f32 %v1422_v50, %v577_v54 }
 0x123   :  { %v1603_v55 = vsel %vm541_vm0, %v538_v51, -1e+30 }
 0x124   :  { %v964_v58 = vpop.eup %963  ;;  %965 = vpow2.f32 %v702_v53  ;;  %636 = vmax.xlane.f32.xlu1 %v1603_v55  ;;  %604 = vmax.xlane.f32.xlu0 %v1598_v52  ;;  %v672_v63 = vmul.f32 1.442695, %v1608_v47 }
 0x125   :  { %734 = vadd.xlane.f32.xlu2 %v964_v58 }
 0x127   :  { %v609_v35 = vpop.xlane.xlu2 %608 }
 0x128   :  { %v1611_v61 = vsub.f32 %v1428_v57, %v609_v35 }
 0x129   :  { %v579_v1 = vpop.xlane.xlu1 %578 }
 0x12a   :  { %v966_v33 = vpop.eup %965  ;;  %v704_v2 = vmul.f32 1.442695, %v1611_v61  ;;  %v1616_v4 = vsub.f32 %v1434_v60, %v579_v1 }
 0x12c   :  { %967 = vpow2.f32 %v704_v2  ;;  %766 = vadd.xlane.f32.xlu0 %v966_v33  ;;  %v674_v50 = vmul.f32 1.442695, %v1616_v4 }
 0x12d   :  { %969 = vpow2.f32 %v672_v63 }
 0x12e   :  { %971 = vpow2.f32 %v674_v50 }
 0x12f   :  { %v611_v7 = vpop.xlane.xlu0 %610 }
 0x130   :  { %v1620_v9 = vsub.f32 %v1440_v3, %v611_v7 }
 0x131   :  { %v581_v57 = vpop.xlane.xlu1 %580 }
 0x132   :  { %v968_v10 = vpop.eup %967  ;;  %v706_v11 = vmul.f32 1.442695, %v1620_v9  ;;  %v1624_v60 = vsub.f32 %v1446_v6, %v581_v57 }
 0x133   :  { %v970_v13 = vpop.eup %969  ;;  %768 = vadd.xlane.f32.xlu1 %v968_v10 }
 0x134   :  { %973 = vpow2.f32 %v706_v11  ;;  %736 = vadd.xlane.f32.xlu0 %v970_v13  ;;  %v676_v17 = vmul.f32 1.442695, %v1624_v60  ;;  %v972_v19 = vpop.eup %971 }
 0x136   :  { %975 = vpow2.f32 %v676_v17 }
 0x139   :  { %v613_v21 = vpop.xlane.xlu1 %612  ;;  %v583_v22 = vpop.xlane.xlu2 %582 }
 0x13a   :  { %v974_v24 = vpop.eup %973  ;;  %v1628_v3 = vsub.f32 %v1453_v15, %v613_v21  ;;  %v1632_v26 = vsub.f32 %v1457_v16, %v583_v22 }
 0x13b   :  { %738 = vadd.xlane.f32.xlu1 %v972_v19  ;;  %770 = vadd.xlane.f32.xlu2 %v974_v24 }
 0x13c   :  { %v708_v25 = vmul.f32 1.442695, %v1628_v3  ;;  %v678_v6 = vmul.f32 1.442695, %v1632_v26  ;;  %v976_v30 = vpop.eup %975 }
 0x13e   :  { %977 = vpow2.f32 %v708_v25 }
 0x13f   :  { %979 = vpow2.f32 %v678_v6 }
 0x141   :  { %v615_v27 = vpop.xlane.xlu2 %614 }
 0x142   :  { %v1636_v38 = vsub.f32 %v1464_v23, %v615_v27 }
 0x143   :  { %740 = vadd.xlane.f32.xlu2 %v976_v30 }
 0x144   :  { %v978_v39 = vpop.eup %977  ;;  %v710_v15 = vmul.f32 1.442695, %v1636_v38 }
 0x145   :  { %772 = vadd.xlane.f32.xlu0 %v978_v39  ;;  %v980_v51 = vpop.eup %979 }
 0x146   :  { %981 = vpow2.f32 %v710_v15 }
 0x147   :  { %v617_v41 = vpop.xlane.xlu0 %616 }
 0x148   :  { %v1640_v42 = vsub.f32 %v1471_v32, %v617_v41 }
 0x149   :  { %v585_v16 = vpop.xlane.xlu2 %584 }
 0x14a   :  { %v712_v43 = vmul.f32 1.442695, %v1640_v42  ;;  %v1644_v48 = vsub.f32 %v1476_v36, %v585_v16 }
 0x14c   :  { %v982_v23 = vpop.eup %981  ;;  %983 = vpow2.f32 %v712_v43  ;;  %v680_v53 = vmul.f32 1.442695, %v1644_v48 }
 0x14d   :  { %774 = vadd.xlane.f32.xlu1 %v982_v23  ;;  %742 = vadd.xlane.f32.xlu0 %v980_v51 }
 0x14e   :  { %985 = vpow2.f32 %v680_v53 }
 0x14f   :  { %v619_v54 = vpop.xlane.xlu1 %618  ;;  %v587_v58 = vpop.xlane.xlu0 %586 }
 0x150   :  { %v1648_v35 = vsub.f32 %v1487_v46, %v619_v54  ;;  %v1651_v32 = vsub.f32 %v1483_v44, %v587_v58 }
 0x152   :  { %v984_v63 = vpop.eup %983  ;;  %v714_v36 = vmul.f32 1.442695, %v1648_v35  ;;  %v682_v1 = vmul.f32 1.442695, %v1651_v32 }
 0x153   :  { %776 = vadd.xlane.f32.xlu2 %v984_v63 }
 0x154   :  { %v986_v33 = vpop.eup %985  ;;  %987 = vpow2.f32 %v714_v36 }
 0x155   :  { %989 = vpow2.f32 %v682_v1  ;;  %744 = vadd.xlane.f32.xlu1 %v986_v33 }
 0x157   :  { %v621_v2 = vpop.xlane.xlu2 %620  ;;  %v589_v50 = vpop.xlane.xlu1 %588 }
 0x158   :  { %v1656_v7 = vsub.f32 %v1499_v59, %v621_v2  ;;  %v1659_v46 = vsub.f32 %v1495_v56, %v589_v50 }
 0x15a   :  { %v988_v44 = vpop.eup %987  ;;  %v716_v57 = vmul.f32 1.442695, %v1656_v7  ;;  %v684_v10 = vmul.f32 1.442695, %v1659_v46 }
 0x15b   :  { %v990_v11 = vpop.eup %989  ;;  %778 = vadd.xlane.f32.xlu0 %v988_v44 }
 0x15c   :  { %991 = vpow2.f32 %v716_v57  ;;  %746 = vadd.xlane.f32.xlu2 %v990_v11 }
 0x15d   :  { %993 = vpow2.f32 %v684_v10 }
 0x15f   :  { %v623_v13 = vpop.xlane.xlu0 %622  ;;  %v591_v17 = vpop.xlane.xlu2 %590 }
 0x160   :  { %v1664_v19 = vsub.f32 %v1511_v8, %v623_v13  ;;  %v1667_v59 = vsub.f32 %v1507_v5, %v591_v17 }
 0x162   :  { %v992_v56 = vpop.eup %991  ;;  %v718_v21 = vmul.f32 1.442695, %v1664_v19  ;;  %v686_v22 = vmul.f32 1.442695, %v1667_v59 }
 0x163   :  { %v994_v24 = vpop.eup %993  ;;  %780 = vadd.xlane.f32.xlu1 %v992_v56 }
 0x164   :  { %995 = vpow2.f32 %v718_v21  ;;  %748 = vadd.xlane.f32.xlu0 %v994_v24 }
 0x165   :  { %997 = vpow2.f32 %v686_v22 }
 0x167   :  { %v625_v25 = vpop.xlane.xlu1 %624  ;;  %v593_v6 = vpop.xlane.xlu0 %592 }
 0x168   :  { %v1672_v27 = vsub.f32 %v1523_v20, %v625_v25  ;;  %v1675_v8 = vsub.f32 %v1519_v18, %v593_v6 }
 0x16a   :  { %v996_v5 = vpop.eup %995  ;;  %v720_v30 = vmul.f32 1.442695, %v1672_v27  ;;  %v688_v39 = vmul.f32 1.442695, %v1675_v8 }
 0x16b   :  { %v998_v15 = vpop.eup %997  ;;  %782 = vadd.xlane.f32.xlu2 %v996_v5 }
 0x16c   :  { %999 = vpow2.f32 %v720_v30  ;;  %750 = vadd.xlane.f32.xlu1 %v998_v15 }
 0x16d   :  { %1001 = vpow2.f32 %v688_v39 }
 0x16f   :  { %v627_v41 = vpop.xlane.xlu2 %626  ;;  %v595_v16 = vpop.xlane.xlu1 %594 }
 0x170   :  { %v1680_v43 = vsub.f32 %v1535_v31, %v627_v41  ;;  %v1683_v20 = vsub.f32 %v1531_v29, %v595_v16 }
 0x172   :  { %v1000_v18 = vpop.eup %999  ;;  %v722_v51 = vmul.f32 1.442695, %v1680_v43  ;;  %v690_v23 = vmul.f32 1.442695, %v1683_v20 }
 0x173   :  { %v1002_v53 = vpop.eup %1001  ;;  %784 = vadd.xlane.f32.xlu0 %v1000_v18 }
 0x174   :  { %1003 = vpow2.f32 %v722_v51  ;;  %752 = vadd.xlane.f32.xlu2 %v1002_v53 }
 0x175   :  { %1005 = vpow2.f32 %v690_v23 }
 0x177   :  { %v629_v54 = vpop.xlane.xlu0 %628  ;;  %v597_v58 = vpop.xlane.xlu2 %596 }
 0x178   :  { %v1688_v63 = vsub.f32 %v1547_v49, %v629_v54  ;;  %v1691_v31 = vsub.f32 %v1543_v45, %v597_v58 }
 0x17a   :  { %v1004_v29 = vpop.eup %1003  ;;  %v724_v36 = vmul.f32 1.442695, %v1688_v63  ;;  %v692_v1 = vmul.f32 1.442695, %v1691_v31 }
 0x17b   :  { %v1006_v33 = vpop.eup %1005  ;;  %786 = vadd.xlane.f32.xlu1 %v1004_v29 }
 0x17c   :  { %1007 = vpow2.f32 %v724_v36  ;;  %754 = vadd.xlane.f32.xlu0 %v1006_v33 }
 0x17d   :  { %1009 = vpow2.f32 %v692_v1 }
 0x17f   :  { %v631_v2 = vpop.xlane.xlu1 %630  ;;  %v599_v50 = vpop.xlane.xlu0 %598 }
 0x180   :  { %v1696_v44 = vsub.f32 %v1559_v0, %v631_v2  ;;  %v1699_v49 = vsub.f32 %v1555_v62, %v599_v50 }
 0x182   :  { %v1008_v45 = vpop.eup %1007  ;;  %v726_v57 = vmul.f32 1.442695, %v1696_v44  ;;  %v694_v10 = vmul.f32 1.442695, %v1699_v49 }
 0x183   :  { %v1010_v11 = vpop.eup %1009  ;;  %788 = vadd.xlane.f32.xlu2 %v1008_v45 }
 0x184   :  { %1011 = vpow2.f32 %v726_v57  ;;  %756 = vadd.xlane.f32.xlu1 %v1010_v11 }
 0x185   :  { %1013 = vpow2.f32 %v694_v10 }
 0x187   :  { %v633_v13 = vpop.xlane.xlu2 %632  ;;  %v601_v17 = vpop.xlane.xlu1 %600 }
 0x188   :  { %v1704_v56 = vsub.f32 %v1567_v12, %v601_v17  ;;  %v1712_v30 = vsub.f32 %v1571_v14, %v633_v13 }
 0x18a   :  { %v1012_v0 = vpop.eup %1011  ;;  %v696_v21 = vmul.f32 1.442695, %v1704_v56  ;;  %v728_v12 = vmul.f32 1.442695, %v1712_v30 }
 0x18b   :  { %v1014_v62 = vpop.eup %1013  ;;  %790 = vadd.xlane.f32.xlu0 %v1012_v0 }
 0x18c   :  { %758 = vadd.xlane.f32.xlu2 %v1014_v62  ;;  %1015 = vpow2.f32 %v696_v21 }
 0x18f   :  { %v635_v22 = vpop.xlane.xlu0 %634  ;;  %v603_v24 = vpop.xlane.xlu2 %602 }
 0x190   :  { %v1708_v25 = vsub.f32 %v1579_v28, %v603_v24  ;;  %v1724_v23 = vsub.f32 %v1586_v37, %v635_v22 }
 0x192   :  { %v698_v6 = vmul.f32 1.442695, %v1708_v25  ;;  %v1016_v5 = vpop.eup %1015  ;;  %v730_v58 = vmul.f32 1.442695, %v1724_v23 }
 0x193   :  { %760 = vadd.xlane.f32.xlu0 %v1016_v5 }
 0x194   :  { %1017 = vpow2.f32 %v698_v6 }
 0x197   :  { %v637_v39 = vpop.xlane.xlu1 %636  ;;  %v605_v15 = vpop.xlane.xlu0 %604 }
 0x198   :  { %v1716_v41 = vsub.f32 %v1603_v55, %v637_v39  ;;  %v1719_v16 = vsub.f32 %v1598_v52, %v605_v15  ;;  %v735_v28 = vpop.xlane.xlu2 %734 }
 0x199   :  { %1019 = vlog2.f32 %v735_v28 }
 0x19a   :  { %v732_v18 = vmul.f32 1.442695, %v1716_v41  ;;  %v700_v51 = vmul.f32 1.442695, %v1719_v16  ;;  %v1018_v14 = vpop.eup %1017  ;;  %1021 = vpow2.f32 %v728_v12 }
 0x19b   :  { %762 = vadd.xlane.f32.xlu1 %v1018_v14 }
 0x19c   :  { %1023 = vpow2.f32 %v732_v18 }
 0x19d   :  { %1025 = vpow2.f32 %v700_v51 }
 0x19f   :  { %v1020_v53 = vpop.eup %1019  ;;  %v767_v55 = vpop.xlane.xlu0 %766 }
 0x1a0   :  { %v799_v54 = vmul.f32 0.6931472, %v1020_v53  ;;  %1027 = vlog2.f32 %v767_v55  ;;  %v1022_v52 = vpop.eup %1021 }
 0x1a1   :  { %1029 = vpow2.f32 %v730_v58 }
 0x1a2   :  { %v1024_v29 = vpop.eup %1023  ;;  %v862_v36 = vsub.f32 %v1582_v34, %v799_v54 }
 0x1a3   :  { %v1026_v1 = vpop.eup %1025  ;;  %796 = vadd.xlane.f32.xlu0 %v1024_v29  ;;  %792 = vadd.xlane.f32.xlu1 %v1022_v52 }
 0x1a4   :  { %894 = vst [vmem:[%s1858_s3] sm:$0xff] %v862_v36  ;;  %764 = vadd.xlane.f32.xlu2 %v1026_v1 }
 0x1a6   :  { %v1028_v37 = vpop.eup %1027  ;;  %v769_v33 = vpop.xlane.xlu1 %768 }
 0x1a7   :  { %v831_v2 = vmul.f32 0.6931472, %v1028_v37  ;;  %1031 = vlog2.f32 %v769_v33  ;;  %v737_v50 = vpop.xlane.xlu0 %736  ;;  %v1030_v57 = vpop.eup %1029 }
 0x1a8   :  { %1033 = vlog2.f32 %v737_v50 }
 0x1a9   :  { %v878_v45 = vsub.f32 %v1593_v40, %v831_v2 }
 0x1ab   :  { %910 = vst [vmem:[%s1858_s3 + $0x80] sm:$0xff] %v878_v45 }
 0x1ac   :  { %794 = vadd.xlane.f32.xlu2 %v1030_v57 }
 0x1ad   :  { %v1032_v34 = vpop.eup %1031 }
 0x1ae   :  { %v1034_v10 = vpop.eup %1033  ;;  %v833_v11 = vmul.f32 0.6931472, %v1032_v34  ;;  %v739_v13 = vpop.xlane.xlu1 %738 }
 0x1af   :  { %v771_v17 = vpop.xlane.xlu2 %770  ;;  %v801_v0 = vmul.f32 0.6931472, %v1034_v10  ;;  %1035 = vlog2.f32 %v739_v13 }
 0x1b0   :  { %v879_v21 = vsub.f32 %v1611_v61, %v833_v11  ;;  %1037 = vlog2.f32 %v771_v17 }
 0x1b1   :  { %v863_v62 = vsub.f32 %v1608_v47, %v801_v0 }
 0x1b2   :  { %911 = vst [vmem:[%s1858_s3 + $0x88] sm:$0xff] %v879_v21 }
 0x1b3   :  { %895 = vst [vmem:[%s1858_s3 + $0x8] sm:$0xff] %v863_v62 }
 0x1b5   :  { %v1036_v40 = vpop.eup %1035 }
 0x1b6   :  { %v1038_v22 = vpop.eup %1037  ;;  %v803_v24 = vmul.f32 0.6931472, %v1036_v40 }
 0x1b7   :  { %v741_v6 = vpop.xlane.xlu2 %740  ;;  %v835_v5 = vmul.f32 0.6931472, %v1038_v22 }
 0x1b8   :  { %1039 = vlog2.f32 %v741_v6  ;;  %v864_v12 = vsub.f32 %v1616_v4, %v803_v24  ;;  %v773_v61 = vpop.xlane.xlu0 %772 }
 0x1b9   :  { %v880_v39 = vsub.f32 %v1620_v9, %v835_v5  ;;  %1041 = vlog2.f32 %v773_v61 }
 0x1ba   :  { %896 = vst [vmem:[%s1858_s3 + $0x10] sm:$0xff] %v864_v12 }
 0x1bb   :  { %912 = vst [vmem:[%s1858_s3 + $0x90] sm:$0xff] %v880_v39 }
 0x1be   :  { %v1040_v47 = vpop.eup %1039 }
 0x1bf   :  { %v805_v15 = vmul.f32 0.6931472, %v1040_v47  ;;  %v1042_v28 = vpop.eup %1041 }
 0x1c0   :  { %v837_v51 = vmul.f32 0.6931472, %v1042_v28  ;;  %v775_v14 = vpop.xlane.xlu1 %774  ;;  %v743_v4 = vpop.xlane.xlu0 %742 }
 0x1c1   :  { %v865_v18 = vsub.f32 %v1624_v60, %v805_v15  ;;  %1043 = vlog2.f32 %v775_v14 }
 0x1c2   :  { %v881_v9 = vsub.f32 %v1628_v3, %v837_v51  ;;  %1045 = vlog2.f32 %v743_v4 }
 0x1c3   :  { %897 = vst [vmem:[%s1858_s3 + $0x18] sm:$0xff] %v865_v18 }
 0x1c4   :  { %913 = vst [vmem:[%s1858_s3 + $0x98] sm:$0xff] %v881_v9 }
 0x1c6   :  { %v777_v53 = vpop.xlane.xlu2 %776 }
 0x1c7   :  { %v1044_v55 = vpop.eup %1043  ;;  %1047 = vlog2.f32 %v777_v53 }
 0x1c8   :  { %v1046_v54 = vpop.eup %1045  ;;  %v839_v60 = vmul.f32 0.6931472, %v1044_v55  ;;  %v745_v52 = vpop.xlane.xlu1 %744 }
 0x1c9   :  { %v807_v58 = vmul.f32 0.6931472, %v1046_v54  ;;  %1049 = vlog2.f32 %v745_v52 }
 0x1ca   :  { %v882_v29 = vsub.f32 %v1636_v38, %v839_v60 }
 0x1cb   :  { %v866_v36 = vsub.f32 %v1632_v26, %v807_v58 }
 0x1cc   :  { %914 = vst [vmem:[%s1858_s3 + $0xa0] sm:$0xff] %v882_v29 }
 0x1cd   :  { %v1048_v3 = vpop.eup %1047  ;;  %898 = vst [vmem:[%s1858_s3 + $0x20] sm:$0xff] %v866_v36 }
 0x1ce   :  { %v841_v1 = vmul.f32 0.6931472, %v1048_v3  ;;  %v779_v37 = vpop.xlane.xlu0 %778 }
 0x1cf   :  { %v1050_v33 = vpop.eup %1049  ;;  %v747_v2 = vpop.xlane.xlu2 %746  ;;  %1051 = vlog2.f32 %v779_v37 }
 0x1d0   :  { %v883_v50 = vsub.f32 %v1640_v42, %v841_v1  ;;  %v809_v45 = vmul.f32 0.6931472, %v1050_v33  ;;  %1053 = vlog2.f32 %v747_v2 }
 0x1d2   :  { %915 = vst [vmem:[%s1858_s3 + $0xa8] sm:$0xff] %v883_v50  ;;  %v867_v26 = vsub.f32 %v1644_v48, %v809_v45 }
 0x1d4   :  { %899 = vst [vmem:[%s1858_s3 + $0x28] sm:$0xff] %v867_v26 }
 0x1d5   :  { %v1052_v38 = vpop.eup %1051 }
 0x1d6   :  { %v1054_v57 = vpop.eup %1053  ;;  %v843_v34 = vmul.f32 0.6931472, %v1052_v38  ;;  %v781_v10 = vpop.xlane.xlu1 %780 }
 0x1d7   :  { %v811_v11 = vmul.f32 0.6931472, %v1054_v57  ;;  %1055 = vlog2.f32 %v781_v10  ;;  %v749_v13 = vpop.xlane.xlu0 %748 }
 0x1d8   :  { %v884_v42 = vsub.f32 %v1648_v35, %v843_v34  ;;  %1057 = vlog2.f32 %v749_v13 }
 0x1d9   :  { %v868_v17 = vsub.f32 %v1651_v32, %v811_v11 }
 0x1da   :  { %916 = vst [vmem:[%s1858_s3 + $0xb0] sm:$0xff] %v884_v42 }
 0x1db   :  { %900 = vst [vmem:[%s1858_s3 + $0x30] sm:$0xff] %v868_v17 }
 0x1dd   :  { %v1056_v48 = vpop.eup %1055 }
 0x1de   :  { %v1058_v0 = vpop.eup %1057  ;;  %v845_v21 = vmul.f32 0.6931472, %v1056_v48  ;;  %v783_v62 = vpop.xlane.xlu2 %782 }
 0x1df   :  { %v813_v40 = vmul.f32 0.6931472, %v1058_v0  ;;  %v751_v22 = vpop.xlane.xlu1 %750  ;;  %1059 = vlog2.f32 %v783_v62 }
 0x1e0   :  { %v885_v35 = vsub.f32 %v1656_v7, %v845_v21  ;;  %1061 = vlog2.f32 %v751_v22 }
 0x1e1   :  { %v869_v32 = vsub.f32 %v1659_v46, %v813_v40 }
 0x1e2   :  { %917 = vst [vmem:[%s1858_s3 + $0xb8] sm:$0xff] %v885_v35 }
 0x1e3   :  { %901 = vst [vmem:[%s1858_s3 + $0x38] sm:$0xff] %v869_v32 }
 0x1e5   :  { %v1060_v24 = vpop.eup %1059 }
 0x1e6   :  { %v1062_v6 = vpop.eup %1061  ;;  %v847_v5 = vmul.f32 0.6931472, %v1060_v24  ;;  %v785_v12 = vpop.xlane.xlu0 %784 }
 0x1e7   :  { %v815_v61 = vmul.f32 0.6931472, %v1062_v6  ;;  %v753_v39 = vpop.xlane.xlu2 %752  ;;  %1063 = vlog2.f32 %v785_v12 }
 0x1e8   :  { %v886_v7 = vsub.f32 %v1664_v19, %v847_v5  ;;  %1065 = vlog2.f32 %v753_v39 }
 0x1e9   :  { %v870_v46 = vsub.f32 %v1667_v59, %v815_v61 }
 0x1ea   :  { %918 = vst [vmem:[%s1858_s3 + $0xc0] sm:$0xff] %v886_v7 }
 0x1eb   :  { %902 = vst [vmem:[%s1858_s3 + $0x40] sm:$0xff] %v870_v46 }
 0x1ed   :  { %v1064_v47 = vpop.eup %1063 }
 0x1ee   :  { %v1066_v15 = vpop.eup %1065  ;;  %v849_v28 = vmul.f32 0.6931472, %v1064_v47  ;;  %v787_v18 = vpop.xlane.xlu1 %786 }
 0x1ef   :  { %v817_v51 = vmul.f32 0.6931472, %v1066_v15  ;;  %1067 = vlog2.f32 %v787_v18  ;;  %v755_v14 = vpop.xlane.xlu0 %754 }
 0x1f0   :  { %v887_v19 = vsub.f32 %v1672_v27, %v849_v28  ;;  %1069 = vlog2.f32 %v755_v14 }
 0x1f1   :  { %v871_v59 = vsub.f32 %v1675_v8, %v817_v51 }
 0x1f2   :  { %919 = vst [vmem:[%s1858_s3 + $0xc8] sm:$0xff] %v887_v19 }
 0x1f3   :  { %903 = vst [vmem:[%s1858_s3 + $0x48] sm:$0xff] %v871_v59 }
 0x1f5   :  { %v1068_v4 = vpop.eup %1067 }
 0x1f6   :  { %v1070_v9 = vpop.eup %1069  ;;  %v851_v53 = vmul.f32 0.6931472, %v1068_v4  ;;  %v789_v55 = vpop.xlane.xlu2 %788 }
 0x1f7   :  { %v819_v54 = vmul.f32 0.6931472, %v1070_v9  ;;  %v757_v60 = vpop.xlane.xlu1 %756  ;;  %1071 = vlog2.f32 %v789_v55 }
 0x1f8   :  { %v888_v27 = vsub.f32 %v1680_v43, %v851_v53  ;;  %1073 = vlog2.f32 %v757_v60 }
 0x1f9   :  { %v872_v8 = vsub.f32 %v1683_v20, %v819_v54 }
 0x1fa   :  { %920 = vst [vmem:[%s1858_s3 + $0xd0] sm:$0xff] %v888_v27 }
 0x1fb   :  { %904 = vst [vmem:[%s1858_s3 + $0x50] sm:$0xff] %v872_v8 }
 0x1fd   :  { %v1072_v52 = vpop.eup %1071 }
 0x1fe   :  { %v1074_v58 = vpop.eup %1073  ;;  %v853_v29 = vmul.f32 0.6931472, %v1072_v52  ;;  %v791_v36 = vpop.xlane.xlu0 %790 }
 0x1ff   :  { %v821_v3 = vmul.f32 0.6931472, %v1074_v58  ;;  %v759_v1 = vpop.xlane.xlu2 %758  ;;  %1075 = vlog2.f32 %v791_v36 }
 0x200   :  { %v889_v43 = vsub.f32 %v1688_v63, %v853_v29  ;;  %1077 = vlog2.f32 %v759_v1 }
 0x201   :  { %v873_v20 = vsub.f32 %v1691_v31, %v821_v3 }
 0x202   :  { %921 = vst [vmem:[%s1858_s3 + $0xd8] sm:$0xff] %v889_v43 }
 0x203   :  { %905 = vst [vmem:[%s1858_s3 + $0x58] sm:$0xff] %v873_v20 }
 0x205   :  { %v1076_v37 = vpop.eup %1075 }
 0x206   :  { %v1078_v33 = vpop.eup %1077  ;;  %v855_v2 = vmul.f32 0.6931472, %v1076_v37  ;;  %v761_v45 = vpop.xlane.xlu0 %760 }
 0x207   :  { %v823_v50 = vmul.f32 0.6931472, %v1078_v33  ;;  %1079 = vlog2.f32 %v761_v45 }
 0x208   :  { %v890_v26 = vsub.f32 %v1696_v44, %v855_v2 }
 0x209   :  { %v874_v63 = vsub.f32 %v1699_v49, %v823_v50 }
 0x20a   :  { %922 = vst [vmem:[%s1858_s3 + $0xe0] sm:$0xff] %v890_v26 }
 0x20b   :  { %906 = vst [vmem:[%s1858_s3 + $0x60] sm:$0xff] %v874_v63 }
 0x20d   :  { %v1080_v31 = vpop.eup %1079 }
 0x20e   :  { %v825_v38 = vmul.f32 0.6931472, %v1080_v31  ;;  %v763_v57 = vpop.xlane.xlu1 %762 }
 0x20f   :  { %1081 = vlog2.f32 %v763_v57 }
 0x210   :  { %v875_v34 = vsub.f32 %v1704_v56, %v825_v38 }
 0x212   :  { %907 = vst [vmem:[%s1858_s3 + $0x68] sm:$0xff] %v875_v34 }
 0x215   :  { %v1082_v44 = vpop.eup %1081 }
 0x216   :  { %v797_v49 = vpop.xlane.xlu0 %796  ;;  %v827_v10 = vmul.f32 0.6931472, %v1082_v44  ;;  %v793_v11 = vpop.xlane.xlu1 %792 }
 0x217   :  { %v765_v13 = vpop.xlane.xlu2 %764  ;;  %1083 = vlog2.f32 %v797_v49 }
 0x218   :  { %1085 = vlog2.f32 %v793_v11  ;;  %v876_v42 = vsub.f32 %v1708_v25, %v827_v10 }
 0x219   :  { %1087 = vlog2.f32 %v765_v13 }
 0x21a   :  { %908 = vst [vmem:[%s1858_s3 + $0x70] sm:$0xff] %v876_v42 }
 0x21d   :  { %v1084_v17 = vpop.eup %1083 }
 0x21e   :  { %v1086_v56 = vpop.eup %1085  ;;  %v861_v48 = vmul.f32 0.6931472, %v1084_v17 }
 0x21f   :  { %v1088_v0 = vpop.eup %1087  ;;  %v857_v21 = vmul.f32 0.6931472, %v1086_v56  ;;  %v795_v62 = vpop.xlane.xlu2 %794 }
 0x220   :  { %v829_v40 = vmul.f32 0.6931472, %v1088_v0  ;;  %v893_v22 = vsub.f32 %v1716_v41, %v861_v48  ;;  %1089 = vlog2.f32 %v795_v62 }
 0x221   :  { %v891_v35 = vsub.f32 %v1712_v30, %v857_v21 }
 0x222   :  { %v877_v32 = vsub.f32 %v1719_v16, %v829_v40  ;;  %925 = vst [vmem:[%s1858_s3 + $0xf8] sm:$0xff] %v893_v22 }
 0x223   :  { %923 = vst [vmem:[%s1858_s3 + $0xe8] sm:$0xff] %v891_v35 }
 0x224   :  { %909 = vst [vmem:[%s1858_s3 + $0x78] sm:$0xff] %v877_v32 }
 0x226   :  { %v1090_v25 = vpop.eup %1089 }
 0x227   :  { %v859_v24 = vmul.f32 0.6931472, %v1090_v25 }
 0x229   :  { %v892_v41 = vsub.f32 %v1724_v23, %v859_v24 }
 0x22b   :  { %924 = vst [vmem:[%s1858_s3 + $0xf0] sm:$0xff] %v892_v41 }

</bundles_post_ra>
